<compile_context>
chip_gen: v6e
topology: v6e:2x2x1
jax: 0.10.0
libtpu: 0.0.40
codegen_flags: <defaults>
</compile_context>

<pallas_src>
import functools
import math

import jax
import jax.numpy as jnp
from jax.experimental import pallas as pl
from jax.experimental.pallas import tpu as pltpu


def _attn_kernel(hs_ref, wqkv_ref, wo_ref, rope_ref, out_ref, *, head_dim, scale):
    # hs: (G,S,E) bf16   wqkv: (G,E,3H) bf16   wo: (G,H,E) bf16
    # rope: (2,S,H) f32  out: (G,S,E)
    H = head_dim
    G, S, E = hs_ref.shape

    x = hs_ref[...]                      # (G, S, E)   bf16
    w = wqkv_ref[...]                    # (G, E, 3H)  bf16

    # Fused Q/K/V projection: one batched (S,E)x(E,3H) matmul per head.
    qkv = jnp.einsum("gse,gef->gsf", x, w,
                     preferred_element_type=jnp.float32)          # (G, S, 3H) f32
    q = qkv[..., 0 * H:1 * H]
    k = qkv[..., 1 * H:2 * H]
    v = qkv[..., 2 * H:3 * H]

    cos = rope_ref[0]                    # (S, H) f32
    sin_signed = rope_ref[1]             # (S, H) f32, rotate_half sign folded in

    def apply_rope(t):                   # t: (G, S, H) f32
        # rotate_half == lane roll by H/2 (sign lives in sin_signed).
        rot = pltpu.roll(t.reshape(G * S, H), shift=H // 2, axis=1).reshape(t.shape)
        return t * cos + rot * sin_signed

    qb = (apply_rope(q) * scale).astype(jnp.bfloat16)   # 1/sqrt(H) folded into q
    kb = apply_rope(k).astype(jnp.bfloat16)
    vb = v.astype(jnp.bfloat16)

    # Scaled dot-product attention; softmax in f32 (matches torch reference).
    s = jnp.einsum("gqh,gkh->gqk", qb, kb,
                   preferred_element_type=jnp.float32)            # (G, S, S)
    s = s - jnp.max(s, axis=-1, keepdims=True)
    p = jnp.exp(s)
    p = p * pl.reciprocal(jnp.sum(p, axis=-1, keepdims=True), approx=True)

    ao = jnp.einsum("gqk,gkh->gqh", p.astype(jnp.bfloat16), vb,
                    preferred_element_type=jnp.float32)           # (G, S, H)

    # Per-head output projection (matches reference einsum 'bsnh,nhe->bnse').
    out = jnp.einsum("gsh,ghe->gse", ao.astype(jnp.bfloat16), wo_ref[...],
                     preferred_element_type=jnp.float32)          # (G, S, E)
    out_ref[...] = out.astype(out_ref.dtype)


def llama_attention_pallas(hidden_states, wq, wk, wv, wo, *, group_size=None):
    """hidden_states: (B, S, N, E); wq/wk/wv: (E, N, H); wo: (N, H, E).

    Returns attn_output of shape (B, N, S, E), matching the torch module.
    """
    B, S, N, E = hidden_states.shape
    H = wq.shape[-1]
    assert wq.shape == (E, N, H) and wk.shape == (E, N, H) and wv.shape == (E, N, H)
    assert wo.shape == (N, H, E)

    # Heads per grid step: target >=256 lanes of per-step head work (v6e/v7x MXU
    # width); 128 already saturates v5e. Must divide N.
    if group_size is None:
        group_size = min(N, max(1, 256 // H))
    G = group_size
    assert N % G == 0, "group_size must divide num_heads"
    NG = N // G

    out_dtype = hidden_states.dtype
    cdt = jnp.bfloat16   # MXU operand dtype; accumulation stays f32 in-kernel.

    # Per-(head, seq) activation layout, bf16 (halves the HBM copy cost).
    hs = jnp.transpose(hidden_states, (0, 2, 1, 3)).astype(cdt)        # (B,N,S,E)

    # Fused per-head QKV weight, grouped: (NG, G, E, 3H), bf16.
    wqkv = jnp.concatenate(
        [jnp.transpose(wq, (1, 0, 2)),
         jnp.transpose(wk, (1, 0, 2)),
         jnp.transpose(wv, (1, 0, 2))], axis=-1)                       # (N, E, 3H)
    wqkv = wqkv.reshape(NG, G, E, 3 * H).astype(cdt)
    wo_g = wo.reshape(NG, G, H, E).astype(cdt)

    # RoPE tables (HF LlamaRotaryEmbedding, base 10000, offset 0), f32, with the
    # rotate_half sign folded into sin so the kernel only needs a lane roll.
    inv_freq = 1.0 / (10000.0 ** (jnp.arange(0, H, 2, dtype=jnp.float32) / H))
    t = jnp.arange(S, dtype=jnp.float32)
    freqs = jnp.einsum("i,j->ij", t, inv_freq)                         # (S, H//2)
    emb = jnp.concatenate([freqs, freqs], axis=-1)                     # (S, H)
    sign = jnp.concatenate([-jnp.ones((1, H // 2), jnp.float32),
                            jnp.ones((1, H // 2), jnp.float32)], axis=-1)
    rope_tab = jnp.stack([jnp.cos(emb), sign * jnp.sin(emb)], axis=0)  # (2, S, H)

    kernel = functools.partial(_attn_kernel, head_dim=H, scale=1.0 / math.sqrt(H))

    return pl.pallas_call(
        kernel,
        out_shape=jax.ShapeDtypeStruct((B, N, S, E), out_dtype),
        # Head-group outer, batch inner: weight blocks keep a constant block
        # index across the inner batch steps and are not re-fetched from HBM.
        grid=(NG, B),
        in_specs=[
            pl.BlockSpec((None, G, S, E), lambda n, b: (b, n, 0, 0)),       # hs
            pl.BlockSpec((None, G, E, 3 * H), lambda n, b: (n, 0, 0, 0)),   # wqkv
            pl.BlockSpec((None, G, H, E), lambda n, b: (n, 0, 0, 0)),       # wo
            pl.BlockSpec((2, S, H), lambda n, b: (0, 0, 0)),                # rope
        ],
        out_specs=pl.BlockSpec((None, G, S, E), lambda n, b: (b, n, 0, 0)),
        compiler_params=pltpu.CompilerParams(
            dimension_semantics=("parallel", "parallel")),
    )(hs, wqkv, wo_g, rope_tab)


def llama_attention_reference(hidden_states, wq, wk, wv, wo):
    """Plain-JAX (f32) mirror of the torch forward, for correctness checking."""
    B, S, N, E = hidden_states.shape
    H = wq.shape[-1]
    q = jnp.einsum("bsne,enh->bnsh", hidden_states, wq)
    k = jnp.einsum("bsne,enh->bnsh", hidden_states, wk)
    v = jnp.einsum("bsne,enh->bnsh", hidden_states, wv)

    inv_freq = 1.0 / (10000.0 ** (jnp.arange(0, H, 2, dtype=jnp.float32) / H))
    t = jnp.arange(S, dtype=jnp.float32)
    freqs = jnp.einsum("i,j->ij", t, inv_freq)
    emb = jnp.concatenate([freqs, freqs], axis=-1)
    cos = jnp.cos(emb)[None, None]
    sin = jnp.sin(emb)[None, None]

    def rotate_half(x):
        return jnp.concatenate([-x[..., H // 2:], x[..., :H // 2]], axis=-1)

    q = q * cos + rotate_half(q) * sin
    k = k * cos + rotate_half(k) * sin

    scores = jnp.einsum("bnsh,bnkh->bnsk", q, k) / math.sqrt(H)
    p = jax.nn.softmax(scores.astype(jnp.float32), axis=-1).astype(q.dtype)
    ao = jnp.einsum("bnsk,bnkh->bnsh", p, v)
    ao = jnp.transpose(ao, (0, 2, 1, 3))                     # (B, S, N, H)
    return jnp.einsum("bsnh,nhe->bnse", ao, wo)


if __name__ == "__main__":
    B, S, N, H = 2, 128, 4, 128
    E = N * H          # hidden_size = 512 (head_dim = 128, as in real Llama)

    key = jax.random.PRNGKey(0)
    k_hs, k_q, k_k, k_v, k_o = jax.random.split(key, 5)

    hidden_states = jax.random.normal(k_hs, (B, S, N, E), dtype=jnp.float32)

    # nn.Linear(hidden, hidden, bias=False) weights, deterministically init'd,
    # viewed exactly as the torch module does.
    wq = (0.03 * jax.random.normal(k_q, (E, E), jnp.float32)).reshape(E, N, H)
    wk = (0.03 * jax.random.normal(k_k, (E, E), jnp.float32)).reshape(E, N, H)
    wv = (0.03 * jax.random.normal(k_v, (E, E), jnp.float32)).reshape(E, N, H)
    wo = (0.03 * jax.random.normal(k_o, (E, E), jnp.float32)).reshape(N, H, E)

    out = jax.block_until_ready(
        llama_attention_pallas(hidden_states, wq, wk, wv, wo))

    ref = llama_attention_reference(hidden_states, wq, wk, wv, wo)
    assert out.shape == (B, N, S, E)
    # bf16 MXU operands (f32 accumulation) vs an all-f32 reference.
    assert jnp.allclose(out, ref, rtol=5e-2, atol=5e-2), "mismatch vs reference"

    print("KERNEL_OK")
</pallas_src>

<mosaic_0001>
module attributes {stable_mosaic.version = 11 : i64} {
  func.func @_attn_kernel(%arg0: i32, %arg1: i32, %arg2: memref<1x2x128x512xbf16, #tpu.memory_space<vmem>>, %arg3: memref<1x2x512x384xbf16, #tpu.memory_space<vmem>>, %arg4: memref<1x2x128x512xbf16, #tpu.memory_space<vmem>>, %arg5: memref<2x128x128xf32, #tpu.memory_space<vmem>>, %arg6: memref<1x2x128x512xf32, #tpu.memory_space<vmem>>) attributes {dimension_semantics = [#tpu.dimension_semantics<parallel>, #tpu.dimension_semantics<parallel>], iteration_bounds = array<i64: 2, 2>, scalar_prefetch = 0 : i64, scratch_operands = 0 : i64, tpu.core_type = #tpu.core_type<tc>, window_params = [{transform_indices = @transform_0, window_bounds = array<i64: 1, 2, 128, 512>}, {transform_indices = @transform_1, window_bounds = array<i64: 1, 2, 512, 384>}, {transform_indices = @transform_2, window_bounds = array<i64: 1, 2, 128, 512>}, {pipeline_mode = #tpu.pipeline_mode<synchronous>, transform_indices = @transform_3, window_bounds = array<i64: 2, 128, 128>}, {transform_indices = @transform_4, window_bounds = array<i64: 1, 2, 128, 512>}]} {
    %c0 = arith.constant 0 : index
    %c0_0 = arith.constant 0 : index
    %c0_1 = arith.constant 0 : index
    %c0_2 = arith.constant 0 : index
    %0 = vector.load %arg2[%c0, %c0_0, %c0_1, %c0_2] : memref<1x2x128x512xbf16, #tpu.memory_space<vmem>>, vector<1x2x128x512xbf16>
    %1 = vector.shape_cast %0 : vector<1x2x128x512xbf16> to vector<2x128x512xbf16>
    %c0_3 = arith.constant 0 : index
    %c0_4 = arith.constant 0 : index
    %c0_5 = arith.constant 0 : index
    %c0_6 = arith.constant 0 : index
    %2 = vector.load %arg3[%c0_3, %c0_4, %c0_5, %c0_6] : memref<1x2x512x384xbf16, #tpu.memory_space<vmem>>, vector<1x2x512x384xbf16>
    %3 = vector.shape_cast %2 : vector<1x2x512x384xbf16> to vector<2x512x384xbf16>
    "tpu.trace_start"() <{level = 10 : i32, message = "gse,gef->gsf"}> : () -> ()
    %cst = arith.constant dense<0.000000e+00> : vector<2x128x384xf32>
    %4 = tpu.matmul %1, %3, %cst {dimension_numbers = #tpu.dot_dimension_numbers<[2], [1], [1], [2], [0, 0, 0, 1, 1, 2], [0], [0]>} : vector<2x128x512xbf16>, vector<2x512x384xbf16>, vector<2x128x384xf32> -> vector<2x128x384xf32>
    "tpu.trace_stop"() : () -> ()
    %5 = vector.extract_strided_slice %4 {offsets = [0, 0, 0], sizes = [2, 128, 128], strides = [1, 1, 1]} : vector<2x128x384xf32> to vector<2x128x128xf32>
    %6 = vector.extract_strided_slice %4 {offsets = [0, 0, 128], sizes = [2, 128, 128], strides = [1, 1, 1]} : vector<2x128x384xf32> to vector<2x128x128xf32>
    %7 = vector.extract_strided_slice %4 {offsets = [0, 0, 256], sizes = [2, 128, 128], strides = [1, 1, 1]} : vector<2x128x384xf32> to vector<2x128x128xf32>
    %c0_7 = arith.constant 0 : index
    %c0_8 = arith.constant 0 : index
    %c0_9 = arith.constant 0 : index
    %8 = vector.load %arg5[%c0_7, %c0_8, %c0_9] : memref<2x128x128xf32, #tpu.memory_space<vmem>>, vector<1x128x128xf32>
    %9 = vector.shape_cast %8 : vector<1x128x128xf32> to vector<128x128xf32>
    %c1 = arith.constant 1 : index
    %c0_10 = arith.constant 0 : index
    %c0_11 = arith.constant 0 : index
    %10 = vector.load %arg5[%c1, %c0_10, %c0_11] : memref<2x128x128xf32, #tpu.memory_space<vmem>>, vector<1x128x128xf32>
    %11 = vector.shape_cast %10 : vector<1x128x128xf32> to vector<128x128xf32>
    %12 = vector.shape_cast %5 : vector<2x128x128xf32> to vector<256x128xf32>
    %c64_i32 = arith.constant 64 : i32
    %13 = tpu.dynamic_rotate %12 by %c64_i32 dim 1 : vector<256x128xf32>, i32 -> vector<256x128xf32>
    %14 = vector.shape_cast %13 : vector<256x128xf32> to vector<2x128x128xf32>
    %15 = vector.shape_cast %9 : vector<128x128xf32> to vector<1x128x128xf32>
    %16 = vector.broadcast %15 : vector<1x128x128xf32> to vector<2x128x128xf32>
    %17 = arith.mulf %5, %16 : vector<2x128x128xf32>
    %18 = vector.shape_cast %11 : vector<128x128xf32> to vector<1x128x128xf32>
    %19 = vector.broadcast %18 : vector<1x128x128xf32> to vector<2x128x128xf32>
    %20 = arith.mulf %14, %19 : vector<2x128x128xf32>
    %21 = arith.addf %17, %20 : vector<2x128x128xf32>
    %cst_12 = arith.constant 0.0883883461 : f32
    %22 = vector.broadcast %cst_12 : f32 to vector<2x128x128xf32>
    %23 = arith.mulf %21, %22 : vector<2x128x128xf32>
    %24 = arith.truncf %23 : vector<2x128x128xf32> to vector<2x128x128xbf16>
    %25 = vector.shape_cast %6 : vector<2x128x128xf32> to vector<256x128xf32>
    %c64_i32_13 = arith.constant 64 : i32
    %26 = tpu.dynamic_rotate %25 by %c64_i32_13 dim 1 : vector<256x128xf32>, i32 -> vector<256x128xf32>
    %27 = vector.shape_cast %26 : vector<256x128xf32> to vector<2x128x128xf32>
    %28 = vector.shape_cast %9 : vector<128x128xf32> to vector<1x128x128xf32>
    %29 = vector.broadcast %28 : vector<1x128x128xf32> to vector<2x128x128xf32>
    %30 = arith.mulf %6, %29 : vector<2x128x128xf32>
    %31 = vector.shape_cast %11 : vector<128x128xf32> to vector<1x128x128xf32>
    %32 = vector.broadcast %31 : vector<1x128x128xf32> to vector<2x128x128xf32>
    %33 = arith.mulf %27, %32 : vector<2x128x128xf32>
    %34 = arith.addf %30, %33 : vector<2x128x128xf32>
    %35 = arith.truncf %34 : vector<2x128x128xf32> to vector<2x128x128xbf16>
    %36 = arith.truncf %7 : vector<2x128x128xf32> to vector<2x128x128xbf16>
    "tpu.trace_start"() <{level = 10 : i32, message = "gqh,gkh->gqk"}> : () -> ()
    %cst_14 = arith.constant dense<0.000000e+00> : vector<2x128x128xf32>
    %37 = tpu.matmul %24, %35, %cst_14 {dimension_numbers = #tpu.dot_dimension_numbers<[2], [2], [1], [1], [0, 0, 0, 1, 1, 1], [0], [0]>} : vector<2x128x128xbf16>, vector<2x128x128xbf16>, vector<2x128x128xf32> -> vector<2x128x128xf32>
    "tpu.trace_stop"() : () -> ()
    %cst_15 = arith.constant dense<0xFF800000> : vector<2x128xf32>
    %38 = vector.multi_reduction <maximumf>, %37, %cst_15 [2] : vector<2x128x128xf32> to vector<2x128xf32>
    %39 = vector.shape_cast %38 : vector<2x128xf32> to vector<2x128x1xf32>
    %40 = vector.broadcast %39 : vector<2x128x1xf32> to vector<2x128x128xf32>
    %41 = arith.subf %37, %40 : vector<2x128x128xf32>
    %42 = math.exp %41 : vector<2x128x128xf32>
    %cst_16 = arith.constant dense<0.000000e+00> : vector<2x128xf32>
    %43 = vector.multi_reduction <add>, %42, %cst_16 [2] : vector<2x128x128xf32> to vector<2x128xf32>
    %44 = vector.shape_cast %43 : vector<2x128xf32> to vector<2x128x1xf32>
    %45 = tpu.reciprocal %44 {approx = true} : vector<2x128x1xf32> -> vector<2x128x1xf32>
    %46 = vector.broadcast %45 : vector<2x128x1xf32> to vector<2x128x128xf32>
    %47 = arith.mulf %42, %46 : vector<2x128x128xf32>
    %48 = arith.truncf %47 : vector<2x128x128xf32> to vector<2x128x128xbf16>
    "tpu.trace_start"() <{level = 10 : i32, message = "gqk,gkh->gqh"}> : () -> ()
    %cst_17 = arith.constant dense<0.000000e+00> : vector<2x128x128xf32>
    %49 = tpu.matmul %48, %36, %cst_17 {dimension_numbers = #tpu.dot_dimension_numbers<[2], [1], [1], [2], [0, 0, 0, 1, 1, 2], [0], [0]>} : vector<2x128x128xbf16>, vector<2x128x128xbf16>, vector<2x128x128xf32> -> vector<2x128x128xf32>
    "tpu.trace_stop"() : () -> ()
    %50 = arith.truncf %49 : vector<2x128x128xf32> to vector<2x128x128xbf16>
    %c0_18 = arith.constant 0 : index
    %c0_19 = arith.constant 0 : index
    %c0_20 = arith.constant 0 : index
    %c0_21 = arith.constant 0 : index
    %51 = vector.load %arg4[%c0_18, %c0_19, %c0_20, %c0_21] : memref<1x2x128x512xbf16, #tpu.memory_space<vmem>>, vector<1x2x128x512xbf16>
    %52 = vector.shape_cast %51 : vector<1x2x128x512xbf16> to vector<2x128x512xbf16>
    "tpu.trace_start"() <{level = 10 : i32, message = "gsh,ghe->gse"}> : () -> ()
    %cst_22 = arith.constant dense<0.000000e+00> : vector<2x128x512xf32>
    %53 = tpu.matmul %50, %52, %cst_22 {dimension_numbers = #tpu.dot_dimension_numbers<[2], [1], [1], [2], [0, 0, 0, 1, 1, 2], [0], [0]>} : vector<2x128x128xbf16>, vector<2x128x512xbf16>, vector<2x128x512xf32> -> vector<2x128x512xf32>
    "tpu.trace_stop"() : () -> ()
    %c0_23 = arith.constant 0 : index
    %c0_24 = arith.constant 0 : index
    %c0_25 = arith.constant 0 : index
    %c0_26 = arith.constant 0 : index
    %54 = vector.load %arg6[%c0_23, %c0_24, %c0_25, %c0_26] : memref<1x2x128x512xf32, #tpu.memory_space<vmem>>, vector<1x2x128x512xf32>
    %55 = vector.shape_cast %54 : vector<1x2x128x512xf32> to vector<2x128x512xf32>
    %56 = vector.shape_cast %53 : vector<2x128x512xf32> to vector<1x2x128x512xf32>
    tpu.vector_store %arg6[%c0_23, %c0_24, %c0_25, %c0_26], %56 {strides = array<i32>} : memref<1x2x128x512xf32, #tpu.memory_space<vmem>>, vector<1x2x128x512xf32>,
    return
  }
  func.func @transform_0(%arg0: i32, %arg1: i32) -> (i32, i32, i32, i32) {
    %c0_i32 = arith.constant 0 : i32
    %c0_i32_0 = arith.constant 0 : i32
    %c0_i32_1 = arith.constant 0 : i32
    return %arg1, %arg0, %c0_i32, %c0_i32_0 : i32, i32, i32, i32
  }
  func.func @transform_1(%arg0: i32, %arg1: i32) -> (i32, i32, i32, i32) {
    %c0_i32 = arith.constant 0 : i32
    %c0_i32_0 = arith.constant 0 : i32
    %c0_i32_1 = arith.constant 0 : i32
    %c0_i32_2 = arith.constant 0 : i32
    return %arg0, %c0_i32, %c0_i32_0, %c0_i32_1 : i32, i32, i32, i32
  }
  func.func @transform_2(%arg0: i32, %arg1: i32) -> (i32, i32, i32, i32) {
    %c0_i32 = arith.constant 0 : i32
    %c0_i32_0 = arith.constant 0 : i32
    %c0_i32_1 = arith.constant 0 : i32
    %c0_i32_2 = arith.constant 0 : i32
    return %arg0, %c0_i32, %c0_i32_0, %c0_i32_1 : i32, i32, i32, i32
  }
  func.func @transform_3(%arg0: i32, %arg1: i32) -> (i32, i32, i32) {
    %c0_i32 = arith.constant 0 : i32
    %c0_i32_0 = arith.constant 0 : i32
    %c0_i32_1 = arith.constant 0 : i32
    %c0_i32_2 = arith.constant 0 : i32
    return %c0_i32, %c0_i32_0, %c0_i32_1 : i32, i32, i32
  }
  func.func @transform_4(%arg0: i32, %arg1: i32) -> (i32, i32, i32, i32) {
    %c0_i32 = arith.constant 0 : i32
    %c0_i32_0 = arith.constant 0 : i32
    %c0_i32_1 = arith.constant 0 : i32
    return %arg1, %arg0, %c0_i32, %c0_i32_0 : i32, i32, i32, i32
  }
}

</mosaic_0001>

<bundles_post_ra>
// kernel: tpu_custom_call.1
= control target key start
LH: loop header
LB: loop body
LE: loop exit
PB: predicated region body
PF: predicated region fallthrough
CT: control target
= control target key end

     0   :  { %s8930_s0 = inlined_call_operand.hbm [shape: bf16[2,4,128,512], index: 0, kind: input, shape index: {}]   ;;  %s8931_s1 = inlined_call_operand.hbm [shape: bf16[2,2,512,384], index: 1, kind: input, shape index: {}]   ;;  %s8932_s2 = inlined_call_operand.hbm [shape: bf16[2,2,128,512], index: 2, kind: input, shape index: {}]   ;;  %s8933_s3 = inlined_call_operand.hbm [shape: f32[2,128,128], index: 3, kind: input, shape index: {}]   ;;  %s8934_s4 = inlined_call_operand.hbm [shape: f32[2,4,128,512], index: 4, kind: output, shape index: {}]  }
   0x1   :  { %9030 = sst [smem:[#allocation83_spill]] %s8931_s1 }
   0x2   :  { %9031 = sst [smem:[#allocation84_spill]] %s8933_s3 }
   0x3   :  { %9032 = sst [smem:[#allocation85_spill]] %s8934_s4 }
   0x4   :  { %9 = vsyncpa [#allocation3], 0 }
   0x5   :  { %11 = vsyncpa [#allocation3 + $0x1], 0 }
   0x6   :  { %12 = vsyncpa [#allocation6], 0 }
   0x7   :  { %14 = vsyncpa [#allocation6 + $0x1], 0 }
   0x8   :  { %15 = vsyncpa [#allocation9], 0 }
   0x9   :  { %16 = vsyncpa [#allocation4], 0 }
   0xa   :  { %18 = vsyncpa [#allocation4 + $0x1], 0  ;;  %s6901_s15 = smov 0   ;;  %s6903_s16 = smov 0  }
   0xb   :  { %s6905_s17 = smov 0   ;;  %s6907_s18 = smov 0  }
   0xc   :  { %s6909_s19 = smov 0   ;;  %s6911_s20 = smov 0  }
   0xd   :  { %s6913_s21 = smov 0   ;;  %s6915_s22 = smov 0  }
   0xe   :  { %s6917_s23 = smov 0   ;;  %s6919_s24 = smov 0  }
   0xf   :  { %s6921_s25 = smov 0  }
  0x10 LB: > { %9033 = sst [smem:[#allocation15_spill]] %s6823_s16  ;;  %p8937_p0 = scmp.eq.s32.totalorder %s6859_s25, 0  ;;  %s6859_s25 = sphi %s6921_s25, %s24_s25   ;;  %s6855_s24 = sphi %s6919_s24, %s9261_s24   ;;  %s6851_s23 = sphi %s6917_s23, %s9260_s23   ;;  %s6847_s22 = sphi %s6915_s22, %s9259_s22   ;;  %s6843_s21 = sphi %s6913_s21, %s9258_s21   ;;  %s6839_s20 = sphi %s6911_s20, %s9257_s20   ;;  %s6835_s19 = sphi %s6909_s19, %s9256_s19   ;;  %s6831_s18 = sphi %s6907_s18, %s9252_s18   ;;  %s6827_s17 = sphi %s6905_s17, %s9255_s17   ;;  %s6823_s16 = sphi %s6903_s16, %s9254_s16   ;;  %s6819_s15 = sphi %s6901_s15, %s9251_s15  }
  0x11   : > { %9034 = sst [smem:[#allocation16_spill]] %s6831_s18  ;;  %p78_p1 = scmp.ne.s32.totalorder %s6827_s17, %s6823_s16 }
  0x12   : > { %9035 = sst [smem:[#allocation17_spill]] %s6835_s19  ;;  %p8936_p2 = scmp.lt.s32.totalorder %s6859_s25, 4 }
  0x13   : > { %9036 = sst [smem:[#allocation18_spill]] %s6843_s21  ;;  %s220_s27 = sand.u32 1, %s6859_s25  }
  0x14   : > { %9037 = sst [smem:[#allocation19_spill]] %s6847_s22  ;;  %p80_p3 = por %p78_p1, %p8937_p0 }
  0x15   : > { %s222_s28 = sand.u32 1, %s6827_s17   ;;  %s5897_s29 = smul.u32 24576, %s6855_s24 }
  0x16   : > { %s5896_s30 = smul.u32 1536, %s222_s28  ;;  %p6968_p4 = pnand %p8936_p2, %p80_p3 }
  0x17   : > { %s9039_s1 = sld [smem:[#allocation83_spill]]  ;;  %s6975_s11 = sshll.u32 %s222_s28, 9 }
  0x18   : > { %s224_s9 = scalar_lea.vmem [#allocation5], %s5896_s30  ;;  %s6977_s12 = scalar_lea.sflag [#allocation6], %s220_s27 }
  0x19   : > { %s231_s10 = sshll.u32 %s224_s9, 4  ;;  %p8935_p5 = pneg %p6968_p4  ;;  %s232_s10 = int_to_ptr.vmem [resolvable:$true] %s231_s10 }
  0x1a   : > { %s6634_s13 = scalar_lea.vmem %s232_s10, 24576  ;;  %s6861_s14 = smov [#allocation5]  }
  0x1b   : > { %p6635_p6 = scmp.ne.s32.totalorder %s232_s10, %s6634_s13  ;;  %s6639_s6 = sshll.u32 %s6861_s14, 4  ;;  %s6640_s6 = int_to_ptr.vmem [resolvable:$false] %s6639_s6 }
  0x1c   : > { %s6641_s7 = scalar_lea.vmem %s6640_s6, 49152  ;;  %p6642_p9 = scmp.lt.s32.totalorder %s232_s10, %s6640_s6 }
  0x1d   : > { %s230_s8 = scalar_lea.hbm %s9039_s1, %s5897_s29  ;;  %p6637_p7 = pnand %p6635_p6, %p8935_p5 }
  0x1e   : > { %p6643_p10 = scmp.lt.s32.totalorder %s6641_s7, %s6634_s13 }
  0x1f   : > { %p6638_p8 = pneg %p6637_p7 }
  0x20   : > { %p6644_p11 = por %p6643_p10, %p6642_p9 }
  0x22   : > { %p6645_p12 = pnand %p6644_p11, %p6638_p8 }
  0x24   : > { %6648 = shalt.err (!%p6645_p12)
}
  0x25   : > { %s6862_s28 = smov 192   ;;  %s6863_s27 = smov 12  }
  0x26   : > { %5921 = dma.hbm_to_vmem [thread:$0]  (!%p6968_p4), %s230_s8, 24576, %s232_s10, %s6977_s12, %s6862_s28, %s6862_s28, %s6863_s27  }
  0x27   : > { %s6988_s29 = sadd.s32 4294967295, %s6859_s25   ;;  %s5100_s30 = sadd.s32 4294967294, %s6859_s25  }
  0x28   : > { %9040 = sst [smem:[#allocation20_spill]] %s6988_s29  ;;  %p58_p13 = scmp.ne.s32.totalorder %s6835_s19, %s6831_s18 }
  0x29   : > { %p8953_p1 = scmp.eq.s32.totalorder %s6988_s29, 0  ;;  %p84_p3 = scmp.ne.s32.totalorder %s6823_s16, %s6819_s15 }
  0x2a   : > { %p163_p7 = scmp.eq.s32.totalorder %s5100_s30, 3  ;;  %p5101_p11 = scmp.ge.s32.totalorder %s6859_s25, 1 }
  0x2b   : > { %p6999_p8 = por %p8953_p1, %p58_p13  ;;  %p7005_p9 = por %p84_p3, %p8953_p1 }
  0x2c   : > { %p7009_p10 = por %p163_p7, %p58_p13  ;;  %p170_p12 = scmp.lt.s32.totalorder %s6859_s25, 5 }
  0x2d   : > { %s9041_s9 = scalar_select %p6999_p8, 1, 0 }
  0x2e   : > { %s9043_s8 = scalar_select %p7005_p9, 1, 0 }
  0x2f   : > { %9042 = sst [smem:[#allocation21_spill]] %s9041_s9  ;;  %p7015_p5 = pnand %p5101_p11, %p170_p12 }
  0x30   : > { %9044 = sst [smem:[#allocation22_spill]] %s9043_s8  ;;  %s6864_s13 = smov [#allocation8]  }
  0x31   : > { %s9045_s10 = scalar_select %p7009_p10, 1, 0 }
  0x32   : > { %s182_s14 = sshll.u32 %s6864_s13, 4  ;;  %p5911_p2 = pneg %p7015_p5  ;;  %s183_s14 = int_to_ptr.vmem [resolvable:$true] %s182_s14 }
  0x33   : > { %9046 = sst [smem:[#allocation23_spill]] %s9045_s10  ;;  %s33_s7 = sadd.s32 1, %s6851_s23 }
  0x34   : > { %p7023_p3 = pnand %p5911_p2, %p8953_p1  ;;  %s36_s28 = sadd.s32 1, %s6855_s24 }
  0x35   : > { %p7029_p13 = scmp.ge.s32.totalorder %s33_s7, 2  ;;  %s6660_s30 = scalar_lea.vmem %s183_s14, 4096 }
  0x36   : > { %p6651_p7 = pneg %p7023_p3  ;;  %p6661_p11 = scmp.ne.s32.totalorder %s183_s14, %s6660_s30 }
  0x37   : > { %p6668_p0 = scmp.lt.s32.totalorder %s183_s14, %s183_s14  ;;  %p6669_p10 = scmp.lt.s32.totalorder %s6660_s30, %s6660_s30 }
  0x38   : > { %p6663_p12 = pnand %p6661_p11, %p6651_p7 }
  0x39   : > { %p6670_p9 = por %p6669_p10, %p6668_p0 }
  0x3a   : > { %p6664_p6 = pneg %p6663_p12 }
  0x3c   : > { %p6671_p2 = pnand %p6670_p9, %p6664_p6 }
  0x3e   : > { %6674 = shalt.err (!%p6671_p2)
}
  0x3f   : > { %s6865_s13 = smov 128   ;;  %s6866_s26 = smov 8  }
  0x40   : > { %s9050_s3 = sld [smem:[#allocation84_spill]]  ;;  %s9263_s7 = smov (%p7029_p13, %s33_s7), 0 }
  0x41   : > { %9051 = sst [smem:[#allocation24_spill]] %s9263_s7  ;;  %s9265_s28 = smov (!%p7029_p13, %s36_s28), %s6855_s24 }
  0x42   : > { %s40_s10 = ssub.s32 %s6851_s23, %s9263_s7  ;;  %s45_s18 = sadd.s32 1, %s6839_s20 }
  0x43   : > { %p38_p0 = scmp.ge.s32.totalorder %s9265_s28, 2  ;;  %p52_p6 = scmp.ne.s32.totalorder %s6839_s20, %s6835_s19 }
  0x44   : > { %s196_s4 = sand.u32 1, %s6839_s20   ;;  %s5445_s6 = sshll.u32 %s6855_s24, 7 }
  0x45   : > { %s9267_s28 = smov (%p38_p0, %s9265_s28), 0  ;;  %p9052_p9 = scmp.eq.s32.totalorder %s6859_s25, 0 }
  0x46   : > { %5914 = dma.hbm_to_vmem [thread:$0]  (!%p7023_p3), %s9050_s3, 4096, %s183_s14, [#allocation9], %s6865_s13, %s6865_s13, %s6866_s26  }
  0x47   : > { %p7058_p10 = por %p9052_p9, %p52_p6  ;;  %p9054_p3 = scmp.eq.s32.totalorder %s6988_s29, 3 }
  0x48   : > { %s41_s14 = ssub.s32 %s6855_s24, %s9267_s28  ;;  %s5104_s13 = sshll.u32 %s196_s4, 9 }
  0x49   : > { %p7064_p13 = por %p9054_p3, %p52_p6  ;;  %s42_s27 = sor.u32 %s41_s14, %s40_s10 }
  0x4a   : > { %p69_p7 = scmp.eq.s32.totalorder %s41_s14, 0  ;;  %p43_p11 = scmp.eq.s32.totalorder %s42_s27, 0 }
  0x4b   : > { %s9055_s26 = scalar_select %p7064_p13, 1, 0 }
  0x4c   : > { %s9057_s30 = sadd.s32 1, %s6827_s17  ;;  %s5107_s21 = sshll.u32 %s6851_s23, 8 }
  0x4d   : > { %9056 = sst [smem:[#allocation25_spill]] %s9055_s26  ;;  %s207_s22 = sadd.s32 %s5445_s6, %s5107_s21 }
  0x4e   : > { %s7073_s3 = scalar_select %p69_p7, %s6827_s17, %s9057_s30  }
  0x4f   : > { %s7076_s7 = scalar_select %p43_p11, %s6839_s20, %s45_s18  }
  0x50   : > { %s200_s8 = scalar_lea.vmem [#allocation2], %s5104_s13  ;;  %s5108_s29 = sshll.u32 %s207_s22, 6 }
  0x51   : > { %s210_s16 = sshll.u32 %s200_s8, 4  ;;  %s209_s26 = scalar_lea.hbm %s8930_s0, %s5108_s29  ;;  %s211_s16 = int_to_ptr.vmem [resolvable:$true] %s210_s16 }
  0x52   : > { %p9058_p12 = scmp.lt.s32.totalorder %s6859_s25, 4  ;;  %s5446_s14 = sshll.u32 %s6855_s24, 13 }
  0x53   : > { %s197_s18 = scalar_lea.sflag [#allocation3], %s196_s4  ;;  %s6688_s21 = scalar_lea.vmem %s211_s16, 8192 }
  0x54   : > { %p7086_p2 = pnand %p9058_p12, %p7058_p10  ;;  %p6689_p6 = scmp.ne.s32.totalorder %s211_s16, %s6688_s21 }
  0x55   : > { %s6867_s22 = smov [#allocation2]  }
  0x56   : > { %p6677_p0 = pneg %p7086_p2  ;;  %s6693_s8 = sshll.u32 %s6867_s22, 4  ;;  %s6694_s8 = int_to_ptr.vmem [resolvable:$false] %s6693_s8 }
  0x57   : > { %s6695_s19 = scalar_lea.vmem %s6694_s8, 16384  ;;  %p6696_p7 = scmp.lt.s32.totalorder %s211_s16, %s6694_s8 }
  0x58   : > { %p6691_p9 = pnand %p6689_p6, %p6677_p0  ;;  %p6697_p11 = scmp.lt.s32.totalorder %s6695_s19, %s6688_s21 }
  0x5a   : > { %p6692_p3 = pneg %p6691_p9  ;;  %p6698_p1 = por %p6697_p11, %p6696_p7 }
  0x5c   : > { %p6699_p10 = pnand %p6698_p1, %p6692_p3 }
  0x5e   : > { %6702 = shalt.err (!%p6699_p10)
}
  0x5f   : > { %s6868_s29 = smov 256   ;;  %s6869_s4 = smov 16  }
  0x60   : > { %5918 = dma.hbm_to_vmem [thread:$0]  (!%p7086_p2), %s209_s26, 8192, %s211_s16, %s197_s18, %s6868_s29, %s6868_s29, %s6869_s4  }
  0x61   : > { %s251_s1 = scalar_lea.hbm %s8932_s2, %s5446_s14  ;;  %s245_s27 = scalar_lea.vmem [#allocation7], %s6975_s11 }
  0x62   : > { %s252_s13 = sshll.u32 %s245_s27, 4  ;;  %p9060_p0 = pneg %p6968_p4  ;;  %s253_s13 = int_to_ptr.vmem [resolvable:$true] %s252_s13 }
  0x63   : > { %s6716_s30 = scalar_lea.vmem %s253_s13, 8192  ;;  %s6870_s21 = smov [#allocation7]  }
  0x64   : > { %p6717_p12 = scmp.ne.s32.totalorder %s253_s13, %s6716_s30  ;;  %s6721_s22 = sshll.u32 %s6870_s21, 4  ;;  %s6722_s22 = int_to_ptr.vmem [resolvable:$false] %s6721_s22 }
  0x65   : > { %s6723_s8 = scalar_lea.vmem %s6722_s22, 16384  ;;  %p6724_p9 = scmp.lt.s32.totalorder %s253_s13, %s6722_s22 }
  0x66   : > { %p6719_p1 = pnand %p6717_p12, %p9060_p0  ;;  %p6725_p3 = scmp.lt.s32.totalorder %s6723_s8, %s6716_s30 }
  0x68   : > { %p6720_p6 = pneg %p6719_p1  ;;  %p6726_p2 = por %p6725_p3, %p6724_p9 }
  0x6a   : > { %p6727_p7 = pnand %p6726_p2, %p6720_p6 }
  0x6c   : > { %6730 = shalt.err (!%p6727_p7)
}
  0x6d   : > { %5924 = dma.hbm_to_vmem [thread:$0]  (!%p6968_p4), %s251_s1, 8192, %s253_s13, %s6977_s12, %s6868_s29, %s6868_s29, %s6869_s4  }
  0x6e   : > { %264 = sbr.rel (%p7015_p5) target bundleno = 1828 (0x724), region = 36 }
  0x73   : > { %s9061_s16 = sld [smem:[#allocation17_spill]] }
  0x79   : > { %s7108_s26 = sand.u32 1, %s9061_s16  }
  0x7a   : > { %s5114_s10 = sshll.u32 %s7108_s26, 9  ;;  %s267_s14 = scalar_lea.sflag [#allocation3], %s7108_s26 }
  0x7b   : > { %s7112_s18 = scalar_lea.vmem [#allocation2], %s5114_s10 }
  0x7c   : > { %6802 = dma.done.wait (%p6999_p8), %s267_s14, 8192  }
  0x7d   : > { %6804 = vsyncadd (%p6999_p8), %s267_s14, 4294959104  ;;  %s9063_s5 = sld [smem:[#allocation20_spill]] }
  0x7e   : > { %s9064_s12 = sld [smem:[#allocation15_spill]] }
  0x7f   : > { %s9065_s19 = sld [smem:[#allocation22_spill]] }
  0x83   : > { %s275_s15 = sand.u32 1, %s9063_s5  }
  0x84   : > { %s277_s29 = sand.u32 1, %s9064_s12   ;;  %s276_s9 = scalar_lea.sflag [#allocation6], %s275_s15 }
  0x85   : > { %s5898_s4 = smul.u32 1536, %s277_s29  ;;  %p9066_p4 = scmp.ne.s32.totalorder %s9065_s19, 0 }
  0x87   : > { %s7120_s6 = scalar_lea.vmem [#allocation5], %s5898_s4 }
  0x88   : > { %6806 = dma.done.wait (%p9066_p4), %s276_s9, 32768  }
  0x89   : > { %6808 = vsyncadd (%p9066_p4), %s276_s9, 4294934528  ;;  %s5115_s1 = sshll.u32 %s277_s29, 9  ;;  %p9067_p5 = scmp.eq.s32.totalorder %s9063_s5, 0 }
  0x8a   : > { %s7126_s27 = scalar_lea.vmem [#allocation7], %s5115_s1 }
  0x8b   : > { %6810 = dma.done.wait (%p9067_p5), [#allocation9], 4096   ;;  %p9068_p8 = pmov %p9067_p5 }
  0x8c   : > { %v6032_v0 = vld [vmem:[%s7120_s6 + $0xac] ss:$12 sps:$4 sm:$0xff]   ;;  %v6036_v2 = vld [vmem:[%s7120_s6 + $0xa8] ss:$12 sps:$4 sm:$0xff]   ;;  %v6042_v6 = vld [vmem:[%s7120_s6 + $0x90] ss:$12 sps:$4 sm:$0xff]  }
  0x8d   : > { %6812 = vsyncadd (%p9068_p8), [#allocation9], 4294963200  ;;  %v6034_v1 = vld [vmem:[%s7120_s6 + $0x22c] ss:$12 sps:$4 sm:$0xff]   ;;  %1322 = vmatprep.subr.bf16.mxu0 %v6032_v0  ;;  %v6037_v3 = vld [vmem:[%s7120_s6 + $0x228] ss:$12 sps:$4 sm:$0xff]  }
  0x8e   : > { %1435 = vmatprep.subr.bf16.mxu1 %v6034_v1  ;;  %v6038_v4 = vld [vmem:[%s7120_s6 + $0x94] ss:$12 sps:$4 sm:$0xff]   ;;  %1323 = vmatpush1.bf16.msra.mxu0 %v6036_v2  ;;  %v6043_v7 = vld [vmem:[%s7120_s6 + $0x210] ss:$12 sps:$4 sm:$0xff]   ;;  %v6048_v10 = vld [vmem:[%s7120_s6 + $0x78] ss:$12 sps:$4 sm:$0xff]  }
  0x8f   : > { %1436 = vmatpush1.bf16.msra.mxu1 %v6037_v3  ;;  %v6040_v5 = vld [vmem:[%s7120_s6 + $0x214] ss:$12 sps:$4 sm:$0xff]   ;;  %1324 = vmatprep.subr.bf16.mxu0 %v6038_v4  ;;  %v6044_v8 = vld [vmem:[%s7120_s6 + $0x7c] ss:$12 sps:$4 sm:$0xff]   ;;  %v6049_v11 = vld [vmem:[%s7120_s6 + $0x1f8] ss:$12 sps:$4 sm:$0xff]  }
  0x90   : > { %1437 = vmatprep.subr.bf16.mxu1 %v6040_v5  ;;  %v6046_v9 = vld [vmem:[%s7120_s6 + $0x1fc] ss:$12 sps:$4 sm:$0xff]   ;;  %v6050_v12 = vld [vmem:[%s7120_s6 + $0x64] ss:$12 sps:$4 sm:$0xff]   ;;  %v6054_v14 = vld [vmem:[%s7120_s6 + $0x60] ss:$12 sps:$4 sm:$0xff]  }
  0x91   : > { %v6052_v13 = vld [vmem:[%s7120_s6 + $0x1e4] ss:$12 sps:$4 sm:$0xff]   ;;  %v6055_v15 = vld [vmem:[%s7120_s6 + $0x1e0] ss:$12 sps:$4 sm:$0xff]   ;;  %v6060_v18 = vld [vmem:[%s7120_s6 + $0x48] ss:$12 sps:$4 sm:$0xff]  }
  0x92   : > { %1325 = vmatpush1.bf16.msra.mxu0 %v6042_v6  ;;  %v6056_v16 = vld [vmem:[%s7120_s6 + $0x4c] ss:$12 sps:$4 sm:$0xff]   ;;  %v6061_v19 = vld [vmem:[%s7120_s6 + $0x1c8] ss:$12 sps:$4 sm:$0xff]   ;;  %v6066_v22 = vld [vmem:[%s7120_s6 + $0x30] ss:$12 sps:$4 sm:$0xff]  }
  0x93   : > { %1438 = vmatpush1.bf16.msra.mxu1 %v6043_v7  ;;  %1326 = vmatprep.subr.bf16.mxu0 %v6044_v8  ;;  %v6058_v17 = vld [vmem:[%s7120_s6 + $0x1cc] ss:$12 sps:$4 sm:$0xff]   ;;  %v6062_v20 = vld [vmem:[%s7120_s6 + $0x34] ss:$12 sps:$4 sm:$0xff]   ;;  %v6067_v23 = vld [vmem:[%s7120_s6 + $0x1b0] ss:$12 sps:$4 sm:$0xff]  }
  0x94   : > { %1439 = vmatprep.subr.bf16.mxu1 %v6046_v9  ;;  %v6064_v21 = vld [vmem:[%s7120_s6 + $0x1b4] ss:$12 sps:$4 sm:$0xff]   ;;  %v6068_v24 = vld [vmem:[%s7120_s6 + $0x1c] ss:$12 sps:$4 sm:$0xff]   ;;  %v6072_v26 = vld [vmem:[%s7120_s6 + $0x18] ss:$12 sps:$4 sm:$0xff]  }
  0x95   : > { %v6070_v25 = vld [vmem:[%s7120_s6 + $0x19c] ss:$12 sps:$4 sm:$0xff]   ;;  %v6073_v27 = vld [vmem:[%s7120_s6 + $0x198] ss:$12 sps:$4 sm:$0xff]   ;;  %v6078_v30 = vld [vmem:[%s7120_s6] ss:$12 sps:$4 sm:$0xff]  }
  0x96   : > { %1327 = vmatpush1.bf16.msra.mxu0 %v6048_v10  ;;  %v6074_v28 = vld [vmem:[%s7120_s6 + $0x4] ss:$12 sps:$4 sm:$0xff]   ;;  %v6079_v31 = vld [vmem:[%s7120_s6 + $0x180] ss:$12 sps:$4 sm:$0xff]   ;;  %v6084_v34 = vld [vmem:[%s7120_s6 + $0x168] ss:$12 sps:$4 sm:$0xff]  }
  0x97   : > { %1440 = vmatpush1.bf16.msra.mxu1 %v6049_v11  ;;  %1328 = vmatprep.subr.bf16.mxu0 %v6050_v12  ;;  %v6076_v29 = vld [vmem:[%s7120_s6 + $0x184] ss:$12 sps:$4 sm:$0xff]   ;;  %v6080_v32 = vld [vmem:[%s7120_s6 + $0x16c] ss:$12 sps:$4 sm:$0xff]   ;;  %v6085_v35 = vld [vmem:[%s7120_s6 + $0x2e8] ss:$12 sps:$4 sm:$0xff]  }
  0x98   : > { %1441 = vmatprep.subr.bf16.mxu1 %v6052_v13  ;;  %v6082_v33 = vld [vmem:[%s7120_s6 + $0x2ec] ss:$12 sps:$4 sm:$0xff]   ;;  %v6086_v36 = vld [vmem:[%s7120_s6 + $0x154] ss:$12 sps:$4 sm:$0xff]   ;;  %v6090_v38 = vld [vmem:[%s7120_s6 + $0x150] ss:$12 sps:$4 sm:$0xff]  }
  0x99   : > { %v6088_v37 = vld [vmem:[%s7120_s6 + $0x2d4] ss:$12 sps:$4 sm:$0xff]   ;;  %v6091_v39 = vld [vmem:[%s7120_s6 + $0x2d0] ss:$12 sps:$4 sm:$0xff]   ;;  %v6096_v42 = vld [vmem:[%s7120_s6 + $0x138] ss:$12 sps:$4 sm:$0xff]  }
  0x9a   : > { %1329 = vmatpush1.bf16.msra.mxu0 %v6054_v14  ;;  %v6092_v40 = vld [vmem:[%s7120_s6 + $0x13c] ss:$12 sps:$4 sm:$0xff]   ;;  %v6097_v43 = vld [vmem:[%s7120_s6 + $0x2b8] ss:$12 sps:$4 sm:$0xff]   ;;  %v6102_v46 = vld [vmem:[%s7120_s6 + $0x120] ss:$12 sps:$4 sm:$0xff]  }
  0x9b   : > { %1442 = vmatpush1.bf16.msra.mxu1 %v6055_v15  ;;  %1330 = vmatprep.subr.bf16.mxu0 %v6056_v16  ;;  %v6094_v41 = vld [vmem:[%s7120_s6 + $0x2bc] ss:$12 sps:$4 sm:$0xff]   ;;  %v6098_v44 = vld [vmem:[%s7120_s6 + $0x124] ss:$12 sps:$4 sm:$0xff]   ;;  %v6103_v47 = vld [vmem:[%s7120_s6 + $0x2a0] ss:$12 sps:$4 sm:$0xff]  }
  0x9c   : > { %1443 = vmatprep.subr.bf16.mxu1 %v6058_v17  ;;  %v6100_v45 = vld [vmem:[%s7120_s6 + $0x2a4] ss:$12 sps:$4 sm:$0xff]   ;;  %v6104_v48 = vld [vmem:[%s7120_s6 + $0x10c] ss:$12 sps:$4 sm:$0xff]   ;;  %v6108_v52 = vld [vmem:[%s7120_s6 + $0x108] ss:$12 sps:$4 sm:$0xff]  }
  0x9d   : > { %v7182_v49 = vld [vmem:[%s7112_s18 + $0x4] ss:$16 sps:$4 sm:$0xff]   ;;  %v6106_v50 = vld [vmem:[%s7120_s6 + $0x28c] ss:$12 sps:$4 sm:$0xff]   ;;  %v6114_v56 = vld [vmem:[%s7120_s6 + $0xf0] ss:$12 sps:$4 sm:$0xff]  }
  0x9e   : > { %1331 = vmatpush1.bf16.msra.mxu0 %v6060_v18  ;;  %v7186_v51 = vld [vmem:[%s7112_s18 + $0xc] ss:$16 sps:$4 sm:$0xff]   ;;  %1354 = vmatprep.mubr.bf16.mxu0 %v7182_v49  ;;  %v6109_v53 = vld [vmem:[%s7120_s6 + $0x288] ss:$12 sps:$4 sm:$0xff]   ;;  %v6120_v60 = vld [vmem:[%s7120_s6 + $0xd8] ss:$12 sps:$4 sm:$0xff]  }
  0x9f   : > { %1444 = vmatpush1.bf16.msra.mxu1 %v6061_v19  ;;  %1332 = vmatprep.subr.bf16.mxu0 %v6062_v20  ;;  %v6110_v54 = vld [vmem:[%s7120_s6 + $0xf4] ss:$12 sps:$4 sm:$0xff]   ;;  %v6115_v57 = vld [vmem:[%s7120_s6 + $0x270] ss:$12 sps:$4 sm:$0xff]   ;;  %v6121_v61 = vld [vmem:[%s7120_s6 + $0x258] ss:$12 sps:$4 sm:$0xff]  }
  0xa0   : > { %1445 = vmatprep.subr.bf16.mxu1 %v6064_v21  ;;  %1467 = vmatprep.mubr.bf16.mxu1 %v7186_v51  ;;  %v6112_v55 = vld [vmem:[%s7120_s6 + $0x274] ss:$12 sps:$4 sm:$0xff]   ;;  %v6116_v58 = vld [vmem:[%s7120_s6 + $0xdc] ss:$12 sps:$4 sm:$0xff]   ;;  %v6122_v62 = vld [vmem:[%s7120_s6 + $0xc4] ss:$12 sps:$4 sm:$0xff]  }
  0xa1   : > { %v6118_v59 = vld [vmem:[%s7120_s6 + $0x25c] ss:$12 sps:$4 sm:$0xff]   ;;  %v6124_v63 = vld [vmem:[%s7120_s6 + $0x244] ss:$12 sps:$4 sm:$0xff]   ;;  %v6126_v0 = vld [vmem:[%s7120_s6 + $0xc0] ss:$12 sps:$4 sm:$0xff]  }
  0xa2   : > { %1333 = vmatpush1.bf16.msra.mxu0 %v6066_v22  ;;  %v6127_v1 = vld [vmem:[%s7120_s6 + $0x240] ss:$12 sps:$4 sm:$0xff]   ;;  %v6134_v2 = vld [vmem:[%s7120_s6 + $0x170] ss:$12 sps:$4 sm:$0xff]   ;;  %v7209_v4 = vld [vmem:[%s7112_s18 + $0x8] ss:$16 sps:$4 sm:$0xff]  }
  0xa3   : > { %1446 = vmatpush1.bf16.msra.mxu1 %v6067_v23  ;;  %1334 = vmatprep.subr.bf16.mxu0 %v6068_v24  ;;  %v7206_v3 = vld [vmem:[%s7112_s18] ss:$16 sps:$4 sm:$0xff]   ;;  %v7215_v8 = vld [vmem:[%s7112_s18 + $0x24] ss:$16 sps:$4 sm:$0xff]   ;;  %v7218_v9 = vld [vmem:[%s7112_s18 + $0x2c] ss:$16 sps:$4 sm:$0xff]  }
  0xa4   : > { %1447 = vmatprep.subr.bf16.mxu1 %v6070_v25  ;;  %v6135_v5 = vld [vmem:[%s7120_s6 + $0x2f0] ss:$12 sps:$4 sm:$0xff]   ;;  %v6144_v10 = vld [vmem:[%s7120_s6 + $0x158] ss:$12 sps:$4 sm:$0xff]   ;;  %v6154_v14 = vld [vmem:[%s7120_s6 + $0x140] ss:$12 sps:$4 sm:$0xff]  }
  0xa5   : > { %v6136_v6 = vld [vmem:[%s7120_s6 + $0xb0] ss:$12 sps:$4 sm:$0xff]   ;;  %v6145_v11 = vld [vmem:[%s7120_s6 + $0x2d8] ss:$12 sps:$4 sm:$0xff]   ;;  %v6155_v16 = vld [vmem:[%s7120_s6 + $0x2c0] ss:$12 sps:$4 sm:$0xff]  }
  0xa6   : > { %1335 = vmatpush1.bf16.msra.mxu0 %v6072_v26  ;;  %v6137_v7 = vld [vmem:[%s7120_s6 + $0x230] ss:$12 sps:$4 sm:$0xff]   ;;  %v6146_v12 = vld [vmem:[%s7120_s6 + $0x98] ss:$12 sps:$4 sm:$0xff]   ;;  %v6156_v20 = vld [vmem:[%s7120_s6 + $0x80] ss:$12 sps:$4 sm:$0xff]  }
  0xa7   : > { %1448 = vmatpush1.bf16.msra.mxu1 %v6073_v27  ;;  %1336 = vmatprep.subr.bf16.mxu0 %v6074_v28  ;;  %v6147_v13 = vld [vmem:[%s7120_s6 + $0x218] ss:$12 sps:$4 sm:$0xff]   ;;  %v7230_v15 = vld [vmem:[%s7112_s18 + $0x20] ss:$16 sps:$4 sm:$0xff]   ;;  %v7240_v19 = vld [vmem:[%s7112_s18 + $0x4c] ss:$16 sps:$4 sm:$0xff]  }
  0xa8   : > { %1449 = vmatprep.subr.bf16.mxu1 %v6076_v29  ;;  %v7234_v17 = vld [vmem:[%s7112_s18 + $0x28] ss:$16 sps:$4 sm:$0xff]   ;;  %v7237_v18 = vld [vmem:[%s7112_s18 + $0x44] ss:$16 sps:$4 sm:$0xff]   ;;  %v6157_v21 = vld [vmem:[%s7120_s6 + $0x200] ss:$12 sps:$4 sm:$0xff]  }
  0xa9   : > { %v6164_v22 = vld [vmem:[%s7120_s6 + $0x128] ss:$12 sps:$4 sm:$0xff]   ;;  %v7252_v25 = vld [vmem:[%s7112_s18 + $0x40] ss:$16 sps:$4 sm:$0xff]   ;;  %v7262_v29 = vld [vmem:[%s7112_s18 + $0x6c] ss:$16 sps:$4 sm:$0xff]  }
  0xaa   : > { %1337 = vmatpush1.bf16.msra.mxu0 %v6078_v30  ;;  %v6165_v23 = vld [vmem:[%s7120_s6 + $0x2a8] ss:$12 sps:$4 sm:$0xff]   ;;  %v6174_v30 = vld [vmem:[%s7120_s6 + $0x110] ss:$12 sps:$4 sm:$0xff]   ;;  %s6871_s13 = smov 64   ;;  %s5117_s30 = sshll.u32 %s7108_s26, 10 }
  0xab   : > { %1450 = vmatpush1.bf16.msra.mxu1 %v6079_v31  ;;  %1338 = vmatprep.subr.bf16.mxu0 %v6080_v32  ;;  %v6166_v24 = vld [vmem:[%s7120_s6 + $0x68] ss:$12 sps:$4 sm:$0xff]   ;;  %v6175_v31 = vld [vmem:[%s7120_s6 + $0x290] ss:$12 sps:$4 sm:$0xff]   ;;  %s8728_s21 = scalar_lea.vmem [#allocation10], %s5117_s30  ;;  %s9243_s22 = sld [smem:[#allocation19_spill]] }
  0xac   : > { %1451 = vmatprep.subr.bf16.mxu1 %v6082_v33  ;;  %v7255_v26 = vld [vmem:[%s7112_s18 + $0x48] ss:$16 sps:$4 sm:$0xff]   ;;  %v7259_v28 = vld [vmem:[%s7112_s18 + $0x64] ss:$16 sps:$4 sm:$0xff]   ;;  %v6176_v32 = vld [vmem:[%s7120_s6 + $0x50] ss:$12 sps:$4 sm:$0xff]  }
  0xad   : > { %v6167_v27 = vld [vmem:[%s7120_s6 + $0x1e8] ss:$12 sps:$4 sm:$0xff]   ;;  %v6177_v33 = vld [vmem:[%s7120_s6 + $0x1d0] ss:$12 sps:$4 sm:$0xff]   ;;  %s9244_s8 = sld [smem:[#allocation18_spill]]  ;;  %s4940_s9 = scalar_lea.sflag [#allocation4], %s7108_s26 }
  0xae   : > { %1339 = vmatpush2.bf16.msra.mxu0 %v6084_v34  ;;  %v6184_v34 = vld [vmem:[%s7120_s6 + $0xf8] ss:$12 sps:$4 sm:$0xff]   ;;  %s9246_s15 = sld [smem:[#allocation85_spill]]  ;;  %s6873_s1 = smov [#allocation10]  }
  0xaf   : > { %1452 = vmatpush2.bf16.msra.mxu1 %v6085_v35  ;;  %1340 = vmatprep.subr.bf16.mxu0 %v6086_v36  ;;  %v6185_v35 = vld [vmem:[%s7120_s6 + $0x278] ss:$12 sps:$4 sm:$0xff]  }
  0xb0   : > { %1453 = vmatprep.subr.bf16.mxu1 %v6088_v37  ;;  %v6186_v36 = vld [vmem:[%s7120_s6 + $0x38] ss:$12 sps:$4 sm:$0xff]   ;;  %v7276_v37 = vld [vmem:[%s7112_s18 + $0x60] ss:$16 sps:$4 sm:$0xff]  }
  0xb1   : > { %s5447_s16 = sshll.u32 %s9243_s22, 7 }
  0xb2   : > { %1341 = vmatpush2.bf16.msra.mxu0 %v6090_v38  ;;  %v7279_v38 = vld [vmem:[%s7112_s18 + $0x68] ss:$16 sps:$4 sm:$0xff]  }
  0xb3   : > { %1454 = vmatpush2.bf16.msra.mxu1 %v6091_v39  ;;  %1342 = vmatprep.subr.bf16.mxu0 %v6092_v40  ;;  %v6187_v39 = vld [vmem:[%s7120_s6 + $0x1b8] ss:$12 sps:$4 sm:$0xff]   ;;  %s5441_s11 = sshll.u32 %s9244_s8, 8 }
  0xb4   : > { %1455 = vmatprep.subr.bf16.mxu1 %v6094_v41  ;;  %v7283_v40 = vld [vmem:[%s7112_s18 + $0x84] ss:$16 sps:$4 sm:$0xff]   ;;  %v7286_v41 = vld [vmem:[%s7112_s18 + $0x8c] ss:$16 sps:$4 sm:$0xff]   ;;  %s4953_s10 = sadd.s32 %s5447_s16, %s5441_s11  ;;  %s9247_s29 = smov %s9246_s15 }
  0xb5   : > { %s5442_s14 = sshll.u32 %s4953_s10, 7 }
  0xb6   : > { %1343 = vmatpush2.bf16.msra.mxu0 %v6096_v42  ;;  %v6194_v42 = vld [vmem:[%s7120_s6 + $0xe0] ss:$12 sps:$4 sm:$0xff]   ;;  %s8862_s4 = scalar_lea.hbm %s9246_s15, %s5442_s14 }
  0xb7   : > { %1456 = vmatpush2.bf16.msra.mxu1 %v6097_v43  ;;  %1344 = vmatprep.subr.bf16.mxu0 %v6098_v44  ;;  %v6195_v43 = vld [vmem:[%s7120_s6 + $0x260] ss:$12 sps:$4 sm:$0xff]  }
  0xb8   : > { %1457 = vmatprep.subr.bf16.mxu1 %v6100_v45  ;;  %v6196_v44 = vld [vmem:[%s7120_s6 + $0x20] ss:$12 sps:$4 sm:$0xff]  }
  0xb9   : > { %v6197_v45 = vld [vmem:[%s7120_s6 + $0x1a0] ss:$12 sps:$4 sm:$0xff]  }
  0xba   : > { %1345 = vmatpush2.bf16.msra.mxu0 %v6102_v46  ;;  %v6204_v46 = vld [vmem:[%s7120_s6 + $0xc8] ss:$12 sps:$4 sm:$0xff]  }
  0xbb   : > { %1458 = vmatpush2.bf16.msra.mxu1 %v6103_v47  ;;  %1346 = vmatprep.subr.bf16.mxu0 %v6104_v48  ;;  %v7298_v47 = vld [vmem:[%s7112_s18 + $0x80] ss:$16 sps:$4 sm:$0xff]   ;;  %v7301_v48 = vld [vmem:[%s7112_s18 + $0x88] ss:$16 sps:$4 sm:$0xff]  }
  0xbc   : > { %1459 = vmatprep.subr.bf16.mxu1 %v6106_v50  ;;  %v6205_v50 = vld [vmem:[%s7120_s6 + $0x248] ss:$12 sps:$4 sm:$0xff]  }
  0xbe   : > { %1347 = vmatpush2.bf16.msra.mxu0 %v6108_v52  ;;  %v7305_v52 = vld [vmem:[%s7112_s18 + $0xa4] ss:$16 sps:$4 sm:$0xff]  }
  0xbf   : > { %1460 = vmatpush2.bf16.msra.mxu1 %v6109_v53  ;;  %1348 = vmatprep.subr.bf16.mxu0 %v6110_v54  ;;  %v6206_v53 = vld [vmem:[%s7120_s6 + $0x8] ss:$12 sps:$4 sm:$0xff]  }
  0xc0   : > { %1461 = vmatprep.subr.bf16.mxu1 %v6112_v55  ;;  %v6207_v54 = vld [vmem:[%s7120_s6 + $0x188] ss:$12 sps:$4 sm:$0xff]   ;;  %v7310_v55 = vld [vmem:[%s7112_s18 + $0xac] ss:$16 sps:$4 sm:$0xff]  }
  0xc2   : > { %1349 = vmatpush2.bf16.msra.mxu0 %v6114_v56  ;;  %v6210_v56 = vld [vmem:[%s7120_s6 + $0x3ac] ss:$12 sps:$4 sm:$0xff]  }
  0xc3   : > { %1462 = vmatpush2.bf16.msra.mxu1 %v6115_v57  ;;  %1350 = vmatprep.subr.bf16.mxu0 %v6116_v58  ;;  %v6213_v57 = vld [vmem:[%s7120_s6 + $0x52c] ss:$12 sps:$4 sm:$0xff]   ;;  %v7319_v58 = vld [vmem:[%s7112_s18 + $0xa0] ss:$16 sps:$4 sm:$0xff]  }
  0xc4   : > { %1463 = vmatprep.subr.bf16.mxu1 %v6118_v59  ;;  %v7322_v59 = vld [vmem:[%s7112_s18 + $0xa8] ss:$16 sps:$4 sm:$0xff]  }
  0xc6   : > { %1351 = vmatpush2.bf16.msra.mxu0 %v6120_v60  ;;  %v7325_v60 = vld [vmem:[%s7112_s18 + $0xc4] ss:$16 sps:$4 sm:$0xff]  }
  0xc7   : > { %1464 = vmatpush2.bf16.msra.mxu1 %v6121_v61  ;;  %1352 = vmatprep.subr.bf16.mxu0 %v6122_v62  ;;  %v7328_v61 = vld [vmem:[%s7112_s18 + $0xcc] ss:$16 sps:$4 sm:$0xff]   ;;  %v7335_v62 = vld [vmem:[%s7112_s18 + $0xc0] ss:$16 sps:$4 sm:$0xff]  }
  0xc8   : > { %1465 = vmatprep.subr.bf16.mxu1 %v6124_v63  ;;  %v7338_v63 = vld [vmem:[%s7112_s18 + $0xc8] ss:$16 sps:$4 sm:$0xff]  }
  0xca   : > { %1353 = vmatpush2.bf16.msra.mxu0 %v6126_v0  ;;  %v7341_v0 = vld [vmem:[%s7112_s18 + $0xe4] ss:$16 sps:$4 sm:$0xff]  }
  0xcb   : > { %1466 = vmatpush2.bf16.msra.mxu1 %v6127_v1  ;;  %5448 = vmatprep.subr.bf16.mxu0 %v6134_v2  ;;  %v7344_v1 = vld [vmem:[%s7112_s18 + $0xec] ss:$16 sps:$4 sm:$0xff]   ;;  %v7351_v2 = vld [vmem:[%s7112_s18 + $0xe0] ss:$16 sps:$4 sm:$0xff]  }
  0xcc   : > { %5512 = vmatprep.subr.bf16.mxu1 %v6135_v5  ;;  %v7354_v5 = vld [vmem:[%s7112_s18 + $0xe8] ss:$16 sps:$4 sm:$0xff]  }
  0xcd   : > { %1355 = vmatmul.mubr.bf16.vlgmr.msra.gmra.mxu0 %v7206_v3 }
  0xce   : > { %1468 = vmatmul.mubr.bf16.vlgmr.msra.gmra.mxu1 %v7209_v4  ;;  %5449 = vmatpush3.bf16.msra.mxu0 %v6136_v6  ;;  %v6208_v6 = vld [vmem:[%s7120_s6 + $0x3a8] ss:$12 sps:$4 sm:$0xff]  }
  0xcf   : > { %5513 = vmatpush3.bf16.msra.mxu1 %v6137_v7  ;;  %1364 = vmatprep.mubr.bf16.mxu0 %v7215_v8  ;;  %v6211_v7 = vld [vmem:[%s7120_s6 + $0x528] ss:$12 sps:$4 sm:$0xff]  }
  0xd0   : > { %1477 = vmatprep.mubr.bf16.mxu1 %v7218_v9  ;;  %5450 = vmatprep.subr.bf16.mxu0 %v6144_v10  ;;  %v6216_v10 = vld [vmem:[%s7120_s6 + $0x394] ss:$12 sps:$4 sm:$0xff]  }
  0xd1   : > { %5514 = vmatprep.subr.bf16.mxu1 %v6145_v11  ;;  %v6219_v11 = vld [vmem:[%s7120_s6 + $0x514] ss:$12 sps:$4 sm:$0xff]  }
  0xd2   : > { %5451 = vmatpush3.bf16.msra.mxu0 %v6146_v12  ;;  %v6214_v12 = vld [vmem:[%s7120_s6 + $0x390] ss:$12 sps:$4 sm:$0xff]  }
  0xd3   : > { %5515 = vmatpush3.bf16.msra.mxu1 %v6147_v13  ;;  %5452 = vmatprep.subr.bf16.mxu0 %v6154_v14  ;;  %v6217_v13 = vld [vmem:[%s7120_s6 + $0x510] ss:$12 sps:$4 sm:$0xff]  }
  0xd4   : > { %5516 = vmatprep.subr.bf16.mxu1 %v6155_v16  ;;  %v6222_v14 = vld [vmem:[%s7120_s6 + $0x37c] ss:$12 sps:$4 sm:$0xff]   ;;  %v6231_v16 = vld [vmem:[%s7120_s6 + $0x4e4] ss:$12 sps:$4 sm:$0xff]  }
  0xd5   : > { %1365 = vmatmul.mubr.bf16.gmra.mxu0 %v7230_v15 }
  0xd6   : > { %1478 = vmatmul.mubr.bf16.gmra.mxu1 %v7234_v17  ;;  %1374 = vmatprep.mubr.bf16.mxu0 %v7237_v18 }
  0xd7   : > { %1487 = vmatprep.mubr.bf16.mxu1 %v7240_v19  ;;  %5453 = vmatpush3.bf16.msra.mxu0 %v6156_v20  ;;  %v6229_v20 = vld [vmem:[%s7120_s6 + $0x4e0] ss:$12 sps:$4 sm:$0xff]  }
  0xd8   : > { %5517 = vmatpush3.bf16.msra.mxu1 %v6157_v21  ;;  %5454 = vmatprep.subr.bf16.mxu0 %v6164_v22  ;;  %v6237_v21 = vld [vmem:[%s7120_s6 + $0x4cc] ss:$12 sps:$4 sm:$0xff]   ;;  %v6235_v22 = vld [vmem:[%s7120_s6 + $0x4c8] ss:$12 sps:$4 sm:$0xff]  }
  0xd9   : > { %5518 = vmatprep.subr.bf16.mxu1 %v6165_v23  ;;  %v6243_v23 = vld [vmem:[%s7120_s6 + $0x4b4] ss:$12 sps:$4 sm:$0xff]  }
  0xdb   : > { %5455 = vmatpush3.bf16.msra.mxu0 %v6166_v24  ;;  %v6246_v24 = vld [vmem:[%s7120_s6 + $0x31c] ss:$12 sps:$4 sm:$0xff]  }
  0xdc   : > { %5519 = vmatpush3.bf16.msra.mxu1 %v6167_v27  ;;  %5456 = vmatprep.subr.bf16.mxu0 %v6174_v30  ;;  %v6249_v27 = vld [vmem:[%s7120_s6 + $0x49c] ss:$12 sps:$4 sm:$0xff]   ;;  %v6247_v30 = vld [vmem:[%s7120_s6 + $0x498] ss:$12 sps:$4 sm:$0xff]  }
  0xdd   : > { %5520 = vmatprep.subr.bf16.mxu1 %v6175_v31  ;;  %1375 = vmatmul.mubr.bf16.gmra.mxu0 %v7252_v25  ;;  %v6255_v31 = vld [vmem:[%s7120_s6 + $0x484] ss:$12 sps:$4 sm:$0xff]  }
  0xde   : > { %1488 = vmatmul.mubr.bf16.gmra.mxu1 %v7255_v26  ;;  %1384 = vmatprep.mubr.bf16.mxu0 %v7259_v28 }
  0xdf   : > { %1497 = vmatprep.mubr.bf16.mxu1 %v7262_v29  ;;  %5457 = vmatpush3.bf16.msra.mxu0 %v6176_v32  ;;  %v6250_v32 = vld [vmem:[%s7120_s6 + $0x300] ss:$12 sps:$4 sm:$0xff]  }
  0xe0   : > { %5521 = vmatpush3.bf16.msra.mxu1 %v6177_v33  ;;  %5458 = vmatprep.subr.bf16.mxu0 %v6184_v34  ;;  %v6261_v33 = vld [vmem:[%s7120_s6 + $0x5ec] ss:$12 sps:$4 sm:$0xff]   ;;  %v6256_v34 = vld [vmem:[%s7120_s6 + $0x468] ss:$12 sps:$4 sm:$0xff]  }
  0xe1   : > { %5522 = vmatprep.subr.bf16.mxu1 %v6185_v35  ;;  %v6259_v35 = vld [vmem:[%s7120_s6 + $0x5e8] ss:$12 sps:$4 sm:$0xff]  }
  0xe3   : > { %5459 = vmatpush3.bf16.msra.mxu0 %v6186_v36  ;;  %v6264_v36 = vld [vmem:[%s7120_s6 + $0x454] ss:$12 sps:$4 sm:$0xff]  }
  0xe4   : > { %5523 = vmatpush3.bf16.msra.mxu1 %v6187_v39  ;;  %5460 = vmatprep.subr.bf16.mxu0 %v6194_v42  ;;  %v6265_v39 = vld [vmem:[%s7120_s6 + $0x5d0] ss:$12 sps:$4 sm:$0xff]   ;;  %v6268_v42 = vld [vmem:[%s7120_s6 + $0x438] ss:$12 sps:$4 sm:$0xff]  }
  0xe5   : > { %5524 = vmatprep.subr.bf16.mxu1 %v6195_v43  ;;  %1385 = vmatmul.mubr.bf16.gmra.mxu0 %v7276_v37  ;;  %v6271_v43 = vld [vmem:[%s7120_s6 + $0x5b8] ss:$12 sps:$4 sm:$0xff]  }
  0xe6   : > { %1498 = vmatmul.mubr.bf16.gmra.mxu1 %v7279_v38  ;;  %1394 = vmatprep.mubr.bf16.mxu0 %v7283_v40 }
  0xe7   : > { %1507 = vmatprep.mubr.bf16.mxu1 %v7286_v41  ;;  %5461 = vmatpush3.bf16.msra.mxu0 %v6196_v44  ;;  %v6276_v44 = vld [vmem:[%s7120_s6 + $0x424] ss:$12 sps:$4 sm:$0xff]  }
  0xe8   : > { %5525 = vmatpush3.bf16.msra.mxu1 %v6197_v45  ;;  %5462 = vmatprep.subr.bf16.mxu0 %v6204_v46  ;;  %v6279_v45 = vld [vmem:[%s7120_s6 + $0x5a4] ss:$12 sps:$4 sm:$0xff]   ;;  %v6274_v46 = vld [vmem:[%s7120_s6 + $0x420] ss:$12 sps:$4 sm:$0xff]  }
  0xe9   : > { %5526 = vmatprep.subr.bf16.mxu1 %v6205_v50  ;;  %v6285_v50 = vld [vmem:[%s7120_s6 + $0x58c] ss:$12 sps:$4 sm:$0xff]  }
  0xeb   : > { %5463 = vmatpush3.bf16.msra.mxu0 %v6206_v53  ;;  %v6283_v53 = vld [vmem:[%s7120_s6 + $0x588] ss:$12 sps:$4 sm:$0xff]  }
  0xec   : > { %5527 = vmatpush3.bf16.msra.mxu1 %v6207_v54  ;;  %2414 = vmatprep.subr.bf16.mxu0 %v6210_v56  ;;  %v6288_v54 = vld [vmem:[%s7120_s6 + $0x3f4] ss:$12 sps:$4 sm:$0xff]   ;;  %v6286_v56 = vld [vmem:[%s7120_s6 + $0x3f0] ss:$12 sps:$4 sm:$0xff]  }
  0xed   : > { %1395 = vmatmul.mubr.bf16.gmra.mxu0 %v7298_v47  ;;  %2527 = vmatprep.subr.bf16.mxu1 %v6213_v57  ;;  %v6289_v57 = vld [vmem:[%s7120_s6 + $0x570] ss:$12 sps:$4 sm:$0xff]  }
  0xee   : > { %1508 = vmatmul.mubr.bf16.gmra.mxu1 %v7301_v48  ;;  %1404 = vmatprep.mubr.bf16.mxu0 %v7305_v52 }
  0xef   : > { %1517 = vmatprep.mubr.bf16.mxu1 %v7310_v55 }
  0xf5   : > { %1405 = vmatmul.mubr.bf16.gmra.mxu0 %v7319_v58 }
  0xf6   : > { %1518 = vmatmul.mubr.bf16.gmra.mxu1 %v7322_v59  ;;  %1414 = vmatprep.mubr.bf16.mxu0 %v7325_v60 }
  0xf7   : > { %1527 = vmatprep.mubr.bf16.mxu1 %v7328_v61 }
  0xfd   : > { %1415 = vmatmul.mubr.bf16.gmra.mxu0 %v7335_v62 }
  0xfe   : > { %1528 = vmatmul.mubr.bf16.gmra.mxu1 %v7338_v63  ;;  %1424 = vmatprep.mubr.bf16.mxu0 %v7341_v0 }
  0xff   : > { %1537 = vmatprep.mubr.bf16.mxu1 %v7344_v1 }
 0x105   : > { %1425 = vmatmul.mubr.bf16.gmra.mxu0 %v7351_v2 }
 0x106   : > { %1538 = vmatmul.mubr.bf16.gmra.mxu1 %v7354_v5  ;;  %1580 = vmatprep.mubr.bf16.mxu0 %v7182_v49  ;;  %v6225_v49 = vld [vmem:[%s7120_s6 + $0x4fc] ss:$12 sps:$4 sm:$0xff]  }
 0x107   : > { %1677 = vmatprep.mubr.bf16.mxu1 %v7186_v51  ;;  %v6220_v51 = vld [vmem:[%s7120_s6 + $0x378] ss:$12 sps:$4 sm:$0xff]  }
 0x10d   : > { %1581 = vmatmul.mubr.bf16.vlgmr.msra.gmra.mxu0 %v7206_v3  ;;  %v6223_v3 = vld [vmem:[%s7120_s6 + $0x4f8] ss:$12 sps:$4 sm:$0xff]  }
 0x10e   : > { %1678 = vmatmul.mubr.bf16.vlgmr.msra.gmra.mxu1 %v7209_v4  ;;  %2415 = vmatpush1.bf16.msra.mxu0 %v6208_v6  ;;  %v6228_v4 = vld [vmem:[%s7120_s6 + $0x364] ss:$12 sps:$4 sm:$0xff]  }
 0x10f   : > { %2528 = vmatpush1.bf16.msra.mxu1 %v6211_v7  ;;  %2416 = vmatprep.subr.bf16.mxu0 %v6216_v10  ;;  %v6300_v6 = vld [vmem:[%s7120_s6 + $0x3c4] ss:$12 sps:$4 sm:$0xff]   ;;  %v7452_v7 = vld [vmem:[%s7112_s18 + $0x10c] ss:$16 sps:$4 sm:$0xff]  }
 0x110   : > { %2529 = vmatprep.subr.bf16.mxu1 %v6219_v11  ;;  %1588 = vmatprep.mubr.bf16.mxu0 %v7215_v8  ;;  %v6226_v8 = vld [vmem:[%s7120_s6 + $0x360] ss:$12 sps:$4 sm:$0xff]   ;;  %v7462_v11 = vld [vmem:[%s7112_s18 + $0x108] ss:$16 sps:$4 sm:$0xff]  }
 0x111   : > { %1685 = vmatprep.mubr.bf16.mxu1 %v7218_v9  ;;  %v6234_v9 = vld [vmem:[%s7120_s6 + $0x34c] ss:$12 sps:$4 sm:$0xff]   ;;  %v7459_v10 = vld [vmem:[%s7112_s18 + $0x100] ss:$16 sps:$4 sm:$0xff]  }
 0x112   : > { %2417 = vmatpush1.bf16.msra.mxu0 %v6214_v12  ;;  %v7477_v12 = vld [vmem:[%s7112_s18 + $0x120] ss:$16 sps:$4 sm:$0xff]  }
 0x113   : > { %2530 = vmatpush1.bf16.msra.mxu1 %v6217_v13  ;;  %2418 = vmatprep.subr.bf16.mxu0 %v6222_v14  ;;  %v7480_v13 = vld [vmem:[%s7112_s18 + $0x128] ss:$16 sps:$4 sm:$0xff]   ;;  %v7483_v14 = vld [vmem:[%s7112_s18 + $0x144] ss:$16 sps:$4 sm:$0xff]  }
 0x114   : > { %2531 = vmatprep.subr.bf16.mxu1 %v6225_v49  ;;  %v7486_v49 = vld [vmem:[%s7112_s18 + $0x14c] ss:$16 sps:$4 sm:$0xff]  }
 0x115   : > { %1589 = vmatmul.mubr.bf16.gmra.mxu0 %v7230_v15  ;;  %v6232_v15 = vld [vmem:[%s7120_s6 + $0x348] ss:$12 sps:$4 sm:$0xff]  }
 0x116   : > { %1686 = vmatmul.mubr.bf16.gmra.mxu1 %v7234_v17  ;;  %2419 = vmatpush1.bf16.msra.mxu0 %v6220_v51  ;;  %v6240_v17 = vld [vmem:[%s7120_s6 + $0x334] ss:$12 sps:$4 sm:$0xff]  }
 0x117   : > { %2532 = vmatpush1.bf16.msra.mxu1 %v6223_v3  ;;  %2420 = vmatprep.subr.bf16.mxu0 %v6228_v4  ;;  %v7493_v51 = vld [vmem:[%s7112_s18 + $0x140] ss:$16 sps:$4 sm:$0xff]   ;;  %v7496_v3 = vld [vmem:[%s7112_s18 + $0x148] ss:$16 sps:$4 sm:$0xff]   ;;  %v7499_v4 = vld [vmem:[%s7112_s18 + $0x164] ss:$16 sps:$4 sm:$0xff]  }
 0x118   : > { %2533 = vmatprep.subr.bf16.mxu1 %v6231_v16  ;;  %1596 = vmatprep.mubr.bf16.mxu0 %v7237_v18  ;;  %v6238_v18 = vld [vmem:[%s7120_s6 + $0x330] ss:$12 sps:$4 sm:$0xff]  }
 0x119   : > { %1693 = vmatprep.mubr.bf16.mxu1 %v7240_v19  ;;  %v6241_v19 = vld [vmem:[%s7120_s6 + $0x4b0] ss:$12 sps:$4 sm:$0xff]  }
 0x11a   : > { %2421 = vmatpush1.bf16.msra.mxu0 %v6226_v8  ;;  %v7502_v16 = vld [vmem:[%s7112_s18 + $0x16c] ss:$16 sps:$4 sm:$0xff]   ;;  %v7509_v8 = vld [vmem:[%s7112_s18 + $0x160] ss:$16 sps:$4 sm:$0xff]  }
 0x11b   : > { %2534 = vmatpush1.bf16.msra.mxu1 %v6229_v20  ;;  %2422 = vmatprep.subr.bf16.mxu0 %v6234_v9  ;;  %v7512_v20 = vld [vmem:[%s7112_s18 + $0x168] ss:$16 sps:$4 sm:$0xff]   ;;  %v7515_v9 = vld [vmem:[%s7112_s18 + $0x184] ss:$16 sps:$4 sm:$0xff]  }
 0x11c   : > { %2535 = vmatprep.subr.bf16.mxu1 %v6237_v21  ;;  %v7518_v21 = vld [vmem:[%s7112_s18 + $0x18c] ss:$16 sps:$4 sm:$0xff]  }
 0x11d   : > { %1597 = vmatmul.mubr.bf16.gmra.mxu0 %v7252_v25  ;;  %v6244_v25 = vld [vmem:[%s7120_s6 + $0x318] ss:$12 sps:$4 sm:$0xff]  }
 0x11e   : > { %1694 = vmatmul.mubr.bf16.gmra.mxu1 %v7255_v26  ;;  %2423 = vmatpush1.bf16.msra.mxu0 %v6232_v15  ;;  %v6252_v26 = vld [vmem:[%s7120_s6 + $0x304] ss:$12 sps:$4 sm:$0xff]  }
 0x11f   : > { %2536 = vmatpush1.bf16.msra.mxu1 %v6235_v22  ;;  %2424 = vmatprep.subr.bf16.mxu0 %v6240_v17  ;;  %v7525_v15 = vld [vmem:[%s7112_s18 + $0x180] ss:$16 sps:$4 sm:$0xff]   ;;  %v7528_v22 = vld [vmem:[%s7112_s18 + $0x188] ss:$16 sps:$4 sm:$0xff]   ;;  %v7531_v17 = vld [vmem:[%s7112_s18 + $0x1a4] ss:$16 sps:$4 sm:$0xff]  }
 0x120   : > { %2537 = vmatprep.subr.bf16.mxu1 %v6243_v23  ;;  %1604 = vmatprep.mubr.bf16.mxu0 %v7259_v28  ;;  %v6253_v28 = vld [vmem:[%s7120_s6 + $0x480] ss:$12 sps:$4 sm:$0xff]  }
 0x121   : > { %1701 = vmatprep.mubr.bf16.mxu1 %v7262_v29  ;;  %v6258_v29 = vld [vmem:[%s7120_s6 + $0x46c] ss:$12 sps:$4 sm:$0xff]  }
 0x122   : > { %2425 = vmatpush1.bf16.msra.mxu0 %v6238_v18  ;;  %v7534_v23 = vld [vmem:[%s7112_s18 + $0x1ac] ss:$16 sps:$4 sm:$0xff]   ;;  %v7541_v18 = vld [vmem:[%s7112_s18 + $0x1a0] ss:$16 sps:$4 sm:$0xff]  }
 0x123   : > { %2538 = vmatpush1.bf16.msra.mxu1 %v6241_v19  ;;  %2426 = vmatprep.subr.bf16.mxu0 %v6246_v24  ;;  %v7544_v19 = vld [vmem:[%s7112_s18 + $0x1a8] ss:$16 sps:$4 sm:$0xff]   ;;  %v7547_v24 = vld [vmem:[%s7112_s18 + $0x1c4] ss:$16 sps:$4 sm:$0xff]  }
 0x124   : > { %2539 = vmatprep.subr.bf16.mxu1 %v6249_v27  ;;  %v7550_v27 = vld [vmem:[%s7112_s18 + $0x1cc] ss:$16 sps:$4 sm:$0xff]  }
 0x125   : > { %1605 = vmatmul.mubr.bf16.gmra.mxu0 %v7276_v37  ;;  %v6267_v37 = vld [vmem:[%s7120_s6 + $0x5d4] ss:$12 sps:$4 sm:$0xff]  }
 0x126   : > { %1702 = vmatmul.mubr.bf16.gmra.mxu1 %v7279_v38  ;;  %2427 = vmatpush1.bf16.msra.mxu0 %v6244_v25  ;;  %v6262_v38 = vld [vmem:[%s7120_s6 + $0x450] ss:$12 sps:$4 sm:$0xff]  }
 0x127   : > { %2540 = vmatpush1.bf16.msra.mxu1 %v6247_v30  ;;  %2428 = vmatprep.subr.bf16.mxu0 %v6252_v26  ;;  %v7557_v25 = vld [vmem:[%s7112_s18 + $0x1c0] ss:$16 sps:$4 sm:$0xff]   ;;  %v7560_v30 = vld [vmem:[%s7112_s18 + $0x1c8] ss:$16 sps:$4 sm:$0xff]   ;;  %v7563_v26 = vld [vmem:[%s7112_s18 + $0x1e4] ss:$16 sps:$4 sm:$0xff]  }
 0x128   : > { %2541 = vmatprep.subr.bf16.mxu1 %v6255_v31  ;;  %1612 = vmatprep.mubr.bf16.mxu0 %v7283_v40  ;;  %v6270_v40 = vld [vmem:[%s7120_s6 + $0x43c] ss:$12 sps:$4 sm:$0xff]  }
 0x129   : > { %1709 = vmatprep.mubr.bf16.mxu1 %v7286_v41  ;;  %v6273_v41 = vld [vmem:[%s7120_s6 + $0x5bc] ss:$12 sps:$4 sm:$0xff]  }
 0x12a   : > { %2429 = vmatpush1.bf16.msra.mxu0 %v6250_v32  ;;  %v7566_v31 = vld [vmem:[%s7112_s18 + $0x1ec] ss:$16 sps:$4 sm:$0xff]   ;;  %v7573_v32 = vld [vmem:[%s7112_s18 + $0x1e0] ss:$16 sps:$4 sm:$0xff]  }
 0x12b   : > { %2542 = vmatpush1.bf16.msra.mxu1 %v6253_v28  ;;  %2430 = vmatprep.subr.bf16.mxu0 %v6258_v29  ;;  %v7576_v28 = vld [vmem:[%s7112_s18 + $0x1e8] ss:$16 sps:$4 sm:$0xff]   ;;  %v6352_v29 = vld [vmem:[%s7120_s6 + $0x470] ss:$12 sps:$4 sm:$0xff]  }
 0x12c   : > { %2543 = vmatprep.subr.bf16.mxu1 %v6261_v33  ;;  %v6353_v33 = vld [vmem:[%s7120_s6 + $0x5f0] ss:$12 sps:$4 sm:$0xff]  }
 0x12d   : > { %1613 = vmatmul.mubr.bf16.gmra.mxu0 %v7298_v47  ;;  %v6277_v47 = vld [vmem:[%s7120_s6 + $0x5a0] ss:$12 sps:$4 sm:$0xff]  }
 0x12e   : > { %1710 = vmatmul.mubr.bf16.gmra.mxu1 %v7301_v48  ;;  %2431 = vmatpush2.bf16.msra.mxu0 %v6256_v34  ;;  %v6282_v48 = vld [vmem:[%s7120_s6 + $0x40c] ss:$12 sps:$4 sm:$0xff]   ;;  %v6354_v34 = vld [vmem:[%s7120_s6 + $0x3b0] ss:$12 sps:$4 sm:$0xff]  }
 0x12f   : > { %2544 = vmatpush2.bf16.msra.mxu1 %v6259_v35  ;;  %2432 = vmatprep.subr.bf16.mxu0 %v6264_v36  ;;  %v6355_v35 = vld [vmem:[%s7120_s6 + $0x530] ss:$12 sps:$4 sm:$0xff]   ;;  %v6356_v36 = vld [vmem:[%s7120_s6 + $0x458] ss:$12 sps:$4 sm:$0xff]  }
 0x130   : > { %2545 = vmatprep.subr.bf16.mxu1 %v6267_v37  ;;  %1620 = vmatprep.mubr.bf16.mxu0 %v7305_v52  ;;  %v6280_v52 = vld [vmem:[%s7120_s6 + $0x408] ss:$12 sps:$4 sm:$0xff]   ;;  %v6357_v37 = vld [vmem:[%s7120_s6 + $0x5d8] ss:$12 sps:$4 sm:$0xff]  }
 0x131   : > { %1717 = vmatprep.mubr.bf16.mxu1 %v7310_v55  ;;  %v6291_v55 = vld [vmem:[%s7120_s6 + $0x574] ss:$12 sps:$4 sm:$0xff]  }
 0x132   : > { %2433 = vmatpush2.bf16.msra.mxu0 %v6262_v38 }
 0x133   : > { %2546 = vmatpush2.bf16.msra.mxu1 %v6265_v39  ;;  %2434 = vmatprep.subr.bf16.mxu0 %v6270_v40  ;;  %v6358_v40 = vld [vmem:[%s7120_s6 + $0x398] ss:$12 sps:$4 sm:$0xff]  }
 0x134   : > { %2547 = vmatprep.subr.bf16.mxu1 %v6273_v41  ;;  %v6359_v41 = vld [vmem:[%s7120_s6 + $0x518] ss:$12 sps:$4 sm:$0xff]  }
 0x135   : > { %1621 = vmatmul.mubr.bf16.gmra.mxu0 %v7319_v58  ;;  %v6294_v58 = vld [vmem:[%s7120_s6 + $0x3dc] ss:$12 sps:$4 sm:$0xff]  }
 0x136   : > { %1718 = vmatmul.mubr.bf16.gmra.mxu1 %v7322_v59  ;;  %2435 = vmatpush2.bf16.msra.mxu0 %v6268_v42  ;;  %v6297_v59 = vld [vmem:[%s7120_s6 + $0x55c] ss:$12 sps:$4 sm:$0xff]  }
 0x137   : > { %2548 = vmatpush2.bf16.msra.mxu1 %v6271_v43  ;;  %2436 = vmatprep.subr.bf16.mxu0 %v6276_v44 }
 0x138   : > { %2549 = vmatprep.subr.bf16.mxu1 %v6279_v45  ;;  %1628 = vmatprep.mubr.bf16.mxu0 %v7325_v60  ;;  %v6292_v60 = vld [vmem:[%s7120_s6 + $0x3d8] ss:$12 sps:$4 sm:$0xff]  }
 0x139   : > { %1725 = vmatprep.mubr.bf16.mxu1 %v7328_v61  ;;  %v6295_v61 = vld [vmem:[%s7120_s6 + $0x558] ss:$12 sps:$4 sm:$0xff]  }
 0x13a   : > { %2437 = vmatpush2.bf16.msra.mxu0 %v6274_v46  ;;  %v6360_v46 = vld [vmem:[%s7120_s6 + $0x440] ss:$12 sps:$4 sm:$0xff]  }
 0x13b   : > { %2550 = vmatpush2.bf16.msra.mxu1 %v6277_v47  ;;  %2438 = vmatprep.subr.bf16.mxu0 %v6282_v48  ;;  %v6361_v47 = vld [vmem:[%s7120_s6 + $0x5c0] ss:$12 sps:$4 sm:$0xff]  }
 0x13c   : > { %2551 = vmatprep.subr.bf16.mxu1 %v6285_v50 }
 0x13d   : > { %1629 = vmatmul.mubr.bf16.gmra.mxu0 %v7335_v62  ;;  %v6303_v62 = vld [vmem:[%s7120_s6 + $0x544] ss:$12 sps:$4 sm:$0xff]  }
 0x13e   : > { %1726 = vmatmul.mubr.bf16.gmra.mxu1 %v7338_v63  ;;  %2439 = vmatpush2.bf16.msra.mxu0 %v6280_v52  ;;  %v7449_v63 = vld [vmem:[%s7112_s18 + $0x104] ss:$16 sps:$4 sm:$0xff]   ;;  %v6362_v52 = vld [vmem:[%s7120_s6 + $0x380] ss:$12 sps:$4 sm:$0xff]  }
 0x13f   : > { %2552 = vmatpush2.bf16.msra.mxu1 %v6283_v53  ;;  %2440 = vmatprep.subr.bf16.mxu0 %v6288_v54  ;;  %v6363_v53 = vld [vmem:[%s7120_s6 + $0x500] ss:$12 sps:$4 sm:$0xff]  }
 0x140   : > { %2553 = vmatprep.subr.bf16.mxu1 %v6291_v55  ;;  %1636 = vmatprep.mubr.bf16.mxu0 %v7341_v0  ;;  %v6298_v0 = vld [vmem:[%s7120_s6 + $0x3c0] ss:$12 sps:$4 sm:$0xff]  }
 0x141   : > { %1733 = vmatprep.mubr.bf16.mxu1 %v7344_v1  ;;  %v6301_v1 = vld [vmem:[%s7120_s6 + $0x540] ss:$12 sps:$4 sm:$0xff]  }
 0x142   : > { %2441 = vmatpush2.bf16.msra.mxu0 %v6286_v56 }
 0x143   : > { %2554 = vmatpush2.bf16.msra.mxu1 %v6289_v57  ;;  %2442 = vmatprep.subr.bf16.mxu0 %v6294_v58  ;;  %v6364_v58 = vld [vmem:[%s7120_s6 + $0x428] ss:$12 sps:$4 sm:$0xff]  }
 0x144   : > { %2555 = vmatprep.subr.bf16.mxu1 %v6297_v59  ;;  %v6365_v59 = vld [vmem:[%s7120_s6 + $0x5a8] ss:$12 sps:$4 sm:$0xff]  }
 0x145   : > { %1637 = vmatmul.mubr.bf16.gmra.mxu0 %v7351_v2  ;;  %v7467_v2 = vld [vmem:[%s7112_s18 + $0x124] ss:$16 sps:$4 sm:$0xff]  }
 0x146   : > { %1734 = vmatmul.mubr.bf16.gmra.mxu1 %v7354_v5  ;;  %2443 = vmatpush2.bf16.msra.mxu0 %v6292_v60  ;;  %v7470_v5 = vld [vmem:[%s7112_s18 + $0x12c] ss:$16 sps:$4 sm:$0xff]   ;;  %s4956_s18 = sshll.u32 %s8728_s21, 4  ;;  %s8864_s18 = int_to_ptr.vmem [resolvable:$true] %s4956_s18 }
 0x147   : > { %2556 = vmatpush2.bf16.msra.mxu1 %v6295_v61  ;;  %2444 = vmatprep.subr.bf16.mxu0 %v6300_v6  ;;  %v6366_v6 = vld [vmem:[%s7120_s6 + $0x368] ss:$12 sps:$4 sm:$0xff]  }
 0x148   : > { %2557 = vmatprep.subr.bf16.mxu1 %v6303_v62  ;;  %2446 = vmatprep.mubr.bf16.mxu0 %v7449_v63  ;;  %v6367_v62 = vld [vmem:[%s7120_s6 + $0x4e8] ss:$12 sps:$4 sm:$0xff]  }
 0x149   : > { %2559 = vmatprep.mubr.bf16.mxu1 %v7452_v7 }
 0x14a   : > { %2445 = vmatpush2.bf16.msra.mxu0 %v6298_v0 }
 0x14b   : > { %2558 = vmatpush2.bf16.msra.mxu1 %v6301_v1  ;;  %5576 = vmatprep.subr.bf16.mxu0 %v6352_v29  ;;  %v6368_v29 = vld [vmem:[%s7120_s6 + $0x410] ss:$12 sps:$4 sm:$0xff]  }
 0x14c   : > { %5640 = vmatprep.subr.bf16.mxu1 %v6353_v33  ;;  %v6369_v33 = vld [vmem:[%s7120_s6 + $0x590] ss:$12 sps:$4 sm:$0xff]  }
 0x14d   : > { %2447 = vmatmul.mubr.bf16.vlgmr.msra.gmra.mxu0 %v7459_v10 }
 0x14e   : > { %2560 = vmatmul.mubr.bf16.vlgmr.msra.gmra.mxu1 %v7462_v11  ;;  %2456 = vmatprep.mubr.bf16.mxu0 %v7467_v2 }
 0x14f   : > { %2569 = vmatprep.mubr.bf16.mxu1 %v7470_v5  ;;  %5577 = vmatpush3.bf16.msra.mxu0 %v6354_v34 }
 0x150   : > { %5641 = vmatpush3.bf16.msra.mxu1 %v6355_v35  ;;  %5578 = vmatprep.subr.bf16.mxu0 %v6356_v36  ;;  %v6370_v36 = vld [vmem:[%s7120_s6 + $0x350] ss:$12 sps:$4 sm:$0xff]  }
 0x151   : > { %5642 = vmatprep.subr.bf16.mxu1 %v6357_v37  ;;  %v6371_v37 = vld [vmem:[%s7120_s6 + $0x4d0] ss:$12 sps:$4 sm:$0xff]  }
 0x153   : > { %5579 = vmatpush3.bf16.msra.mxu0 %v6358_v40 }
 0x154   : > { %5643 = vmatpush3.bf16.msra.mxu1 %v6359_v41  ;;  %5580 = vmatprep.subr.bf16.mxu0 %v6360_v46  ;;  %v6372_v41 = vld [vmem:[%s7120_s6 + $0x3f8] ss:$12 sps:$4 sm:$0xff]  }
 0x155   : > { %2457 = vmatmul.mubr.bf16.gmra.mxu0 %v7477_v12  ;;  %5644 = vmatprep.subr.bf16.mxu1 %v6361_v47  ;;  %v6374_v47 = vld [vmem:[%s7120_s6 + $0x338] ss:$12 sps:$4 sm:$0xff]  }
 0x156   : > { %2570 = vmatmul.mubr.bf16.gmra.mxu1 %v7480_v13  ;;  %2466 = vmatprep.mubr.bf16.mxu0 %v7483_v14 }
 0x157   : > { %2579 = vmatprep.mubr.bf16.mxu1 %v7486_v49  ;;  %5581 = vmatpush3.bf16.msra.mxu0 %v6362_v52 }
 0x158   : > { %5645 = vmatpush3.bf16.msra.mxu1 %v6363_v53  ;;  %5582 = vmatprep.subr.bf16.mxu0 %v6364_v58 }
 0x159   : > { %5646 = vmatprep.subr.bf16.mxu1 %v6365_v59 }
 0x15b   : > { %5583 = vmatpush3.bf16.msra.mxu0 %v6366_v6 }
 0x15c   : > { %5647 = vmatpush3.bf16.msra.mxu1 %v6367_v62  ;;  %5584 = vmatprep.subr.bf16.mxu0 %v6368_v29  ;;  %v6381_v29 = vld [vmem:[%s7120_s6 + $0x548] ss:$12 sps:$4 sm:$0xff]  }
 0x15d   : > { %2467 = vmatmul.mubr.bf16.gmra.mxu0 %v7493_v51  ;;  %5648 = vmatprep.subr.bf16.mxu1 %v6369_v33 }
 0x15e   : > { %2580 = vmatmul.mubr.bf16.gmra.mxu1 %v7496_v3  ;;  %2476 = vmatprep.mubr.bf16.mxu0 %v7499_v4 }
 0x15f   : > { %2589 = vmatprep.mubr.bf16.mxu1 %v7502_v16  ;;  %5585 = vmatpush3.bf16.msra.mxu0 %v6370_v36  ;;  %v6383_v36 = vld [vmem:[%s7120_s6 + $0x488] ss:$12 sps:$4 sm:$0xff]  }
 0x160   : > { %5649 = vmatpush3.bf16.msra.mxu1 %v6371_v37  ;;  %5586 = vmatprep.subr.bf16.mxu0 %v6372_v41 }
 0x163   : > { %5587 = vmatpush3.bf16.msra.mxu0 %v6374_v47 }
 0x165   : > { %2477 = vmatmul.mubr.bf16.gmra.mxu0 %v7509_v8 }
 0x166   : > { %2590 = vmatmul.mubr.bf16.gmra.mxu1 %v7512_v20  ;;  %2486 = vmatprep.mubr.bf16.mxu0 %v7515_v9 }
 0x167   : > { %2599 = vmatprep.mubr.bf16.mxu1 %v7518_v21 }
 0x16d   : > { %2487 = vmatmul.mubr.bf16.gmra.mxu0 %v7525_v15 }
 0x16e   : > { %2600 = vmatmul.mubr.bf16.gmra.mxu1 %v7528_v22  ;;  %2496 = vmatprep.mubr.bf16.mxu0 %v7531_v17 }
 0x16f   : > { %2609 = vmatprep.mubr.bf16.mxu1 %v7534_v23 }
 0x175   : > { %2497 = vmatmul.mubr.bf16.gmra.mxu0 %v7541_v18 }
 0x176   : > { %2610 = vmatmul.mubr.bf16.gmra.mxu1 %v7544_v19  ;;  %2506 = vmatprep.mubr.bf16.mxu0 %v7547_v24 }
 0x177   : > { %2619 = vmatprep.mubr.bf16.mxu1 %v7550_v27 }
 0x17d   : > { %2507 = vmatmul.mubr.bf16.gmra.mxu0 %v7557_v25 }
 0x17e   : > { %2620 = vmatmul.mubr.bf16.gmra.mxu1 %v7560_v30  ;;  %2516 = vmatprep.mubr.bf16.mxu0 %v7563_v26 }
 0x17f   : > { %2629 = vmatprep.mubr.bf16.mxu1 %v7566_v31 }
 0x185   : > { %2517 = vmatmul.mubr.bf16.gmra.mxu0 %v7573_v32 }
 0x186   : > { %2630 = vmatmul.mubr.bf16.gmra.mxu1 %v7576_v28  ;;  %2672 = vmatprep.mubr.bf16.mxu0 %v7449_v63 }
 0x187   : > { %2769 = vmatprep.mubr.bf16.mxu1 %v7452_v7 }
 0x18d   : > { %v1356_v38 = vpop.f32.mrf.mxu0 }
 0x18e   : > { %v1469_v39 = vpop.f32.mrf.mxu1 }
 0x18f   : > { %v7590_v42 = vadd.f32 %v1469_v39, %v1356_v38  ;;  %v1358_v43 = vpop.f32.mrf.mxu0 }
 0x190   : > { %v1471_v44 = vpop.f32.mrf.mxu1 }
 0x191   : > { %v7592_v45 = vadd.f32 %v1471_v44, %v1358_v43  ;;  %v1360_v48 = vpop.f32.mrf.mxu0  ;;  %v6373_v43 = vld [vmem:[%s7120_s6 + $0x578] ss:$12 sps:$4 sm:$0xff]  }
 0x192   : > { %v1473_v50 = vpop.f32.mrf.mxu1  ;;  %5650 = vmatprep.subr.bf16.mxu1 %v6373_v43 }
 0x193   : > { %v7598_v54 = vadd.f32 %v1473_v50, %v1360_v48  ;;  %v1362_v55 = vpop.f32.mrf.mxu0  ;;  %v6375_v48 = vld [vmem:[%s7120_s6 + $0x4b8] ss:$12 sps:$4 sm:$0xff]  }
 0x194   : > { %v1475_v56 = vpop.f32.mrf.mxu1  ;;  %5651 = vmatpush3.bf16.msra.mxu1 %v6375_v48 }
 0x195   : > { %v7600_v57 = vadd.f32 %v1475_v56, %v1362_v55  ;;  %v1366_v60 = vpop.f32.mrf.mxu0  ;;  %v6376_v55 = vld [vmem:[%s7120_s6 + $0x3e0] ss:$12 sps:$4 sm:$0xff]  }
 0x196   : > { %v1479_v61 = vpop.f32.mrf.mxu1  ;;  %v6377_v56 = vld [vmem:[%s7120_s6 + $0x560] ss:$12 sps:$4 sm:$0xff]   ;;  %5588 = vmatprep.subr.bf16.mxu0 %v6376_v55 }
 0x197   : > { %v7606_v63 = vadd.f32 %v1479_v61, %v1366_v60  ;;  %v1368_v7 = vpop.f32.mrf.mxu0  ;;  %v6378_v60 = vld [vmem:[%s7120_s6 + $0x320] ss:$12 sps:$4 sm:$0xff]   ;;  %5652 = vmatprep.subr.bf16.mxu1 %v6377_v56 }
 0x198   : > { %v1481_v0 = vpop.f32.mrf.mxu1  ;;  %v6379_v61 = vld [vmem:[%s7120_s6 + $0x4a0] ss:$12 sps:$4 sm:$0xff]   ;;  %5589 = vmatpush3.bf16.msra.mxu0 %v6378_v60 }
 0x199   : > { %9069 = vst [vmem:[#allocation26_spill] sm:$0xff] %v7606_v63  ;;  %v7608_v1 = vadd.f32 %v1481_v0, %v1368_v7  ;;  %v1370_v34 = vpop.f32.mrf.mxu0  ;;  %5653 = vmatpush3.bf16.msra.mxu1 %v6379_v61  ;;  %v6380_v0 = vld [vmem:[%s7120_s6 + $0x3c8] ss:$12 sps:$4 sm:$0xff]  }
 0x19a   : > { %v1483_v35 = vpop.f32.mrf.mxu1  ;;  %5590 = vmatprep.subr.bf16.mxu0 %v6380_v0  ;;  %5654 = vmatprep.subr.bf16.mxu1 %v6381_v29 }
 0x19b   : > { %v7614_v38 = vadd.f32 %v1483_v35, %v1370_v34  ;;  %v7616_v39 = vpop.f32.mrf.mxu0  ;;  %v6382_v35 = vld [vmem:[%s7120_s6 + $0x308] ss:$12 sps:$4 sm:$0xff]   ;;  %s6731_s6 = scalar_lea.vmem %s8864_s18, 16384 }
 0x19c   : > { %v7618_v40 = vpop.f32.mrf.mxu1  ;;  %5591 = vmatpush3.bf16.msra.mxu0 %v6382_v35  ;;  %p6732_p11 = scmp.ne.s32.totalorder %s8864_s18, %s6731_s6 }
 0x19d   : > { %9070 = vst [vmem:[#allocation27_spill] sm:$0xff] %v7614_v38  ;;  %v1376_v44 = vpop.f32.mrf.mxu0  ;;  %5655 = vmatpush3.bf16.msra.mxu1 %v6383_v36 }
 0x19e   : > { %v1489_v46 = vpop.f32.mrf.mxu1  ;;  %p6733_p10 = pnand %p6732_p11, %p7064_p13 }
 0x19f   : > { %v7624_v50 = vadd.f32 %v1489_v46, %v1376_v44  ;;  %v7626_v52 = vpop.f32.mrf.mxu0  ;;  %2673 = vmatmul.mubr.bf16.vlgmr.msra.gmra.mxu0 %v7459_v10 }
 0x1a0   : > { %v7628_v53 = vpop.f32.mrf.mxu1  ;;  %2770 = vmatmul.mubr.bf16.vlgmr.msra.gmra.mxu1 %v7462_v11  ;;  %2680 = vmatprep.mubr.bf16.mxu0 %v7467_v2  ;;  %p6734_p12 = pneg %p6733_p10 }
 0x1a1   : > { %v1380_v58 = vpop.f32.mrf.mxu0  ;;  %2777 = vmatprep.mubr.bf16.mxu1 %v7470_v5 }
 0x1a2   : > { %v1493_v59 = vpop.f32.mrf.mxu1 }
 0x1a3   : > { %v7634_v6 = vadd.f32 %v1493_v59, %v1380_v58  ;;  %v7636_v62 = vpop.f32.mrf.mxu0 }
 0x1a4   : > { %v7638_v7 = vpop.f32.mrf.mxu1 }
 0x1a5   : > { %v1386_v33 = vpop.f32.mrf.mxu0 }
 0x1a6   : > { %v1499_v34 = vpop.f32.mrf.mxu1 }
 0x1a7   : > { %v7644_v37 = vadd.f32 %v1499_v34, %v1386_v33  ;;  %v7646_v41 = vpop.f32.mrf.mxu0  ;;  %2681 = vmatmul.mubr.bf16.gmra.mxu0 %v7477_v12 }
 0x1a8   : > { %v7648_v43 = vpop.f32.mrf.mxu1  ;;  %2778 = vmatmul.mubr.bf16.gmra.mxu1 %v7480_v13  ;;  %2688 = vmatprep.mubr.bf16.mxu0 %v7483_v14 }
 0x1a9   : > { %v1390_v44 = vpop.f32.mrf.mxu0  ;;  %2785 = vmatprep.mubr.bf16.mxu1 %v7486_v49 }
 0x1aa   : > { %v1503_v46 = vpop.f32.mrf.mxu1 }
 0x1ab   : > { %v7650_v47 = vadd.f32 %v1503_v46, %v1390_v44  ;;  %v7654_v48 = vpop.f32.mrf.mxu0 }
 0x1ac   : > { %v7656_v55 = vpop.f32.mrf.mxu1 }
 0x1ad   : > { %v1396_v56 = vpop.f32.mrf.mxu0 }
 0x1ae   : > { %v1509_v58 = vpop.f32.mrf.mxu1 }
 0x1af   : > { %v7660_v59 = vadd.f32 %v1509_v58, %v1396_v56  ;;  %v7662_v60 = vpop.f32.mrf.mxu0  ;;  %2689 = vmatmul.mubr.bf16.gmra.mxu0 %v7493_v51 }
 0x1b0   : > { %v7664_v61 = vpop.f32.mrf.mxu1  ;;  %2786 = vmatmul.mubr.bf16.gmra.mxu1 %v7496_v3  ;;  %2696 = vmatprep.mubr.bf16.mxu0 %v7499_v4 }
 0x1b1   : > { %v1400_v0 = vpop.f32.mrf.mxu0  ;;  %2793 = vmatprep.mubr.bf16.mxu1 %v7502_v16 }
 0x1b2   : > { %v1513_v10 = vpop.f32.mrf.mxu1 }
 0x1b3   : > { %v7666_v29 = vadd.f32 %v1513_v10, %v1400_v0  ;;  %v1402_v11 = vpop.f32.mrf.mxu0 }
 0x1b4   : > { %v1515_v2 = vpop.f32.mrf.mxu1 }
 0x1b5   : > { %v1406_v5 = vpop.f32.mrf.mxu0 }
 0x1b6   : > { %v1519_v33 = vpop.f32.mrf.mxu1 }
 0x1b7   : > { %v7672_v34 = vadd.f32 %v1519_v33, %v1406_v5  ;;  %v1408_v35 = vpop.f32.mrf.mxu0  ;;  %2697 = vmatmul.mubr.bf16.gmra.mxu0 %v7509_v8 }
 0x1b8   : > { %v1521_v36 = vpop.f32.mrf.mxu1  ;;  %2794 = vmatmul.mubr.bf16.gmra.mxu1 %v7512_v20  ;;  %2704 = vmatprep.mubr.bf16.mxu0 %v7515_v9 }
 0x1b9   : > { %v1410_v44 = vpop.f32.mrf.mxu0  ;;  %2801 = vmatprep.mubr.bf16.mxu1 %v7518_v21 }
 0x1ba   : > { %v1523_v46 = vpop.f32.mrf.mxu1 }
 0x1bb   : > { %v7674_v56 = vadd.f32 %v1523_v46, %v1410_v44  ;;  %v1412_v12 = vpop.f32.mrf.mxu0 }
 0x1bc   : > { %v1525_v13 = vpop.f32.mrf.mxu1 }
 0x1bd   : > { %v1416_v14 = vpop.f32.mrf.mxu0  ;;  %v7698_v8 = vadd.f32 %v1525_v13, %v1412_v12  ;;  %v7710_v12 = vadd.f32 %v1515_v2, %v1402_v11  ;;  %v7724_v11 = vadd.f32 %v1521_v36, %v1408_v35 }
 0x1be   : > { %v1529_v49 = vpop.f32.mrf.mxu1 }
 0x1bf   : > { %v7680_v58 = vadd.f32 %v1529_v49, %v1416_v14  ;;  %v1418_v0 = vpop.f32.mrf.mxu0  ;;  %2705 = vmatmul.mubr.bf16.gmra.mxu0 %v7525_v15 }
 0x1c0   : > { %v1531_v10 = vpop.f32.mrf.mxu1  ;;  %2802 = vmatmul.mubr.bf16.gmra.mxu1 %v7528_v22  ;;  %2712 = vmatprep.mubr.bf16.mxu0 %v7531_v17  ;;  %v7722_v22 = vadd.f32 %v7656_v55, %v7654_v48  ;;  %v7738_v55 = vadd.f32 %v7664_v61, %v7662_v60 }
 0x1c1   : > { %9071 = vst [vmem:[#allocation28_spill] sm:$0xff] %v7680_v58  ;;  %v7682_v5 = vadd.f32 %v1531_v10, %v1418_v0  ;;  %v1420_v33 = vpop.f32.mrf.mxu0  ;;  %2809 = vmatprep.mubr.bf16.mxu1 %v7534_v23 }
 0x1c2   : > { %v1533_v44 = vpop.f32.mrf.mxu1 }
 0x1c3   : > { %v7684_v46 = vadd.f32 %v1533_v44, %v1420_v33  ;;  %3099 = vrot.lane.b32.xlu1 %v7682_v5, %s6871_s13  ;;  %v1422_v51 = vpop.f32.mrf.mxu0 }
 0x1c4   : > { %v1535_v3 = vpop.f32.mrf.mxu1 }
 0x1c5   : > { %9072 = vst [vmem:[#allocation29_spill] sm:$0xff] %v7684_v46  ;;  %v7691_v4 = vadd.f32 %v1535_v3, %v1422_v51  ;;  %v1426_v16 = vpop.f32.mrf.mxu0 }
 0x1c6   : > { %v1539_v14 = vpop.f32.mrf.mxu1 }
 0x1c7   : > { %v7694_v49 = vadd.f32 %v1539_v14, %v1426_v16  ;;  %3101 = vrot.lane.b32.xlu1 %v7691_v4, %s6871_s13  ;;  %v1428_v0 = vpop.f32.mrf.mxu0  ;;  %2713 = vmatmul.mubr.bf16.gmra.mxu0 %v7541_v18  ;;  %v7748_v18 = vadd.f32 %v7618_v40, %v7616_v39 }
 0x1c8   : > { %v1541_v10 = vpop.f32.mrf.mxu1  ;;  %2810 = vmatmul.mubr.bf16.gmra.mxu1 %v7544_v19  ;;  %2720 = vmatprep.mubr.bf16.mxu0 %v7547_v24  ;;  %v7752_v24 = vadd.f32 %v7648_v43, %v7646_v41  ;;  %v7764_v41 = vadd.f32 %v7628_v53, %v7626_v52 }
 0x1c9   : > { %9073 = vst [vmem:[#allocation30_spill] sm:$0xff] %v7694_v49  ;;  %v7700_v33 = vadd.f32 %v1541_v10, %v1428_v0  ;;  %v1430_v20 = vpop.f32.mrf.mxu0  ;;  %2817 = vmatprep.mubr.bf16.mxu1 %v7550_v27  ;;  %v7903_v49 = vld [vmem:[#allocation8 + $0x50] sm:$0xff] }
 0x1ca   : > { %v1543_v44 = vpop.f32.mrf.mxu1  ;;  %9113 = vst [vmem:[#allocation70_spill] sm:$0xff] %v7903_v49 }
 0x1cb   : > { %v7702_v9 = vadd.f32 %v1543_v44, %v1430_v20  ;;  %3097 = vrot.lane.b32.xlu1 %v7698_v8, %s6871_s13  ;;  %3103 = vrot.lane.b32.xlu0 %v7700_v33, %s6871_s13  ;;  %v1432_v21 = vpop.f32.mrf.mxu0  ;;  %v7732_v20 = vadd.f32 %v7638_v7, %v7636_v62 }
 0x1cc   : > { %v1545_v51 = vpop.f32.mrf.mxu1 }
 0x1cd   : > { %9074 = vst [vmem:[#allocation31_spill] sm:$0xff] %v7702_v9  ;;  %v7712_v13 = vadd.f32 %v1545_v51, %v1432_v21  ;;  %v5464_v3 = vpop.f32.mrf.mxu0 }
 0x1ce   : > { %v5528_v16 = vpop.f32.mrf.mxu1 }
 0x1cf   : > { %3093 = vrot.lane.b32.xlu1 %v7710_v12, %s6871_s13  ;;  %3105 = vrot.lane.b32.xlu0 %v7712_v13, %s6871_s13  ;;  %v5465_v14 = vpop.f32.mrf.mxu0 }
 0x1d0   : > { %v5529_v15 = vpop.f32.mrf.mxu1  ;;  %v5466_v2 = vadd.f32 %v5465_v14, %v5464_v3  ;;  %2721 = vmatmul.mubr.bf16.gmra.mxu0 %v7557_v25  ;;  %2818 = vmatmul.mubr.bf16.gmra.mxu1 %v7560_v30 }
 0x1d1   : > { %v5530_v17 = vadd.f32 %v5529_v15, %v5528_v16  ;;  %v5467_v0 = vpop.f32.mrf.mxu0  ;;  %2728 = vmatprep.mubr.bf16.mxu0 %v7563_v26  ;;  %2825 = vmatprep.mubr.bf16.mxu1 %v7566_v31 }
 0x1d2   : > { %v5531_v23 = vpop.f32.mrf.mxu1 }
 0x1d3   : > { %v1680_v10 = vadd.f32 %v5530_v17, %v5466_v2  ;;  %3089 = vrot.lane.b32.xlu1 %v7722_v22, %s6871_s13  ;;  %3095 = vrot.lane.b32.xlu0 %v7724_v11, %s6871_s13  ;;  %v5468_v44 = vpop.f32.mrf.mxu0 }
 0x1d4   : > { %v5532_v48 = vpop.f32.mrf.mxu1  ;;  %v5469_v35 = vadd.f32 %v5468_v44, %v5467_v0 }
 0x1d5   : > { %v5533_v36 = vadd.f32 %v5532_v48, %v5531_v23  ;;  %v5470_v21 = vpop.f32.mrf.mxu0 }
 0x1d6   : > { %v5534_v51 = vpop.f32.mrf.mxu1 }
 0x1d7   : > { %v1683_v62 = vadd.f32 %v5533_v36, %v5469_v35  ;;  %3085 = vrot.lane.b32.xlu1 %v7732_v20, %s6871_s13  ;;  %3091 = vrot.lane.b32.xlu0 %v7738_v55, %s6871_s13  ;;  %v5471_v19 = vpop.f32.mrf.mxu0 }
 0x1d8   : > { %v5535_v7 = vpop.f32.mrf.mxu1  ;;  %v5472_v27 = vadd.f32 %v5471_v19, %v5470_v21  ;;  %2729 = vmatmul.mubr.bf16.gmra.mxu0 %v7573_v32  ;;  %2826 = vmatmul.mubr.bf16.gmra.mxu1 %v7576_v28 }
 0x1d9   : > { %v5536_v60 = vadd.f32 %v5535_v7, %v5534_v51  ;;  %v7754_v61 = vpack.c.bf16 %v1683_v62, %v1680_v10  ;;  %v5473_v3 = vpop.f32.mrf.mxu0 }
 0x1da   : > { %v5537_v16 = vpop.f32.mrf.mxu1 }
 0x1db   : > { %9075 = vst [vmem:[#allocation32_spill] sm:$0xff] %v7754_v61  ;;  %v1688_v14 = vadd.f32 %v5536_v60, %v5472_v27  ;;  %3081 = vrot.lane.b32.xlu1 %v7748_v18, %s6871_s13  ;;  %3087 = vrot.lane.b32.xlu0 %v7752_v24, %s6871_s13  ;;  %v5474_v39 = vpop.f32.mrf.mxu0 }
 0x1dc   : > { %v5538_v40 = vpop.f32.mrf.mxu1  ;;  %v5475_v43 = vadd.f32 %v5474_v39, %v5473_v3 }
 0x1dd   : > { %v5539_v15 = vadd.f32 %v5538_v40, %v5537_v16  ;;  %v5476_v2 = vpop.f32.mrf.mxu0 }
 0x1de   : > { %v5540_v17 = vpop.f32.mrf.mxu1 }
 0x1df   : > { %v1691_v0 = vadd.f32 %v5539_v15, %v5475_v43  ;;  %3077 = vrot.lane.b32.xlu1 %v7600_v57, %s6871_s13  ;;  %3083 = vrot.lane.b32.xlu0 %v7764_v41, %s6871_s13  ;;  %v5477_v25 = vpop.f32.mrf.mxu0 }
 0x1e0   : > { %v5541_v30 = vpop.f32.mrf.mxu1  ;;  %v5478_v23 = vadd.f32 %v5477_v25, %v5476_v2 }
 0x1e1   : > { %v5542_v52 = vadd.f32 %v5541_v30, %v5540_v17  ;;  %v7772_v53 = vpack.c.bf16 %v1691_v0, %v1688_v14  ;;  %v5479_v10 = vpop.f32.mrf.mxu0 }
 0x1e2   : > { %v5543_v44 = vpop.f32.mrf.mxu1 }
 0x1e3   : > { %9076 = vst [vmem:[#allocation33_spill] sm:$0xff] %v7772_v53  ;;  %v1696_v26 = vadd.f32 %v5542_v52, %v5478_v23  ;;  %2869 = vrot.lane.b32.xlu1 %v7598_v54, %s6871_s13  ;;  %3079 = vrot.lane.b32.xlu0 %v7608_v1, %s6871_s13  ;;  %v5480_v31 = vpop.f32.mrf.mxu0 }
 0x1e4   : > { %v5544_v48 = vpop.f32.mrf.mxu1  ;;  %v5481_v35 = vadd.f32 %v5480_v31, %v5479_v10 }
 0x1e5   : > { %v5545_v36 = vadd.f32 %v5544_v48, %v5543_v44  ;;  %v5482_v21 = vpop.f32.mrf.mxu0 }
 0x1e6   : > { %v5546_v51 = vpop.f32.mrf.mxu1 }
 0x1e7   : > { %v1699_v62 = vadd.f32 %v5545_v36, %v5481_v35  ;;  %2873 = vrot.lane.b32.xlu1 %v7614_v38, %s6871_s13  ;;  %3075 = vrot.lane.b32.xlu0 %v7592_v45, %s6871_s13  ;;  %v5483_v19 = vpop.f32.mrf.mxu0 }
 0x1e8   : > { %v5547_v7 = vpop.f32.mrf.mxu1  ;;  %v5484_v27 = vadd.f32 %v5483_v19, %v5482_v21 }
 0x1e9   : > { %v5548_v60 = vadd.f32 %v5547_v7, %v5546_v51  ;;  %v7784_v3 = vpack.c.bf16 %v1699_v62, %v1696_v26  ;;  %v5485_v32 = vpop.f32.mrf.mxu0 }
 0x1ea   : > { %v5549_v16 = vpop.f32.mrf.mxu1 }
 0x1eb   : > { %9077 = vst [vmem:[#allocation34_spill] sm:$0xff] %v7784_v3  ;;  %v1704_v28 = vadd.f32 %v5548_v60, %v5484_v27  ;;  %2867 = vrot.lane.b32.xlu0 %v7590_v42, %s6871_s13  ;;  %v5486_v14 = vpop.f32.mrf.mxu0 }
 0x1ec   : > { %v5550_v39 = vpop.f32.mrf.mxu1  ;;  %v5487_v40 = vadd.f32 %v5486_v14, %v5485_v32 }
 0x1ed   : > { %v5551_v43 = vadd.f32 %v5550_v39, %v5549_v16  ;;  %v5488_v15 = vpop.f32.mrf.mxu0 }
 0x1ee   : > { %v5552_v2 = vpop.f32.mrf.mxu1 }
 0x1ef   : > { %v1707_v17 = vadd.f32 %v5551_v43, %v5487_v40  ;;  %2871 = vrot.lane.b32.xlu0 %v7606_v63, %s6871_s13  ;;  %v5489_v0 = vpop.f32.mrf.mxu0 }
 0x1f0   : > { %v5553_v25 = vpop.f32.mrf.mxu1  ;;  %v5490_v30 = vadd.f32 %v5489_v0, %v5488_v15 }
 0x1f1   : > { %v5554_v23 = vadd.f32 %v5553_v25, %v5552_v2  ;;  %v7790_v52 = vpack.c.bf16 %v1707_v17, %v1704_v28  ;;  %v5491_v10 = vpop.f32.mrf.mxu0 }
 0x1f2   : > { %v5555_v44 = vpop.f32.mrf.mxu1 }
 0x1f3   : > { %9078 = vst [vmem:[#allocation35_spill] sm:$0xff] %v7790_v52  ;;  %v1712_v26 = vadd.f32 %v5554_v23, %v5490_v30  ;;  %v5492_v31 = vpop.f32.mrf.mxu0 }
 0x1f4   : > { %v5556_v48 = vpop.f32.mrf.mxu1  ;;  %v5493_v35 = vadd.f32 %v5492_v31, %v5491_v10 }
 0x1f5   : > { %v5557_v36 = vadd.f32 %v5556_v48, %v5555_v44  ;;  %v5494_v21 = vpop.f32.mrf.mxu0 }
 0x1f6   : > { %v5558_v51 = vpop.f32.mrf.mxu1 }
 0x1f7   : > { %v1715_v62 = vadd.f32 %v5557_v36, %v5493_v35  ;;  %v5495_v19 = vpop.f32.mrf.mxu0 }
 0x1f8   : > { %v5559_v7 = vpop.f32.mrf.mxu1  ;;  %v5496_v27 = vadd.f32 %v5495_v19, %v5494_v21 }
 0x1f9   : > { %v5560_v60 = vadd.f32 %v5559_v7, %v5558_v51  ;;  %v7792_v32 = vpack.c.bf16 %v1715_v62, %v1712_v26  ;;  %v5497_v16 = vpop.f32.mrf.mxu0 }
 0x1fa   : > { %v5561_v14 = vpop.f32.mrf.mxu1 }
 0x1fb   : > { %9079 = vst [vmem:[#allocation36_spill] sm:$0xff] %v7792_v32  ;;  %v1720_v28 = vadd.f32 %v5560_v60, %v5496_v27  ;;  %v5498_v39 = vpop.f32.mrf.mxu0 }
 0x1fc   : > { %v5562_v40 = vpop.f32.mrf.mxu1  ;;  %v5499_v43 = vadd.f32 %v5498_v39, %v5497_v16 }
 0x1fd   : > { %v5563_v15 = vadd.f32 %v5562_v40, %v5561_v14  ;;  %v5500_v2 = vpop.f32.mrf.mxu0 }
 0x1fe   : > { %v5564_v17 = vpop.f32.mrf.mxu1 }
 0x1ff   : > { %v1723_v0 = vadd.f32 %v5563_v15, %v5499_v43  ;;  %v5501_v25 = vpop.f32.mrf.mxu0 }
 0x200   : > { %v5565_v30 = vpop.f32.mrf.mxu1  ;;  %v5502_v23 = vadd.f32 %v5501_v25, %v5500_v2 }
 0x201   : > { %v5566_v10 = vadd.f32 %v5565_v30, %v5564_v17  ;;  %v7794_v44 = vpack.c.bf16 %v1723_v0, %v1720_v28  ;;  %v5503_v31 = vpop.f32.mrf.mxu0 }
 0x202   : > { %v5567_v48 = vpop.f32.mrf.mxu1 }
 0x203   : > { %9080 = vst [vmem:[#allocation37_spill] sm:$0xff] %v7794_v44  ;;  %v1728_v26 = vadd.f32 %v5566_v10, %v5502_v23  ;;  %v5504_v35 = vpop.f32.mrf.mxu0 }
 0x204   : > { %v5568_v36 = vpop.f32.mrf.mxu1  ;;  %v5505_v21 = vadd.f32 %v5504_v35, %v5503_v31 }
 0x205   : > { %v5569_v51 = vadd.f32 %v5568_v36, %v5567_v48  ;;  %v5506_v62 = vpop.f32.mrf.mxu0 }
 0x206   : > { %v5570_v19 = vpop.f32.mrf.mxu1 }
 0x207   : > { %v1731_v7 = vadd.f32 %v5569_v51, %v5505_v21  ;;  %v5507_v27 = vpop.f32.mrf.mxu0 }
 0x208   : > { %v5571_v60 = vpop.f32.mrf.mxu1  ;;  %v5508_v16 = vadd.f32 %v5507_v27, %v5506_v62 }
 0x209   : > { %v5572_v14 = vadd.f32 %v5571_v60, %v5570_v19  ;;  %v7796_v39 = vpack.c.bf16 %v1731_v7, %v1728_v26  ;;  %v5509_v40 = vpop.f32.mrf.mxu0 }
 0x20a   : > { %v5573_v43 = vpop.f32.mrf.mxu1 }
 0x20b   : > { %9081 = vst [vmem:[#allocation38_spill] sm:$0xff] %v7796_v39  ;;  %v1736_v28 = vadd.f32 %v5572_v14, %v5508_v16  ;;  %v5510_v15 = vpop.f32.mrf.mxu0 }
 0x20c   : > { %v5574_v2 = vpop.f32.mrf.mxu1  ;;  %v5511_v17 = vadd.f32 %v5510_v15, %v5509_v40 }
 0x20d   : > { %v5575_v0 = vadd.f32 %v5574_v2, %v5573_v43  ;;  %v2448_v25 = vpop.f32.mrf.mxu0 }
 0x20e   : > { %v2561_v30 = vpop.f32.mrf.mxu1 }
 0x20f   : > { %v1739_v23 = vadd.f32 %v5575_v0, %v5511_v17  ;;  %v7798_v10 = vadd.f32 %v2561_v30, %v2448_v25  ;;  %v2450_v31 = vpop.f32.mrf.mxu0 }
 0x210   : > { %v2563_v48 = vpop.f32.mrf.mxu1 }
 0x211   : > { %9082 = vst [vmem:[#allocation39_spill] sm:$0xff] %v7798_v10  ;;  %v7800_v35 = vadd.f32 %v2563_v48, %v2450_v31  ;;  %v7802_v36 = vpack.c.bf16 %v1739_v23, %v1736_v28  ;;  %v2452_v26 = vpop.f32.mrf.mxu0 }
 0x212   : > { %v2565_v21 = vpop.f32.mrf.mxu1 }
 0x213   : > { %9083 = vst [vmem:[#allocation40_spill] sm:$0xff] %v7800_v35  ;;  %9084 = vst [vmem:[#allocation41_spill] sm:$0xff] %v7802_v36  ;;  %v7804_v51 = vadd.f32 %v2565_v21, %v2452_v26  ;;  %v7806_v62 = vpop.f32.mrf.mxu0  ;;  %v7878_v35 = vld [vmem:[#allocation8 + $0xf0] sm:$0xff] }
 0x214   : > { %9086 = vst [vmem:[#allocation43_spill] sm:$0xff] %v7806_v62  ;;  %v7808_v19 = vpop.f32.mrf.mxu1  ;;  %9106 = vst [vmem:[#allocation63_spill] sm:$0xff] %v7878_v35 }
 0x215   : > { %9085 = vst [vmem:[#allocation42_spill] sm:$0xff] %v7804_v51  ;;  %9087 = vst [vmem:[#allocation44_spill] sm:$0xff] %v7808_v19  ;;  %v2458_v7 = vpop.f32.mrf.mxu0 }
 0x216   : > { %v2571_v27 = vpop.f32.mrf.mxu1 }
 0x217   : > { %v7810_v60 = vadd.f32 %v2571_v27, %v2458_v7  ;;  %v2460_v16 = vpop.f32.mrf.mxu0 }
 0x218   : > { %v2573_v14 = vpop.f32.mrf.mxu1 }
 0x219   : > { %9088 = vst [vmem:[#allocation45_spill] sm:$0xff] %v7810_v60  ;;  %v7812_v40 = vadd.f32 %v2573_v14, %v2460_v16  ;;  %v2462_v43 = vpop.f32.mrf.mxu0 }
 0x21a   : > { %v2575_v15 = vpop.f32.mrf.mxu1 }
 0x21b   : > { %9089 = vst [vmem:[#allocation46_spill] sm:$0xff] %v7812_v40  ;;  %v7814_v28 = vadd.f32 %v2575_v15, %v2462_v43  ;;  %v7816_v2 = vpop.f32.mrf.mxu0 }
 0x21c   : > { %9091 = vst [vmem:[#allocation48_spill] sm:$0xff] %v7816_v2  ;;  %v7818_v17 = vpop.f32.mrf.mxu1 }
 0x21d   : > { %9090 = vst [vmem:[#allocation47_spill] sm:$0xff] %v7814_v28  ;;  %9092 = vst [vmem:[#allocation49_spill] sm:$0xff] %v7818_v17  ;;  %v2468_v0 = vpop.f32.mrf.mxu0 }
 0x21e   : > { %v2581_v25 = vpop.f32.mrf.mxu1 }
 0x21f   : > { %v7820_v30 = vadd.f32 %v2581_v25, %v2468_v0  ;;  %v2470_v23 = vpop.f32.mrf.mxu0 }
 0x220   : > { %v2583_v31 = vpop.f32.mrf.mxu1 }
 0x221   : > { %9093 = vst [vmem:[#allocation50_spill] sm:$0xff] %v7820_v30  ;;  %v7822_v48 = vadd.f32 %v2583_v31, %v2470_v23  ;;  %v2472_v26 = vpop.f32.mrf.mxu0 }
 0x222   : > { %v2585_v21 = vpop.f32.mrf.mxu1 }
 0x223   : > { %9094 = vst [vmem:[#allocation51_spill] sm:$0xff] %v7822_v48  ;;  %v7824_v7 = vadd.f32 %v2585_v21, %v2472_v26  ;;  %v7826_v27 = vpop.f32.mrf.mxu0 }
 0x224   : > { %v7828_v16 = vpop.f32.mrf.mxu1 }
 0x225   : > { %9095 = vst [vmem:[#allocation52_spill] sm:$0xff] %v7824_v7  ;;  %v2478_v14 = vpop.f32.mrf.mxu0 }
 0x226   : > { %v2591_v43 = vpop.f32.mrf.mxu1 }
 0x227   : > { %v7830_v15 = vadd.f32 %v2591_v43, %v2478_v14  ;;  %v2480_v61 = vpop.f32.mrf.mxu0 }
 0x228   : > { %v2593_v53 = vpop.f32.mrf.mxu1 }
 0x229   : > { %9096 = vst [vmem:[#allocation53_spill] sm:$0xff] %v7830_v15  ;;  %v7832_v0 = vadd.f32 %v2593_v53, %v2480_v61  ;;  %v2482_v25 = vpop.f32.mrf.mxu0 }
 0x22a   : > { %v2595_v3 = vpop.f32.mrf.mxu1 }
 0x22b   : > { %v7834_v23 = vadd.f32 %v2595_v3, %v2482_v25  ;;  %v7836_v31 = vpop.f32.mrf.mxu0  ;;  %v7852_v25 = vld [vmem:[#allocation8 + $0xe0] sm:$0xff] }
 0x22c   : > { %v7838_v26 = vpop.f32.mrf.mxu1  ;;  %9100 = vst [vmem:[#allocation57_spill] sm:$0xff] %v7852_v25 }
 0x22d   : > { %9097 = vst [vmem:[#allocation54_spill] sm:$0xff] %v7834_v23  ;;  %v2488_v21 = vpop.f32.mrf.mxu0 }
 0x22e   : > { %v2601_v52 = vpop.f32.mrf.mxu1 }
 0x22f   : > { %v7840_v32 = vadd.f32 %v2601_v52, %v2488_v21  ;;  %v7842_v7 = vpop.f32.mrf.mxu0  ;;  %v7856_v52 = vld [vmem:[#allocation8 + $0xe8] sm:$0xff] }
 0x230   : > { %v7844_v14 = vpop.f32.mrf.mxu1  ;;  %9102 = vst [vmem:[#allocation59_spill] sm:$0xff] %v7856_v52 }
 0x231   : > { %9098 = vst [vmem:[#allocation55_spill] sm:$0xff] %v7840_v32  ;;  %v2492_v43 = vpop.f32.mrf.mxu0 }
 0x232   : > { %v2605_v15 = vpop.f32.mrf.mxu1 }
 0x233   : > { %v7846_v61 = vadd.f32 %v2605_v15, %v2492_v43  ;;  %v7848_v53 = vpop.f32.mrf.mxu0  ;;  %v7863_v15 = vld [vmem:[#allocation8 + $0x60] sm:$0xff]  ;;  %v7865_v43 = vld [vmem:[#allocation8 + $0x68] sm:$0xff] }
 0x234   : > { %v7850_v3 = vpop.f32.mrf.mxu1  ;;  %9103 = vst [vmem:[#allocation60_spill] sm:$0xff] %v7863_v15  ;;  %9104 = vst [vmem:[#allocation61_spill] sm:$0xff] %v7865_v43  ;;  %v3151_v60 = vmul.f32 %v7863_v15, %v7682_v5 }
 0x235   : > { %9099 = vst [vmem:[#allocation56_spill] sm:$0xff] %v7846_v61  ;;  %v3100_v23 = vpop.permute.xlu1 %3099  ;;  %v2498_v44 = vpop.f32.mrf.mxu0 }
 0x236   : > { %v2611_v30 = vpop.f32.mrf.mxu1  ;;  %v3183_v21 = vmul.f32 %v3100_v23, %v7852_v25 }
 0x237   : > { %v7854_v28 = vadd.f32 %v2611_v30, %v2498_v44  ;;  %v7859_v32 = vpop.f32.mrf.mxu0  ;;  %v3152_v44 = vmul.f32 %v7865_v43, %v7691_v4 }
 0x238   : > { %v7861_v39 = vpop.f32.mrf.mxu1  ;;  %v3215_v25 = vadd.f32 %v3183_v21, %v3151_v60  ;;  %v7887_v21 = vld [vmem:[#allocation8 + $0x70] sm:$0xff] }
 0x239   : > { %9101 = vst [vmem:[#allocation58_spill] sm:$0xff] %v7854_v28  ;;  %v3102_v61 = vpop.permute.xlu1 %3101  ;;  %v2502_v28 = vpop.f32.mrf.mxu0  ;;  %9109 = vst [vmem:[#allocation66_spill] sm:$0xff] %v7887_v21 }
 0x23a   : > { %v3184_v30 = vmul.f32 %v3102_v61, %v7856_v52  ;;  %v2615_v51 = vpop.f32.mrf.mxu1  ;;  %v7884_v61 = vld [vmem:[#allocation8 + $0xf8] sm:$0xff] }
 0x23b   : > { %v7872_v23 = vadd.f32 %v2615_v51, %v2502_v28  ;;  %v7874_v36 = vpop.f32.mrf.mxu0  ;;  %9108 = vst [vmem:[#allocation65_spill] sm:$0xff] %v7884_v61 }
 0x23c   : > { %v3216_v10 = vadd.f32 %v3184_v30, %v3152_v44  ;;  %v7876_v19 = vpop.f32.mrf.mxu1  ;;  %v7889_v44 = vld [vmem:[#allocation8 + $0x78] sm:$0xff] }
 0x23d   : > { %9105 = vst [vmem:[#allocation62_spill] sm:$0xff] %v7872_v23  ;;  %v3098_v62 = vpop.permute.xlu1 %3097  ;;  %v3104_v38 = vpop.permute.xlu0 %3103  ;;  %9110 = vst [vmem:[#allocation67_spill] sm:$0xff] %v7889_v44  ;;  %v7891_v30 = vld [vmem:[#allocation8 + $0xd8] sm:$0xff] }
 0x23e   : > { %v2508_v5 = vpop.f32.mrf.mxu0  ;;  %v2621_v15 = vpop.f32.mrf.mxu1  ;;  %v7880_v17 = vpack.c.bf16 %v3216_v10, %v3215_v25  ;;  %v3185_v51 = vmul.f32 %v3104_v38, %v7878_v35  ;;  %9111 = vst [vmem:[#allocation68_spill] sm:$0xff] %v7891_v30  ;;  %v3153_v10 = vmul.f32 %v7887_v21, %v7700_v33  ;;  %v3154_v25 = vmul.f32 %v7889_v44, %v7712_v13  ;;  %v7905_v33 = vld [vmem:[#allocation8 + $0x58] sm:$0xff]  ;;  %v7907_v21 = vld [vmem:[#allocation8 + $0xc8] sm:$0xff] }
 0x23f   : > { %v7882_v4 = vadd.f32 %v2621_v15, %v2508_v5  ;;  %v3182_v23 = vmul.f32 %v3098_v62, %v7891_v30  ;;  %9114 = vst [vmem:[#allocation71_spill] sm:$0xff] %v7907_v21  ;;  %v7916_v30 = vld [vmem:[#allocation8 + $0xc0] sm:$0xff] }
 0x240   : > { %v2510_v60 = vpop.f32.mrf.mxu0  ;;  %v2623_v28 = vpop.f32.mrf.mxu1  ;;  %v3217_v2 = vadd.f32 %v3185_v51, %v3153_v10 }
 0x241   : > { %9107 = vst [vmem:[#allocation64_spill] sm:$0xff] %v7882_v4  ;;  %v3094_v52 = vpop.permute.xlu1 %3093  ;;  %v3106_v43 = vpop.permute.xlu0 %3105  ;;  %v7900_v4 = vld [vmem:[#allocation8 + $0xd0] sm:$0xff] }
 0x242   : > { %v3186_v15 = vmul.f32 %v3106_v43, %v7884_v61  ;;  %v2512_v5 = vpop.f32.mrf.mxu0  ;;  %v2625_v38 = vpop.f32.mrf.mxu1  ;;  %v3180_v44 = vmul.f32 %v3094_v52, %v7907_v21 }
 0x243   : > { %v7898_v35 = vadd.f32 %v2625_v38, %v2512_v5  ;;  %v3149_v5 = vmul.f32 %v7903_v49, %v7724_v11  ;;  %v3150_v38 = vmul.f32 %v7905_v33, %v7698_v8  ;;  %v7919_v11 = vld [vmem:[#allocation8 + $0x40] sm:$0xff]  ;;  %v7921_v49 = vld [vmem:[#allocation8 + $0x48] sm:$0xff]  ;;  %v7923_v8 = vld [vmem:[#allocation8 + $0xb8] sm:$0xff] }
 0x244   : > { %v3218_v63 = vadd.f32 %v3186_v15, %v3154_v25  ;;  %v2514_v40 = vpop.f32.mrf.mxu0  ;;  %v2627_v9 = vpop.f32.mrf.mxu1  ;;  %9116 = vst [vmem:[#allocation73_spill] sm:$0xff] %v7919_v11  ;;  %9117 = vst [vmem:[#allocation74_spill] sm:$0xff] %v7921_v49  ;;  %v3148_v52 = vmul.f32 %v7921_v49, %v7710_v12  ;;  %v7940_v49 = vld [vmem:[#allocation8 + $0x30] sm:$0xff] }
 0x245   : > { %9112 = vst [vmem:[#allocation69_spill] sm:$0xff] %v7898_v35  ;;  %v3090_v13 = vpop.permute.xlu1 %3089  ;;  %v3096_v43 = vpop.permute.xlu0 %3095  ;;  %v3214_v61 = vadd.f32 %v3182_v23, %v3150_v38  ;;  %v3147_v23 = vmul.f32 %v7919_v11, %v7738_v55  ;;  %v7944_v11 = vadd.f32 %v2623_v28, %v2510_v60  ;;  %v7961_v60 = vld [vmem:[#allocation8 + $0xa0] sm:$0xff] }
 0x246   : > { %v3181_v62 = vmul.f32 %v3096_v43, %v7900_v4  ;;  %v2518_v51 = vpop.f32.mrf.mxu0  ;;  %v2631_v10 = vpop.f32.mrf.mxu1  ;;  %v3242_v25 = vpack.c.bf16 %v3218_v63, %v3217_v2  ;;  %v3178_v55 = vmul.f32 %v3090_v13, %v7923_v8 }
 0x247   : > { %v7914_v15 = vadd.f32 %v2631_v10, %v2518_v51 }
 0x248   : > { %v3213_v35 = vadd.f32 %v3181_v62, %v3149_v5  ;;  %v2520_v46 = vpop.f32.mrf.mxu0  ;;  %v2633_v58 = vpop.f32.mrf.mxu1  ;;  %5768 = vmatprep.subr.bf16.mxu0 %v3242_v25 }
 0x249   : > { %9115 = vst [vmem:[#allocation72_spill] sm:$0xff] %v7914_v15  ;;  %v7925_v43 = vadd.f32 %v2633_v58, %v2520_v46  ;;  %v3086_v63 = vpop.permute.xlu1 %3085  ;;  %v3092_v2 = vpop.permute.xlu0 %3091  ;;  %5769 = vmatpush3.bf16.xpose.msra.mxu0 %v3242_v25  ;;  %v7937_v58 = vld [vmem:[#allocation8 + $0xb0] sm:$0xff]  ;;  %v3212_v46 = vadd.f32 %v3180_v44, %v3148_v52  ;;  %v3145_v44 = vmul.f32 %v7940_v49, %v7752_v24  ;;  %v7966_v24 = vld [vmem:[#allocation8 + $0x28] sm:$0xff] }
 0x24a   : > { %v3179_v5 = vmul.f32 %v3092_v2, %v7916_v30  ;;  %v2522_v38 = vpop.f32.mrf.mxu0  ;;  %v2635_v62 = vpop.f32.mrf.mxu1  ;;  %5770 = vmatprep.subr.bf16.mxu0 %v7880_v17  ;;  %v3240_v51 = vpack.c.bf16 %v3214_v61, %v3213_v35  ;;  %v7942_v2 = vld [vmem:[#allocation8 + $0x38] sm:$0xff]  ;;  %v7946_v35 = vld [vmem:[#allocation8 + $0xa8] sm:$0xff] }
 0x24b   : > { %v7933_v10 = vadd.f32 %v2635_v62, %v2522_v38  ;;  %3135 = vrot.lane.b32.xlu0 %v7925_v43, %s6871_s13  ;;  %v3146_v13 = vmul.f32 %v7942_v2, %v7722_v22  ;;  %v7968_v22 = vadd.f32 %v2627_v9, %v2514_v40 }
 0x24c   : > { %v3211_v25 = vadd.f32 %v3179_v5, %v3147_v23  ;;  %v2524_v21 = vpop.f32.mrf.mxu0  ;;  %v2637_v12 = vpop.f32.mrf.mxu1 }
 0x24d   : > { %9118 = vst [vmem:[#allocation75_spill] sm:$0xff] %v7933_v10  ;;  %v7948_v61 = vadd.f32 %v2637_v12, %v2524_v21  ;;  %v7950_v38 = vpop.permute.xlu1 %3081  ;;  %v3088_v62 = vpop.permute.xlu0 %3087  ;;  %v3210_v28 = vadd.f32 %v3178_v55, %v3146_v13  ;;  %v3176_v21 = vmul.f32 %v3086_v63, %v7946_v35  ;;  %v7964_v12 = vld [vmem:[#allocation8 + $0x20] sm:$0xff]  ;;  %v3144_v55 = vmul.f32 %v7966_v24, %v7732_v20  ;;  %v7988_v20 = vld [vmem:[#allocation8 + $0x8] sm:$0xff] }
 0x24e   : > { %v3177_v23 = vmul.f32 %v3088_v62, %v7937_v58  ;;  %v3239_v52 = vpack.c.bf16 %v3212_v46, %v3211_v25  ;;  %v3143_v25 = vmul.f32 %v7964_v12, %v7764_v41  ;;  %9119 = vst [vmem:[#allocation76_spill] sm:$0xff] %v7988_v20  ;;  %v7992_v41 = vadd.f32 %v7861_v39, %v7859_v32 }
 0x24f   : > { %3137 = vrot.lane.b32.xlu1 %v7948_v61, %s6871_s13  ;;  %3131 = vrot.lane.b32.xlu0 %v7944_v11, %s6871_s13  ;;  %v3208_v9 = vadd.f32 %v3176_v21, %v3144_v55  ;;  %v8007_v32 = vadd.f32 %v7844_v14, %v7842_v7  ;;  %v8011_v39 = vadd.f32 %v7876_v19, %v7874_v36  ;;  %v8030_v14 = vld [vmem:[#allocation8 + $0x90] sm:$0xff] }
 0x250   : > { %v3209_v5 = vadd.f32 %v3177_v23, %v3145_v44  ;;  %v8024_v36 = vadd.f32 %v7850_v3, %v7848_v53  ;;  %9123 = vst [vmem:[#allocation80_spill] sm:$0xff] %v8030_v14  ;;  %v8039_v3 = vld [vmem:[#allocation8 + $0x10] sm:$0xff] }
 0x251   : > { %v7970_v62 = vpop.permute.xlu1 %3077  ;;  %v3084_v46 = vpop.permute.xlu0 %3083  ;;  %5771 = vmatpush3.bf16.xpose.msra.mxu0 %v7880_v17  ;;  %9125 = vst [vmem:[#allocation82_spill] sm:$0xff] %v8039_v3 }
 0x252   : > { %v3175_v63 = vmul.f32 %v3084_v46, %v7961_v60  ;;  %5772 = vmatprep.subr.bf16.mxu0 %v3240_v51  ;;  %v3238_v44 = vpack.c.bf16 %v3210_v28, %v3209_v5  ;;  %v7994_v28 = vld [vmem:[#allocation8 + $0x88] sm:$0xff]  ;;  %v7997_v46 = vld [vmem:[#allocation8] sm:$0xff] }
 0x253   : > { %3133 = vrot.lane.b32.xlu1 %v7968_v22, %s6871_s13  ;;  %2875 = vrot.lane.b32.xlu0 %v7624_v50, %s6871_s13  ;;  %9120 = vst [vmem:[#allocation77_spill] sm:$0xff] %v7994_v28  ;;  %9121 = vst [vmem:[#allocation78_spill] sm:$0xff] %v7997_v46 }
 0x254   : > { %v3207_v40 = vadd.f32 %v3175_v63, %v3143_v25  ;;  %v2932_v25 = vmul.f32 %v7988_v20, %v7598_v54  ;;  %v2931_v63 = vmul.f32 %v7997_v46, %v7590_v42 }
 0x255   : > { %v3080_v13 = vpop.permute.xlu0 %3079  ;;  %v2870_v23 = vpop.permute.xlu1 %2869 }
 0x256   : > { %v7982_v17 = vpack.c.bf16 %v3208_v9, %v3207_v40  ;;  %v2964_v5 = vmul.f32 %v2870_v23, %v7994_v28  ;;  %v8032_v23 = vld [vmem:[#allocation8 + $0x98] sm:$0xff]  ;;  %v3173_v53 = vmul.f32 %v3080_v13, %v8030_v14 }
 0x257   : > { %2877 = vrot.lane.b32.xlu1 %v7634_v6, %s6871_s13  ;;  %2879 = vrot.lane.b32.xlu0 %v7644_v37, %s6871_s13  ;;  %9124 = vst [vmem:[#allocation81_spill] sm:$0xff] %v8032_v23 }
 0x258   : > { %v2996_v9 = vadd.f32 %v2964_v5, %v2932_v25  ;;  %v3174_v5 = vmul.f32 %v7950_v38, %v8032_v23  ;;  %v8046_v25 = vld [vmem:[#allocation8 + $0x18] sm:$0xff] }
 0x259   : > { %v3076_v21 = vpop.permute.xlu0 %3075  ;;  %5773 = vmatpush3.bf16.xpose.msra.mxu0 %v3240_v51  ;;  %v8013_v51 = vld [vmem:[#allocation8 + $0x80] sm:$0xff] }
 0x25a   : > { %5774 = vmatprep.subr.bf16.mxu0 %v3239_v52  ;;  %9122 = vst [vmem:[#allocation79_spill] sm:$0xff] %v8013_v51  ;;  %v3028_v19 = vmul.f32 0.088388346, %v2996_v9 }
 0x25b   : > { %2881 = vrot.lane.b32.xlu1 %v7650_v47, %s6871_s13  ;;  %3127 = vrot.lane.b32.xlu0 %v7992_v41, %s6871_s13 }
 0x25d   : > { %v2868_v55 = vpop.permute.xlu0 %2867 }
 0x25e   : > { %v2963_v40 = vmul.f32 %v2868_v55, %v8013_v51 }
 0x25f   : > { %3129 = vrot.lane.b32.xlu1 %v8011_v39, %s6871_s13  ;;  %3123 = vrot.lane.b32.xlu0 %v8007_v32, %s6871_s13  ;;  %v5592_v13 = vpop.f32.mrf.mxu0 }
 0x260   : > { %v2995_v54 = vadd.f32 %v2963_v40, %v2931_v63  ;;  %v5656_v55 = vpop.f32.mrf.mxu1 }
 0x261   : > { %5775 = vmatpush3.bf16.xpose.msra.mxu0 %v3239_v52  ;;  %v3141_v52 = vmul.f32 %v8039_v3, %v7608_v1  ;;  %v8056_v1 = vadd.f32 %v7838_v26, %v7836_v31  ;;  %v5593_v38 = vpop.f32.mrf.mxu0  ;;  %v8067_v31 = vadd.f32 %v7828_v16, %v7826_v27 }
 0x262   : > { %v3027_v7 = vmul.f32 0.088388346, %v2995_v54  ;;  %5776 = vmatprep.subr.bf16.mxu0 %v3238_v44  ;;  %v5657_v9 = vpop.f32.mrf.mxu1  ;;  %v3171_v54 = vmul.f32 %v3076_v21, %v8013_v51 }
 0x263   : > { %3125 = vrot.lane.b32.xlu1 %v8024_v36, %s6871_s13  ;;  %2883 = vrot.lane.b32.xlu0 %v7660_v59, %s6871_s13  ;;  %v3205_v63 = vadd.f32 %v3173_v53, %v3141_v52  ;;  %v3172_v53 = vmul.f32 %v7970_v62, %v7994_v28  ;;  %v3140_v52 = vmul.f32 %v7988_v20, %v7600_v57  ;;  %v2872_v28 = vpop.permute.xlu0 %2871 }
 0x264   : > { %v3059_v42 = vpack.c.bf16 %v3028_v19, %v3027_v7  ;;  %v5595_v19 = vpop.f32.mrf.mxu0  ;;  %v5659_v7 = vpop.f32.mrf.mxu1 }
 0x265   : > { %v3204_v62 = vadd.f32 %v3172_v53, %v3140_v52  ;;  %v9130_v53 = vld [vmem:[#allocation46_spill] sm:$0xff] }
 0x266   : > { %5784 = vmatprep.mubr.bf16.mxu0 %v3059_v42  ;;  %v5596_v26 = vpop.f32.mrf.mxu0  ;;  %v5660_v21 = vpop.f32.mrf.mxu1 }
 0x267   : > { %2885 = vrot.lane.b32.xlu1 %v7666_v29, %s6871_s13  ;;  %2887 = vrot.lane.b32.xlu0 %v7672_v34, %s6871_s13 }
 0x268   : > { %v5598_v27 = vpop.f32.mrf.mxu0  ;;  %v5662_v16 = vpop.f32.mrf.mxu1 }
 0x269   : > { %5777 = vmatpush3.bf16.xpose.msra.mxu0 %v3238_v44  ;;  %v3142_v44 = vmul.f32 %v8046_v25, %v7748_v18  ;;  %v3139_v18 = vmul.f32 %v7997_v46, %v7592_v45  ;;  %v9126_v45 = vld [vmem:[#allocation28_spill] sm:$0xff] }
 0x26a   : > { %5778 = vmatprep.subr.bf16.mxu0 %v7982_v17  ;;  %v5599_v51 = vpop.f32.mrf.mxu0  ;;  %v5663_v46 = vpop.f32.mrf.mxu1 }
 0x26b   : > { %2889 = vrot.lane.b32.xlu1 %v7674_v56, %s6871_s13  ;;  %3119 = vrot.lane.b32.xlu0 %v7832_v0, %s6871_s13  ;;  %v3206_v40 = vadd.f32 %v3174_v5, %v3142_v44  ;;  %v3203_v5 = vadd.f32 %v3171_v54, %v3139_v18  ;;  %v5594_v44 = vadd.f32 %v5593_v38, %v5592_v13  ;;  %v9127_v54 = vld [vmem:[#allocation29_spill] sm:$0xff]  ;;  %v9128_v18 = vld [vmem:[#allocation30_spill] sm:$0xff]  ;;  %v2874_v13 = vpop.permute.xlu1 %2873 }
 0x26c   : > { %v5601_v20 = vpop.f32.mrf.mxu0 }
 0x26d   : > { %v3236_v42 = vpack.c.bf16 %v3206_v40, %v3205_v63  ;;  %v5597_v63 = vadd.f32 %v5596_v26, %v5595_v19  ;;  %v5661_v40 = vadd.f32 %v5660_v21, %v5659_v7  ;;  %v2965_v19 = vmul.f32 %v2872_v28, %v8030_v14  ;;  %v9129_v21 = vld [vmem:[#allocation31_spill] sm:$0xff]  ;;  %v9133_v28 = vld [vmem:[#allocation49_spill] sm:$0xff] }
 0x26e   : > { %v5602_v38 = vpop.f32.mrf.mxu0  ;;  %v5600_v7 = vadd.f32 %v5599_v51, %v5598_v27  ;;  %v5664_v26 = vadd.f32 %v5663_v46, %v5662_v16  ;;  %v9134_v27 = vld [vmem:[#allocation27_spill] sm:$0xff] }
 0x26f   : > { %3121 = vrot.lane.b32.xlu1 %v8056_v1, %s6871_s13  ;;  %3115 = vrot.lane.b32.xlu0 %v7822_v48, %s6871_s13  ;;  %v8080_v57 = vadd.f32 %v5661_v40, %v5597_v63  ;;  %v9132_v40 = vld [vmem:[#allocation48_spill] sm:$0xff]  ;;  %v2934_v16 = vmul.f32 %v8046_v25, %v9134_v27 }
 0x270   : > { %v5604_v52 = vpop.f32.mrf.mxu0 }
 0x271   : > { %5779 = vmatpush3.bf16.xpose.msra.mxu0 %v7982_v17  ;;  %v5658_v17 = vadd.f32 %v5657_v9, %v5656_v55  ;;  %v3235_v55 = vpack.c.bf16 %v3204_v62, %v3203_v5  ;;  %v8094_v5 = vadd.f32 %v5664_v26, %v5600_v7  ;;  %v8098_v62 = vadd.f32 %v9133_v28, %v9132_v40  ;;  %v9136_v26 = vld [vmem:[#allocation43_spill] sm:$0xff]  ;;  %v9137_v40 = vld [vmem:[#allocation44_spill] sm:$0xff] }
 0x272   : > { %5780 = vmatprep.subr.bf16.mxu0 %v3236_v42  ;;  %v5605_v46 = vpop.f32.mrf.mxu0  ;;  %v8110_v28 = vadd.f32 %v9137_v40, %v9136_v26  ;;  %v9140_v26 = vld [vmem:[#allocation42_spill] sm:$0xff] }
 0x273   : > { %3117 = vrot.lane.b32.xlu1 %v8067_v31, %s6871_s13  ;;  %2891 = vrot.lane.b32.xlu0 %v9126_v45, %s6871_s13  ;;  %v8078_v48 = vadd.f32 %v5658_v17, %v5594_v44  ;;  %v5665_v45 = vpop.f32.mrf.mxu1  ;;  %v9131_v17 = vld [vmem:[#allocation26_spill] sm:$0xff] }
 0x274   : > { %v2933_v63 = vmul.f32 %v8039_v3, %v9131_v17  ;;  %v9135_v17 = vld [vmem:[#allocation40_spill] sm:$0xff] }
 0x275   : > { %v5666_v9 = vpop.f32.mrf.mxu1 }
 0x276   : > { %v2997_v14 = vadd.f32 %v2965_v19, %v2933_v63  ;;  %v9138_v19 = vld [vmem:[#allocation41_spill] sm:$0xff] }
 0x277   : > { %2893 = vrot.lane.b32.xlu1 %v9127_v54, %s6871_s13  ;;  %2895 = vrot.lane.b32.xlu0 %v9128_v18, %s6871_s13  ;;  %v5668_v44 = vpop.f32.mrf.mxu1 }
 0x278   : > { %v3029_v27 = vmul.f32 0.088388346, %v2997_v14  ;;  %v9141_v14 = vld [vmem:[#allocation45_spill] sm:$0xff] }
 0x279   : > { %5781 = vmatpush3.bf16.xpose.msra.mxu0 %v3236_v42  ;;  %v2966_v42 = vmul.f32 %v2874_v13, %v8032_v23  ;;  %v5669_v51 = vpop.f32.mrf.mxu1  ;;  %v5607_v23 = vpop.f32.mrf.mxu0 }
 0x27a   : > { %5782 = vmatprep.subr.bf16.mxu0 %v3235_v55 }
 0x27b   : > { %2897 = vrot.lane.b32.xlu1 %v9129_v21, %s6871_s13  ;;  %3111 = vrot.lane.b32.xlu0 %v9130_v53, %s6871_s13  ;;  %v5603_v53 = vadd.f32 %v5602_v38, %v5601_v20  ;;  %v5667_v21 = vadd.f32 %v5666_v9, %v5665_v45  ;;  %v2998_v13 = vadd.f32 %v2966_v42, %v2934_v16  ;;  %v5671_v3 = vpop.f32.mrf.mxu1  ;;  %v9139_v20 = vld [vmem:[#allocation39_spill] sm:$0xff] }
 0x27c   : > { %v5606_v38 = vadd.f32 %v5605_v46, %v5604_v52  ;;  %v5670_v9 = vadd.f32 %v5669_v51, %v5668_v44  ;;  %v9143_v52 = vld [vmem:[#allocation47_spill] sm:$0xff]  ;;  %v9144_v44 = vld [vmem:[#allocation50_spill] sm:$0xff]  ;;  %v9147_v46 = vld [vmem:[#allocation53_spill] sm:$0xff] }
 0x27d   : > { %v8106_v7 = vadd.f32 %v5667_v21, %v5603_v53  ;;  %v3030_v45 = vmul.f32 0.088388346, %v2998_v13  ;;  %v5608_v21 = vpop.f32.mrf.mxu0  ;;  %v5672_v53 = vpop.f32.mrf.mxu1  ;;  %v9148_v51 = vld [vmem:[#allocation36_spill] sm:$0xff]  ;;  %v9149_v13 = vld [vmem:[#allocation54_spill] sm:$0xff] }
 0x27e   : > { %v2788_v42 = vadd.f32 %v5670_v9, %v5606_v38  ;;  %v5609_v16 = vadd.f32 %v5608_v21, %v5607_v23  ;;  %v9145_v23 = vld [vmem:[#allocation37_spill] sm:$0xff]  ;;  %v9154_v38 = vld [vmem:[#allocation34_spill] sm:$0xff]  ;;  %v9156_v21 = vld [vmem:[#allocation64_spill] sm:$0xff] }
 0x27f   : > { %3113 = vrot.lane.b32.xlu1 %v8098_v62, %s6871_s13  ;;  %3107 = vrot.lane.b32.xlu0 %v9135_v17, %s6871_s13  ;;  %v3060_v63 = vpack.c.bf16 %v3030_v45, %v3029_v27  ;;  %v9150_v27 = vld [vmem:[#allocation55_spill] sm:$0xff]  ;;  %v9153_v45 = vld [vmem:[#allocation58_spill] sm:$0xff] }
 0x280   : > { %v9155_v9 = vld [vmem:[#allocation62_spill] sm:$0xff] }
 0x281   : > { %5783 = vmatpush3.bf16.xpose.msra.mxu0 %v3235_v55  ;;  %v5673_v55 = vadd.f32 %v5672_v53, %v5671_v3  ;;  %v9146_v3 = vld [vmem:[#allocation52_spill] sm:$0xff]  ;;  %v9157_v53 = vld [vmem:[#allocation33_spill] sm:$0xff] }
 0x282   : > { %5832 = vmatprep.subr.bf16.mxu0 %v9138_v19 }
 0x283   : > { %3109 = vrot.lane.b32.xlu1 %v8110_v28, %s6871_s13  ;;  %2899 = vrot.lane.b32.xlu0 %v9139_v20, %s6871_s13  ;;  %v2791_v40 = vadd.f32 %v5673_v55, %v5609_v16  ;;  %v9142_v20 = vld [vmem:[#allocation38_spill] sm:$0xff]  ;;  %v9160_v55 = vld [vmem:[#allocation32_spill] sm:$0xff] }
 0x285   : > { %v8157_v16 = vpack.c.bf16 %v2791_v40, %v2788_v42 }
 0x287   : > { %2901 = vrot.lane.b32.xlu1 %v9140_v26, %s6871_s13  ;;  %2903 = vrot.lane.b32.xlu0 %v9141_v14, %s6871_s13  ;;  %9159 = vst [vmem:[#allocation29_spill] sm:$0xff] %v8157_v16 }
 0x288   : > { %5785 = vmatmul.mubr.bf16.vlgmr.msra.gmra.mxu0 %v3060_v63  ;;  %v9158_v63 = vld [vmem:[#allocation69_spill] sm:$0xff] }
 0x289   : > { %5833 = vmatpush3.bf16.msra.mxu0 %v9138_v19  ;;  %v9151_v19 = vld [vmem:[#allocation35_spill] sm:$0xff] }
 0x28a   : > { %5834 = vmatprep.subr.bf16.mxu0 %v9142_v20 }
 0x28b   : > { %2905 = vrot.lane.b32.xlu1 %v9143_v52, %s6871_s13  ;;  %2907 = vrot.lane.b32.xlu0 %v9144_v44, %s6871_s13  ;;  %v9184_v52 = vld [vmem:[#allocation59_spill] sm:$0xff] }
 0x28d   : > { %5835 = vmatpush3.bf16.msra.mxu0 %v9142_v20  ;;  %v9152_v20 = vld [vmem:[#allocation56_spill] sm:$0xff] }
 0x28e   : > { %5836 = vmatprep.subr.bf16.mxu0 %v9145_v23 }
 0x28f   : > { %2909 = vrot.lane.b32.xlu1 %v9146_v3, %s6871_s13  ;;  %2911 = vrot.lane.b32.xlu0 %v9147_v46, %s6871_s13  ;;  %v9183_v46 = vld [vmem:[#allocation61_spill] sm:$0xff] }
 0x290   : > { %v3168_v3 = vmul.f32 %v9183_v46, %v7968_v22 }
 0x291   : > { %5837 = vmatpush3.bf16.msra.mxu0 %v9145_v23  ;;  %v8164_v23 = vpop.f32.mrf.mxu0 }
 0x292   : > { %5838 = vmatprep.subr.bf16.mxu0 %v9148_v51  ;;  %9161 = vst [vmem:[#allocation30_spill] sm:$0xff] %v8164_v23  ;;  %v9178_v23 = vld [vmem:[#allocation65_spill] sm:$0xff] }
 0x293   : > { %2913 = vrot.lane.b32.xlu1 %v9149_v13, %s6871_s13  ;;  %2915 = vrot.lane.b32.xlu0 %v9150_v27, %s6871_s13 }
 0x295   : > { %5839 = vmatpush3.bf16.msra.mxu0 %v9148_v51  ;;  %v8166_v51 = vpop.f32.mrf.mxu1 }
 0x296   : > { %5840 = vmatprep.subr.bf16.mxu0 %v9151_v19  ;;  %9162 = vst [vmem:[#allocation26_spill] sm:$0xff] %v8166_v51  ;;  %v9177_v51 = vld [vmem:[#allocation67_spill] sm:$0xff] }
 0x297   : > { %2917 = vrot.lane.b32.xlu1 %v9152_v20, %s6871_s13  ;;  %2919 = vrot.lane.b32.xlu0 %v9153_v45, %s6871_s13  ;;  %v9175_v20 = vld [vmem:[#allocation63_spill] sm:$0xff] }
 0x299   : > { %5841 = vmatpush3.bf16.msra.mxu0 %v9151_v19  ;;  %v8168_v19 = vpop.f32.mrf.mxu0 }
 0x29a   : > { %5842 = vmatprep.subr.bf16.mxu0 %v9154_v38  ;;  %9163 = vst [vmem:[#allocation48_spill] sm:$0xff] %v8168_v19  ;;  %v3170_v19 = vmul.f32 %v9177_v51, %v7948_v61 }
 0x29b   : > { %2921 = vrot.lane.b32.xlu1 %v9155_v9, %s6871_s13  ;;  %2923 = vrot.lane.b32.xlu0 %v9156_v21, %s6871_s13 }
 0x29d   : > { %5843 = vmatpush3.bf16.msra.mxu0 %v9154_v38  ;;  %v8170_v38 = vpop.f32.mrf.mxu1 }
 0x29e   : > { %5844 = vmatprep.subr.bf16.mxu0 %v9157_v53  ;;  %9164 = vst [vmem:[#allocation49_spill] sm:$0xff] %v8170_v38 }
 0x29f   : > { %2925 = vrot.lane.b32.xlu1 %v9158_v63, %s6871_s13  ;;  %2927 = vrot.lane.b32.xlu0 %v7914_v15, %s6871_s13  ;;  %v8172_v15 = vpop.f32.mrf.mxu0  ;;  %v8174_v42 = vpop.f32.mrf.mxu1 }
 0x2a0   : > { %9165 = vst [vmem:[#allocation27_spill] sm:$0xff] %v8172_v15  ;;  %9166 = vst [vmem:[#allocation40_spill] sm:$0xff] %v8174_v42 }
 0x2a1   : > { %5845 = vmatpush3.bf16.msra.mxu0 %v9157_v53  ;;  %v8176_v40 = vpop.f32.mrf.mxu0  ;;  %v8178_v53 = vpop.f32.mrf.mxu1 }
 0x2a2   : > { %5846 = vmatprep.subr.bf16.mxu0 %v9160_v55  ;;  %9167 = vst [vmem:[#allocation43_spill] sm:$0xff] %v8176_v40  ;;  %9168 = vst [vmem:[#allocation44_spill] sm:$0xff] %v8178_v53  ;;  %v9176_v40 = vld [vmem:[#allocation66_spill] sm:$0xff] }
 0x2a3   : > { %2929 = vrot.lane.b32.xlu1 %v7933_v10, %s6871_s13  ;;  %v8180_v16 = vpop.f32.mrf.mxu0  ;;  %v8182_v10 = vpop.f32.mrf.mxu1  ;;  %v3169_v53 = vmul.f32 %v9176_v40, %v7925_v43 }
 0x2a4   : > { %9169 = vst [vmem:[#allocation41_spill] sm:$0xff] %v8180_v16  ;;  %9170 = vst [vmem:[#allocation42_spill] sm:$0xff] %v8182_v10  ;;  %v9181_v16 = vld [vmem:[#allocation57_spill] sm:$0xff] }
 0x2a5   : > { %5847 = vmatpush3.bf16.msra.mxu0 %v9160_v55  ;;  %v8184_v55 = vpop.f32.mrf.mxu0  ;;  %v8186_v63 = vpop.f32.mrf.mxu1 }
 0x2a6   : > { %9171 = vst [vmem:[#allocation38_spill] sm:$0xff] %v8184_v55  ;;  %9172 = vst [vmem:[#allocation37_spill] sm:$0xff] %v8186_v63 }
 0x2a7   : > { %v8188_v9 = vpop.f32.mrf.mxu0  ;;  %v8190_v45 = vpop.f32.mrf.mxu1 }
 0x2a8   : > { %9173 = vst [vmem:[#allocation36_spill] sm:$0xff] %v8188_v9  ;;  %9174 = vst [vmem:[#allocation35_spill] sm:$0xff] %v8190_v45 }
 0x2a9   : > { %v8198_v10 = vpop.f32.mrf.mxu0  ;;  %v8200_v63 = vpop.f32.mrf.mxu1 }
 0x2aa   : > { %9179 = vst [vmem:[#allocation34_spill] sm:$0xff] %v8198_v10  ;;  %9180 = vst [vmem:[#allocation33_spill] sm:$0xff] %v8200_v63 }
 0x2ab   : > { %v8209_v10 = vpop.f32.mrf.mxu0  ;;  %v8211_v63 = vpop.f32.mrf.mxu1 }
 0x2bd   : > { %v3136_v21 = vpop.permute.xlu0 %3135 }
 0x2be   : > { %v3201_v15 = vmul.f32 %v3136_v21, %v9175_v20  ;;  %v9182_v21 = vld [vmem:[#allocation60_spill] sm:$0xff] }
 0x2bf   : > { %v3167_v13 = vmul.f32 %v9182_v21, %v7944_v11  ;;  %v2935_v11 = vmul.f32 %v7964_v12, %v7624_v50  ;;  %v8229_v50 = vpack.c.bf16 %v8080_v57, %v8078_v48 }
 0x2c0   : > { %v3233_v55 = vadd.f32 %v3201_v15, %v3169_v53  ;;  %v8215_v15 = vpack.c.bf16 %v8106_v7, %v8094_v5  ;;  %v8223_v5 = vpop.f32.mrf.mxu0  ;;  %v8225_v7 = vpop.f32.mrf.mxu1 }
 0x2c1   : > { %v3138_v42 = vpop.permute.xlu1 %3137  ;;  %v3132_v38 = vpop.permute.xlu0 %3131  ;;  %9186 = vst [vmem:[#allocation63_spill] sm:$0xff] %v8229_v50 }
 0x2c2   : > { %v3202_v27 = vmul.f32 %v3138_v42, %v9178_v23  ;;  %v3199_v45 = vmul.f32 %v3132_v38, %v9181_v16  ;;  %9185 = vst [vmem:[#allocation32_spill] sm:$0xff] %v8215_v15 }
 0x2c4   : > { %v3234_v9 = vadd.f32 %v3202_v27, %v3170_v19  ;;  %v3231_v27 = vadd.f32 %v3199_v45, %v3167_v13  ;;  %v2936_v19 = vmul.f32 %v7966_v24, %v7634_v6  ;;  %v2937_v6 = vmul.f32 %v7940_v49, %v7644_v37 }
 0x2c5   : > { %v3134_v43 = vpop.permute.xlu1 %3133  ;;  %v2876_v44 = vpop.permute.xlu0 %2875 }
 0x2c6   : > { %v3200_v61 = vmul.f32 %v3134_v43, %v9184_v52  ;;  %v2967_v42 = vmul.f32 %v2876_v44, %v7961_v60  ;;  %v3250_v14 = vpack.c.bf16 %v3234_v9, %v3233_v55 }
 0x2c8   : > { %v3232_v22 = vadd.f32 %v3200_v61, %v3168_v3  ;;  %5800 = vmatprep.subr.bf16.mxu1 %v3250_v14  ;;  %v2999_v9 = vadd.f32 %v2967_v42, %v2935_v11 }
 0x2c9   : > { %v2878_v38 = vpop.permute.xlu1 %2877  ;;  %5801 = vmatpush3.bf16.xpose.msra.mxu1 %v3250_v14  ;;  %v2880_v44 = vpop.permute.xlu0 %2879  ;;  %v2938_v14 = vmul.f32 %v7942_v2, %v7650_v47 }
 0x2ca   : > { %v2968_v53 = vmul.f32 %v2878_v38, %v7946_v35  ;;  %v2969_v55 = vmul.f32 %v2880_v44, %v7937_v58  ;;  %v3249_v43 = vpack.c.bf16 %v3232_v22, %v3231_v27  ;;  %v3031_v61 = vmul.f32 0.088388346, %v2999_v9  ;;  %v8236_v22 = vpop.f32.mrf.mxu0  ;;  %v8238_v38 = vpop.f32.mrf.mxu1 }
 0x2cb   : > { %9187 = vst [vmem:[#allocation66_spill] sm:$0xff] %v8238_v38  ;;  %v3166_v9 = vmul.f32 %v7905_v33, %v8011_v39  ;;  %v9193_v39 = vld [vmem:[#allocation74_spill] sm:$0xff] }
 0x2cc   : > { %v3000_v3 = vadd.f32 %v2968_v53, %v2936_v19  ;;  %5802 = vmatprep.subr.bf16.mxu1 %v3249_v43  ;;  %v3001_v11 = vadd.f32 %v2969_v55, %v2937_v6  ;;  %v9188_v19 = vld [vmem:[#allocation70_spill] sm:$0xff]  ;;  %v8246_v50 = vpop.f32.mrf.mxu0 }
 0x2cd   : > { %v2882_v13 = vpop.permute.xlu1 %2881  ;;  %v3128_v45 = vpop.permute.xlu0 %3127  ;;  %v3165_v44 = vmul.f32 %v9188_v19, %v7992_v41  ;;  %9190 = vst [vmem:[#allocation67_spill] sm:$0xff] %v8246_v50 }
 0x2ce   : > { %v3032_v42 = vmul.f32 0.088388346, %v3000_v3  ;;  %v2970_v27 = vmul.f32 %v2882_v13, %v7923_v8  ;;  %v3197_v57 = vmul.f32 %v3128_v45, %v7900_v4  ;;  %v3033_v55 = vmul.f32 0.088388346, %v3001_v11  ;;  %v9189_v3 = vld [vmem:[#allocation68_spill] sm:$0xff] }
 0x2cf   : > { %v3164_v11 = vmul.f32 %v9193_v39, %v8024_v36 }
 0x2d0   : > { %v3002_v48 = vadd.f32 %v2970_v27, %v2938_v14  ;;  %v3061_v37 = vpack.c.bf16 %v3032_v42, %v3031_v61  ;;  %v8248_v14 = vpop.f32.mrf.mxu1  ;;  %v3229_v61 = vadd.f32 %v3197_v57, %v3165_v44 }
 0x2d1   : > { %v3130_v53 = vpop.permute.xlu1 %3129  ;;  %5803 = vmatpush3.bf16.xpose.msra.mxu1 %v3249_v43  ;;  %v3124_v47 = vpop.permute.xlu0 %3123  ;;  %9191 = vst [vmem:[#allocation65_spill] sm:$0xff] %v8248_v14  ;;  %v9192_v43 = vld [vmem:[#allocation73_spill] sm:$0xff] }
 0x2d2   : > { %v3034_v6 = vmul.f32 0.088388346, %v3002_v48  ;;  %v3198_v13 = vmul.f32 %v3130_v53, %v9189_v3  ;;  %5788 = vmatprep.mubr.bf16.mxu0 %v3061_v37  ;;  %v3195_v41 = vmul.f32 %v3124_v47, %v7916_v30  ;;  %v3163_v27 = vmul.f32 %v9192_v43, %v8007_v32  ;;  %v9194_v48 = vld [vmem:[#allocation71_spill] sm:$0xff]  ;;  %v8257_v14 = vpop.f32.mrf.mxu0  ;;  %v8259_v57 = vpop.f32.mrf.mxu1 }
 0x2d3   : > { %v2939_v44 = vmul.f32 %v9192_v43, %v7660_v59  ;;  %v2941_v59 = vmul.f32 %v9188_v19, %v7672_v34  ;;  %v3161_v19 = vmul.f32 %v7940_v49, %v7832_v0 }
 0x2d4   : > { %v3062_v45 = vpack.c.bf16 %v3034_v6, %v3033_v55  ;;  %v3230_v42 = vadd.f32 %v3198_v13, %v3166_v9  ;;  %v3227_v47 = vadd.f32 %v3195_v41, %v3163_v27  ;;  %v2940_v9 = vmul.f32 %v9193_v39, %v7666_v29 }
 0x2d5   : > { %v3126_v15 = vpop.permute.xlu1 %3125  ;;  %v2884_v38 = vpop.permute.xlu0 %2883  ;;  %v2942_v29 = vmul.f32 %v7905_v33, %v7674_v56  ;;  %v3162_v33 = vmul.f32 %v7942_v2, %v8056_v1  ;;  %v3160_v1 = vmul.f32 %v7966_v24, %v8067_v31 }
 0x2d6   : > { %v3196_v53 = vmul.f32 %v3126_v15, %v9194_v48  ;;  %v2971_v37 = vmul.f32 %v2884_v38, %v7916_v30  ;;  %5789 = vmatmul.mubr.bf16.gmra.mxu0 %v3062_v45  ;;  %v3248_v50 = vpack.c.bf16 %v3230_v42, %v3229_v61  ;;  %v8267_v45 = vpop.f32.mrf.mxu0  ;;  %v8269_v61 = vpop.f32.mrf.mxu1 }
 0x2d8   : > { %v3228_v32 = vadd.f32 %v3196_v53, %v3164_v11  ;;  %5804 = vmatprep.subr.bf16.mxu1 %v3248_v50  ;;  %v3003_v55 = vadd.f32 %v2971_v37, %v2939_v44  ;;  %v8276_v53 = vpop.f32.mrf.mxu0  ;;  %v8278_v37 = vpop.f32.mrf.mxu1 }
 0x2d9   : > { %v2886_v36 = vpop.permute.xlu1 %2885  ;;  %5805 = vmatpush3.bf16.xpose.msra.mxu1 %v3248_v50  ;;  %v2888_v15 = vpop.permute.xlu0 %2887 }
 0x2da   : > { %v2972_v38 = vmul.f32 %v2886_v36, %v9194_v48  ;;  %v2973_v6 = vmul.f32 %v2888_v15, %v7900_v4  ;;  %v3247_v13 = vpack.c.bf16 %v3228_v32, %v3227_v47  ;;  %v3035_v27 = vmul.f32 0.088388346, %v3003_v55  ;;  %v8286_v15 = vpop.f32.mrf.mxu0  ;;  %v8288_v55 = vpop.f32.mrf.mxu1 }
 0x2dc   : > { %v3004_v42 = vadd.f32 %v2972_v38, %v2940_v9  ;;  %5806 = vmatprep.subr.bf16.mxu1 %v3247_v13  ;;  %v3005_v48 = vadd.f32 %v2973_v6, %v2941_v59 }
 0x2dd   : > { %v2890_v50 = vpop.permute.xlu1 %2889  ;;  %v3120_v41 = vpop.permute.xlu0 %3119 }
 0x2de   : > { %v3036_v11 = vmul.f32 0.088388346, %v3004_v42  ;;  %v2974_v4 = vmul.f32 %v2890_v50, %v9189_v3  ;;  %v3193_v47 = vmul.f32 %v3120_v41, %v7937_v58  ;;  %v3037_v9 = vmul.f32 0.088388346, %v3005_v48  ;;  %v9195_v42 = vld [vmem:[#allocation51_spill] sm:$0xff]  ;;  %v5634_v48 = vpop.f32.mrf.mxu0 }
 0x2e0   : > { %v3006_v44 = vadd.f32 %v2974_v4, %v2942_v29  ;;  %v3063_v34 = vpack.c.bf16 %v3036_v11, %v3035_v27  ;;  %v3225_v6 = vadd.f32 %v3193_v47, %v3161_v19  ;;  %v5698_v4 = vpop.f32.mrf.mxu1 }
 0x2e1   : > { %v3122_v32 = vpop.permute.xlu1 %3121  ;;  %5807 = vmatpush3.bf16.xpose.msra.mxu1 %v3247_v13  ;;  %v3116_v56 = vpop.permute.xlu0 %3115  ;;  %v3159_v13 = vmul.f32 %v7964_v12, %v9195_v42 }
 0x2e2   : > { %v3038_v36 = vmul.f32 0.088388346, %v3006_v44  ;;  %v3194_v3 = vmul.f32 %v3122_v32, %v7923_v8  ;;  %5792 = vmatprep.mubr.bf16.mxu0 %v3063_v34  ;;  %v3191_v0 = vmul.f32 %v3116_v56, %v7961_v60  ;;  %v9196_v44 = vld [vmem:[#allocation28_spill] sm:$0xff]  ;;  %v2944_v32 = vmul.f32 %v9183_v46, %v9127_v54 }
 0x2e3   : > { %v2943_v47 = vmul.f32 %v9182_v21, %v9196_v44  ;;  %v2945_v21 = vmul.f32 %v9176_v40, %v9128_v18  ;;  %v9199_v44 = vld [vmem:[#allocation46_spill] sm:$0xff] }
 0x2e4   : > { %v3064_v38 = vpack.c.bf16 %v3038_v36, %v3037_v9  ;;  %v3226_v59 = vadd.f32 %v3194_v3, %v3162_v33  ;;  %v3223_v34 = vadd.f32 %v3191_v0, %v3159_v13  ;;  %v5635_v3 = vpop.f32.mrf.mxu0  ;;  %v9200_v18 = vld [vmem:[#allocation82_spill] sm:$0xff] }
 0x2e5   : > { %v3118_v29 = vpop.permute.xlu1 %3117  ;;  %v2892_v50 = vpop.permute.xlu0 %2891  ;;  %v3157_v40 = vmul.f32 %v9200_v18, %v9199_v44 }
 0x2e6   : > { %v3192_v41 = vmul.f32 %v3118_v29, %v7946_v35  ;;  %v2975_v27 = vmul.f32 %v2892_v50, %v9181_v16  ;;  %5793 = vmatmul.mubr.bf16.gmra.mxu0 %v3064_v38  ;;  %v3246_v11 = vpack.c.bf16 %v3226_v59, %v3225_v6  ;;  %v5699_v38 = vpop.f32.mrf.mxu1  ;;  %v9197_v59 = vld [vmem:[#allocation31_spill] sm:$0xff]  ;;  %v5637_v50 = vpop.f32.mrf.mxu0 }
 0x2e7   : > { %v2946_v0 = vmul.f32 %v9177_v51, %v9197_v59  ;;  %v3158_v51 = vmul.f32 %v8046_v25, %v8098_v62 }
 0x2e8   : > { %v3224_v19 = vadd.f32 %v3192_v41, %v3160_v1  ;;  %5808 = vmatprep.subr.bf16.mxu1 %v3246_v11  ;;  %v3007_v33 = vadd.f32 %v2975_v27, %v2943_v47  ;;  %v9198_v41 = vld [vmem:[#allocation80_spill] sm:$0xff] }
 0x2e9   : > { %v2894_v56 = vpop.permute.xlu1 %2893  ;;  %5809 = vmatpush3.bf16.xpose.msra.mxu1 %v3246_v11  ;;  %v2896_v31 = vpop.permute.xlu0 %2895 }
 0x2ea   : > { %v2976_v9 = vmul.f32 %v2894_v56, %v9184_v52  ;;  %v2977_v16 = vmul.f32 %v2896_v31, %v9175_v20  ;;  %v3245_v36 = vpack.c.bf16 %v3224_v19, %v3223_v34  ;;  %v3039_v42 = vmul.f32 0.088388346, %v3007_v33  ;;  %v5701_v20 = vpop.f32.mrf.mxu1  ;;  %v9201_v56 = vld [vmem:[#allocation81_spill] sm:$0xff] }
 0x2ec   : > { %v3008_v6 = vadd.f32 %v2976_v9, %v2944_v32  ;;  %5810 = vmatprep.subr.bf16.mxu1 %v3245_v36  ;;  %v3009_v29 = vadd.f32 %v2977_v16, %v2945_v21  ;;  %v5702_v33 = vpop.f32.mrf.mxu1  ;;  %v9202_v9 = vld [vmem:[#allocation78_spill] sm:$0xff] }
 0x2ed   : > { %v2898_v54 = vpop.permute.xlu1 %2897  ;;  %v3112_v46 = vpop.permute.xlu0 %3111  ;;  %v3155_v16 = vmul.f32 %v9202_v9, %v9135_v17 }
 0x2ee   : > { %v3040_v13 = vmul.f32 0.088388346, %v3008_v6  ;;  %v2978_v52 = vmul.f32 %v2898_v54, %v9178_v23  ;;  %v3189_v27 = vmul.f32 %v3112_v46, %v9198_v41  ;;  %v3041_v19 = vmul.f32 0.088388346, %v3009_v29  ;;  %v5638_v23 = vpop.f32.mrf.mxu0 }
 0x2ef   : > { %v5639_v62 = vadd.f32 %v5638_v23, %v5637_v50  ;;  %v5703_v29 = vadd.f32 %v5702_v33, %v5701_v20  ;;  %v9208_v23 = vld [vmem:[#allocation47_spill] sm:$0xff] }
 0x2f0   : > { %v3010_v1 = vadd.f32 %v2978_v52, %v2946_v0  ;;  %v3065_v11 = vpack.c.bf16 %v3040_v13, %v3039_v42  ;;  %v3221_v6 = vadd.f32 %v3189_v27, %v3157_v40  ;;  %v9203_v0 = vld [vmem:[#allocation79_spill] sm:$0xff]  ;;  %v5636_v42 = vadd.f32 %v5635_v3, %v5634_v48  ;;  %v9204_v52 = vld [vmem:[#allocation76_spill] sm:$0xff] }
 0x2f1   : > { %v3114_v47 = vpop.permute.xlu1 %3113  ;;  %5811 = vmatpush3.bf16.xpose.msra.mxu1 %v3245_v36  ;;  %v3108_v34 = vpop.permute.xlu0 %3107  ;;  %v5700_v13 = vadd.f32 %v5699_v38, %v5698_v4  ;;  %v2831_v3 = vadd.f32 %v5703_v29, %v5639_v62  ;;  %v2950_v33 = vmul.f32 %v8046_v25, %v9208_v23  ;;  %v9212_v29 = vld [vmem:[#allocation65_spill] sm:$0xff] }
 0x2f2   : > { %v3042_v32 = vmul.f32 0.088388346, %v3010_v1  ;;  %v3190_v31 = vmul.f32 %v3114_v47, %v9201_v56  ;;  %5796 = vmatprep.mubr.bf16.mxu0 %v3065_v11  ;;  %v3187_v54 = vmul.f32 %v3108_v34, %v9203_v0  ;;  %v3156_v1 = vmul.f32 %v9204_v52, %v8110_v28  ;;  %v9205_v11 = vld [vmem:[#allocation77_spill] sm:$0xff] }
 0x2f3   : > { %v2828_v4 = vadd.f32 %v5700_v13, %v5636_v42  ;;  %v2948_v28 = vmul.f32 %v9204_v52, %v9140_v26  ;;  %v5694_v26 = vadd.f32 %v8269_v61, %v8259_v57  ;;  %v9209_v42 = vld [vmem:[#allocation50_spill] sm:$0xff]  ;;  %v5688_v57 = vadd.f32 %v8225_v7, %v8211_v63 }
 0x2f4   : > { %v3066_v21 = vpack.c.bf16 %v3042_v32, %v3041_v19  ;;  %v3222_v59 = vadd.f32 %v3190_v31, %v3158_v51  ;;  %v9206_v19 = vld [vmem:[#allocation39_spill] sm:$0xff]  ;;  %v3219_v40 = vadd.f32 %v3187_v54, %v3155_v16  ;;  %v9207_v32 = vld [vmem:[#allocation45_spill] sm:$0xff] }
 0x2f5   : > { %v3110_v36 = vpop.permute.xlu1 %3109  ;;  %v2900_v46 = vpop.permute.xlu0 %2899  ;;  %v2947_v27 = vmul.f32 %v9202_v9, %v9206_v19  ;;  %v2949_v31 = vmul.f32 %v9200_v18, %v9207_v32  ;;  %v5697_v18 = vadd.f32 %v8288_v55, %v8278_v37  ;;  %v3266_v54 = vpack.c.bf16 %v2831_v3, %v2828_v4  ;;  %v9210_v37 = vld [vmem:[#allocation67_spill] sm:$0xff]  ;;  %v9217_v19 = vld [vmem:[#allocation38_spill] sm:$0xff] }
 0x2f6   : > { %v3188_v44 = vmul.f32 %v3110_v36, %v9205_v11  ;;  %v2979_v47 = vmul.f32 %v2900_v46, %v9203_v0  ;;  %5797 = vmatmul.mubr.bf16.gmra.mxu0 %v3066_v21  ;;  %v3244_v17 = vpack.c.bf16 %v3222_v59, %v3221_v6  ;;  %v5630_v21 = vadd.f32 %v8267_v45, %v8257_v14  ;;  %v9221_v4 = vld [vmem:[#allocation34_spill] sm:$0xff] }
 0x2f7   : > { %v5633_v0 = vadd.f32 %v8286_v15, %v8276_v53  ;;  %v2951_v14 = vmul.f32 %v7964_v12, %v9209_v42  ;;  %v5624_v45 = vadd.f32 %v8223_v5, %v8209_v10  ;;  %v5627_v55 = vadd.f32 %v9210_v37, %v8236_v22  ;;  %v9214_v5 = vld [vmem:[#allocation53_spill] sm:$0xff]  ;;  %v9215_v22 = vld [vmem:[#allocation54_spill] sm:$0xff]  ;;  %v9232_v37 = vld [vmem:[#allocation44_spill] sm:$0xff] }
 0x2f8   : > { %v3220_v34 = vadd.f32 %v3188_v44, %v3156_v1  ;;  %5812 = vmatprep.subr.bf16.mxu1 %v3244_v17  ;;  %v3011_v38 = vadd.f32 %v2979_v47, %v2947_v27  ;;  %v2820_v12 = vadd.f32 %v5694_v26, %v5630_v21  ;;  %v2953_v63 = vmul.f32 %v7940_v49, %v9214_v5  ;;  %v6610_v5 = vld [vmem:[#allocation8 + $0x58] sm:$0xff] }
 0x2f9   : > { %v2902_v51 = vpop.permute.xlu1 %2901  ;;  %5813 = vmatpush3.bf16.xpose.msra.mxu1 %v3244_v17  ;;  %v2904_v48 = vpop.permute.xlu0 %2903  ;;  %v2823_v1 = vadd.f32 %v5697_v18, %v5633_v0  ;;  %v2954_v47 = vmul.f32 %v7942_v2, %v9215_v22  ;;  %v9216_v17 = vld [vmem:[#allocation41_spill] sm:$0xff]  ;;  %v2812_v2 = vadd.f32 %v5688_v57, %v5624_v45  ;;  %v9225_v0 = vld [vmem:[#allocation30_spill] sm:$0xff]  ;;  %v9230_v45 = vld [vmem:[#allocation43_spill] sm:$0xff] }
 0x2fa   : > { %v2980_v50 = vmul.f32 %v2902_v51, %v9205_v11  ;;  %v3243_v20 = vpack.c.bf16 %v3220_v34, %v3219_v40  ;;  %v2981_v16 = vmul.f32 %v2904_v48, %v9198_v41  ;;  %v3043_v25 = vmul.f32 0.088388346, %v3011_v38  ;;  %v9213_v11 = vld [vmem:[#allocation52_spill] sm:$0xff]  ;;  %v9218_v40 = vld [vmem:[#allocation42_spill] sm:$0xff]  ;;  %v9219_v34 = vld [vmem:[#allocation37_spill] sm:$0xff] }
 0x2fb   : > { %v2952_v10 = vmul.f32 %v7966_v24, %v9213_v11  ;;  %v5618_v27 = vadd.f32 %v9217_v19, %v9216_v17  ;;  %v5682_v51 = vadd.f32 %v9219_v34, %v9218_v40  ;;  %v9220_v48 = vld [vmem:[#allocation36_spill] sm:$0xff]  ;;  %v9222_v38 = vld [vmem:[#allocation35_spill] sm:$0xff]  ;;  %v9234_v11 = vld [vmem:[#allocation58_spill] sm:$0xff] }
 0x2fc   : > { %v3012_v9 = vadd.f32 %v2980_v50, %v2948_v28  ;;  %5814 = vmatprep.subr.bf16.mxu1 %v3243_v20  ;;  %v3013_v61 = vadd.f32 %v2981_v16, %v2949_v31  ;;  %v5621_v24 = vadd.f32 %v9221_v4, %v9220_v48  ;;  %v6612_v4 = vld [vmem:[#allocation8 + $0xd8] sm:$0xff] }
 0x2fd   : > { %v2906_v6 = vpop.permute.xlu1 %2905  ;;  %v2908_v59 = vpop.permute.xlu0 %2907 }
 0x2fe   : > { %v3044_v36 = vmul.f32 0.088388346, %v3012_v9  ;;  %v2982_v41 = vmul.f32 %v2906_v6, %v9201_v56  ;;  %v2983_v46 = vmul.f32 %v2908_v59, %v7961_v60  ;;  %v9211_v60 = vld [vmem:[#allocation66_spill] sm:$0xff]  ;;  %v3045_v3 = vmul.f32 0.088388346, %v3013_v61  ;;  %v9224_v59 = vld [vmem:[#allocation55_spill] sm:$0xff] }
 0x2ff   : > { %v5691_v52 = vadd.f32 %v9212_v29, %v9211_v60  ;;  %v2955_v26 = vmul.f32 %v9192_v43, %v9224_v59  ;;  %v2804_v43 = vadd.f32 %v5682_v51, %v5618_v27  ;;  %v6608_v29 = vld [vmem:[#allocation8 + $0xc8] sm:$0xff] }
 0x300   : > { %v3014_v53 = vadd.f32 %v2982_v41, %v2950_v33  ;;  %v3067_v15 = vpack.c.bf16 %v3044_v36, %v3043_v25  ;;  %v3015_v13 = vadd.f32 %v2983_v46, %v2951_v14  ;;  %v3265_v33 = vpack.c.bf16 %v2823_v1, %v2820_v12  ;;  %v9227_v25 = vld [vmem:[#allocation26_spill] sm:$0xff]  ;;  %v9228_v36 = vld [vmem:[#allocation49_spill] sm:$0xff]  ;;  %v9229_v14 = vld [vmem:[#allocation27_spill] sm:$0xff] }
 0x301   : > { %v2910_v62 = vpop.permute.xlu1 %2909  ;;  %5815 = vmatpush3.bf16.xpose.msra.mxu1 %v3243_v20  ;;  %v2912_v56 = vpop.permute.xlu0 %2911  ;;  %v2815_v23 = vadd.f32 %v5691_v52, %v5627_v55  ;;  %v5676_v41 = vadd.f32 %v9228_v36, %v9227_v25  ;;  %v5615_v57 = vadd.f32 %v9230_v45, %v9229_v14  ;;  %v6609_v1 = vld [vmem:[#allocation8 + $0x50] sm:$0xff]  ;;  %v9239_v14 = vld [vmem:[#allocation75_spill] sm:$0xff] }
 0x302   : > { %v3046_v7 = vmul.f32 0.088388346, %v3014_v53  ;;  %v2984_v44 = vmul.f32 %v2910_v62, %v7946_v35  ;;  %5816 = vmatprep.mubr.bf16.mxu1 %v3067_v15  ;;  %5864 = vmatprep.subr.bf16.mxu1 %v3266_v54  ;;  %v2985_v49 = vmul.f32 %v2912_v56, %v7937_v58  ;;  %v9223_v35 = vld [vmem:[#allocation33_spill] sm:$0xff]  ;;  %v3047_v20 = vmul.f32 0.088388346, %v3015_v13  ;;  %v9226_v58 = vld [vmem:[#allocation48_spill] sm:$0xff] }
 0x303   : > { %v5685_v50 = vadd.f32 %v9223_v35, %v9222_v38  ;;  %v5612_v18 = vadd.f32 %v9226_v58, %v9225_v0  ;;  %v9233_v62 = vld [vmem:[#allocation56_spill] sm:$0xff]  ;;  %v3264_v12 = vpack.c.bf16 %v2815_v23, %v2812_v2  ;;  %v9237_v2 = vld [vmem:[#allocation69_spill] sm:$0xff] }
 0x304   : > { %v3016_v28 = vadd.f32 %v2984_v44, %v2952_v10  ;;  %v3068_v9 = vpack.c.bf16 %v3046_v7, %v3045_v3  ;;  %v3017_v46 = vadd.f32 %v2985_v49, %v2953_v63  ;;  %v2956_v56 = vmul.f32 %v9193_v39, %v9233_v62  ;;  %v9235_v63 = vld [vmem:[#allocation62_spill] sm:$0xff]  ;;  %v9236_v38 = vld [vmem:[#allocation64_spill] sm:$0xff]  ;;  %v9240_v62 = vld [vmem:[#allocation29_spill] sm:$0xff] }
 0x305   : > { %v2914_v32 = vpop.permute.xlu1 %2913  ;;  %v2916_v31 = vpop.permute.xlu0 %2915  ;;  %v2807_v13 = vadd.f32 %v5685_v50, %v5621_v24  ;;  %v2957_v10 = vmul.f32 %v6609_v1, %v9234_v11  ;;  %v2958_v7 = vmul.f32 %v6610_v5, %v9235_v63  ;;  %v2796_v19 = vadd.f32 %v5676_v41, %v5612_v18  ;;  %v6613_v3 = vld [vmem:[#allocation8 + $0xe0] sm:$0xff]  ;;  %v6617_v18 = vld [vmem:[#allocation8 + $0xf0] sm:$0xff] }
 0x306   : > { %v3048_v16 = vmul.f32 0.088388346, %v3016_v28  ;;  %v2986_v21 = vmul.f32 %v2914_v32, %v7923_v8  ;;  %v2987_v6 = vmul.f32 %v2916_v31, %v7916_v30  ;;  %v9231_v30 = vld [vmem:[#allocation40_spill] sm:$0xff]  ;;  %v3049_v44 = vmul.f32 0.088388346, %v3017_v46  ;;  %v6614_v49 = vld [vmem:[#allocation8 + $0x60] sm:$0xff] }
 0x307   : > { %v5679_v55 = vadd.f32 %v9232_v37, %v9231_v30  ;;  %v3263_v34 = vpack.c.bf16 %v2807_v13, %v2804_v43  ;;  %v2959_v35 = vmul.f32 %v6614_v49, %v9236_v38  ;;  %v6615_v31 = vld [vmem:[#allocation8 + $0x68] sm:$0xff]  ;;  %v6618_v36 = vld [vmem:[#allocation8 + $0x70] sm:$0xff] }
 0x308   : > { %v3018_v42 = vadd.f32 %v2986_v21, %v2954_v47  ;;  %5817 = vmatmul.mubr.bf16.vlgmr.msra.gmra.mxu1 %v3068_v9  ;;  %v3069_v61 = vpack.c.bf16 %v3048_v16, %v3047_v20  ;;  %v3019_v53 = vadd.f32 %v2987_v6, %v2955_v26  ;;  %v6611_v47 = vld [vmem:[#allocation8 + $0xd0] sm:$0xff]  ;;  %v2960_v23 = vmul.f32 %v6615_v31, %v9237_v2  ;;  %v6616_v6 = vld [vmem:[#allocation8 + $0xe8] sm:$0xff] }
 0x309   : > { %v2918_v8 = vpop.permute.xlu1 %2917  ;;  %v2920_v15 = vpop.permute.xlu0 %2919  ;;  %5865 = vmatpush3.bf16.msra.mxu1 %v3266_v54  ;;  %v2799_v27 = vadd.f32 %v5679_v55, %v5615_v57  ;;  %v9238_v41 = vld [vmem:[#allocation72_spill] sm:$0xff] }
 0x30a   : > { %v3050_v60 = vmul.f32 0.088388346, %v3018_v42  ;;  %v2988_v52 = vmul.f32 %v6608_v29, %v2918_v8  ;;  %5820 = vmatprep.mubr.bf16.mxu1 %v3069_v61  ;;  %5866 = vmatprep.subr.bf16.mxu1 %v3265_v33  ;;  %v2989_v17 = vmul.f32 %v6611_v47, %v2920_v15  ;;  %v3051_v54 = vmul.f32 0.088388346, %v3019_v53  ;;  %v6619_v42 = vld [vmem:[#allocation8 + $0x78] sm:$0xff]  ;;  %v9241_v29 = vld [vmem:[#allocation32_spill] sm:$0xff] }
 0x30b   : > { %v3262_v26 = vpack.c.bf16 %v2799_v27, %v2796_v19  ;;  %v2961_v46 = vmul.f32 %v6618_v36, %v9238_v41  ;;  %v2962_v45 = vmul.f32 %v6619_v42, %v9239_v14  ;;  %v6620_v15 = vld [vmem:[#allocation8 + $0xf8] sm:$0xff] }
 0x30c   : > { %v3020_v22 = vadd.f32 %v2988_v52, %v2956_v56  ;;  %v3070_v51 = vpack.c.bf16 %v3050_v60, %v3049_v44  ;;  %v3021_v50 = vadd.f32 %v2989_v17, %v2957_v10  ;;  %v9242_v52 = vld [vmem:[#allocation63_spill] sm:$0xff] }
 0x30d   : > { %v2922_v39 = vpop.permute.xlu1 %2921  ;;  %v2924_v40 = vpop.permute.xlu0 %2923  ;;  %5867 = vmatpush3.bf16.msra.mxu1 %v3265_v33 }
 0x30e   : > { %v3052_v48 = vmul.f32 0.088388346, %v3020_v22  ;;  %v2990_v24 = vmul.f32 %v6612_v4, %v2922_v39  ;;  %v2991_v28 = vmul.f32 %v6613_v3, %v2924_v40  ;;  %5868 = vmatprep.subr.bf16.mxu1 %v3264_v12  ;;  %v3053_v0 = vmul.f32 0.088388346, %v3021_v50 }
 0x310   : > { %v3022_v20 = vadd.f32 %v2990_v24, %v2958_v7  ;;  %5821 = vmatmul.mubr.bf16.gmra.mxu1 %v3070_v51  ;;  %v3071_v32 = vpack.c.bf16 %v3052_v48, %v3051_v54  ;;  %v3023_v21 = vadd.f32 %v2991_v28, %v2959_v35 }
 0x311   : > { %v2926_v9 = vpop.permute.xlu1 %2925  ;;  %v2928_v33 = vpop.permute.xlu0 %2927  ;;  %5869 = vmatpush3.bf16.msra.mxu1 %v3264_v12 }
 0x312   : > { %v3054_v16 = vmul.f32 0.088388346, %v3022_v20  ;;  %v2992_v59 = vmul.f32 %v6616_v6, %v2926_v9  ;;  %5824 = vmatprep.mubr.bf16.mxu1 %v3071_v32  ;;  %5870 = vmatprep.subr.bf16.mxu1 %v3263_v34  ;;  %v2993_v25 = vmul.f32 %v6617_v18, %v2928_v33  ;;  %v3055_v53 = vmul.f32 0.088388346, %v3023_v21 }
 0x314   : > { %v3024_v58 = vadd.f32 %v2992_v59, %v2960_v23  ;;  %v3072_v61 = vpack.c.bf16 %v3054_v16, %v3053_v0  ;;  %v3025_v37 = vadd.f32 %v2993_v25, %v2961_v46 }
 0x315   : > { %v2930_v57 = vpop.permute.xlu1 %2929  ;;  %5871 = vmatpush3.bf16.msra.mxu1 %v3263_v34 }
 0x316   : > { %v3056_v8 = vmul.f32 0.088388346, %v3024_v58  ;;  %v2994_v30 = vmul.f32 %v6620_v15, %v2930_v57  ;;  %5872 = vmatprep.subr.bf16.mxu1 %v3262_v26  ;;  %v3057_v56 = vmul.f32 0.088388346, %v3025_v37 }
 0x318   : > { %v3026_v55 = vadd.f32 %v2994_v30, %v2962_v45  ;;  %5825 = vmatmul.mubr.bf16.gmra.mxu1 %v3072_v61  ;;  %v3073_v43 = vpack.c.bf16 %v3056_v8, %v3055_v53 }
 0x319   : > { %5873 = vmatpush3.bf16.msra.mxu1 %v3262_v26 }
 0x31a   : > { %v3058_v13 = vmul.f32 0.088388346, %v3026_v55  ;;  %5828 = vmatprep.mubr.bf16.mxu1 %v3073_v43  ;;  %5874 = vmatprep.subr.bf16.mxu1 %v9240_v62 }
 0x31c   : > { %v3074_v60 = vpack.c.bf16 %v3058_v13, %v3057_v56 }
 0x31d   : > { %5875 = vmatpush3.bf16.msra.mxu1 %v9240_v62 }
 0x31e   : > { %5876 = vmatprep.subr.bf16.mxu1 %v9241_v29 }
 0x320   : > { %5829 = vmatmul.mubr.bf16.gmra.mxu1 %v3074_v60 }
 0x321   : > { %5877 = vmatpush3.bf16.msra.mxu1 %v9241_v29 }
 0x322   : > { %5878 = vmatprep.subr.bf16.mxu1 %v9242_v52 }
 0x325   : > { %5879 = vmatpush3.bf16.msra.mxu1 %v9242_v52 }
 0x348   : > { %v5786_v12 = vpop.f32.mrf.mxu0 }
 0x34a   : > { %v3301_v1 = vpop.f32.mrf.mxu0 }
 0x34b   : > { %3461 = vmax.xlane.f32.xlu0 %v3301_v1 }
 0x34c   : > { %v5787_v11 = vpop.f32.mrf.mxu0 }
 0x34e   : > { %v3304_v10 = vpop.f32.mrf.mxu0 }
 0x34f   : > { %3465 = vmax.xlane.f32.xlu0 %v5786_v12  ;;  %3463 = vmax.xlane.f32.xlu1 %v3304_v10 }
 0x353   : > { %3467 = vmax.xlane.f32.xlu0 %v5787_v11 }
 0x396   : > { %v8393_v5 = vpop.f32.mrf.mxu0 }
 0x398   : > { %v8395_v63 = vpop.f32.mrf.mxu0 }
 0x399   : > { %3469 = vmax.xlane.f32.xlu1 %v8395_v63 }
 0x39a   : > { %v8398_v7 = vpop.f32.mrf.mxu0 }
 0x39c   : > { %v8400_v44 = vpop.f32.mrf.mxu0 }
 0x39d   : > { %3473 = vmax.xlane.f32.xlu1 %v8393_v5  ;;  %3471 = vmax.xlane.f32.xlu0 %v8400_v44 }
 0x3a1   : > { %3475 = vmax.xlane.f32.xlu0 %v8398_v7 }
 0x3a6   : > { %v8405_v22 = vpop.f32.mrf.mxu0 }
 0x3a8   : > { %v8407_v47 = vpop.f32.mrf.mxu0 }
 0x3a9   : > { %3477 = vmax.xlane.f32.xlu1 %v8407_v47 }
 0x3aa   : > { %v8410_v17 = vpop.f32.mrf.mxu0 }
 0x3ac   : > { %v8412_v54 = vpop.f32.mrf.mxu0 }
 0x3ad   : > { %3481 = vmax.xlane.f32.xlu1 %v8405_v22  ;;  %3479 = vmax.xlane.f32.xlu0 %v8412_v54 }
 0x3b1   : > { %3483 = vmax.xlane.f32.xlu0 %v8410_v17 }
 0x3b6   : > { %v8417_v19 = vpop.f32.mrf.mxu0 }
 0x3b8   : > { %v8419_v27 = vpop.f32.mrf.mxu0 }
 0x3b9   : > { %3485 = vmax.xlane.f32.xlu1 %v8419_v27 }
 0x3ba   : > { %v8422_v39 = vpop.f32.mrf.mxu0 }
 0x3bc   : > { %v8424_v40 = vpop.f32.mrf.mxu0 }
 0x3bd   : > { %3489 = vmax.xlane.f32.xlu1 %v8417_v19  ;;  %3487 = vmax.xlane.f32.xlu0 %v8424_v40 }
 0x3c1   : > { %3491 = vmax.xlane.f32.xlu0 %v8422_v39 }
 0x3c8   : > { %v8429_v34 = vpop.f32.mrf.mxu1 }
 0x3ca   : > { %v8431_v51 = vpop.f32.mrf.mxu1 }
 0x3cb   : > { %3493 = vmax.xlane.f32.xlu1 %v8431_v51 }
 0x3cc   : > { %v8434_v48 = vpop.f32.mrf.mxu1 }
 0x3ce   : > { %v8436_v4 = vpop.f32.mrf.mxu1 }
 0x3cf   : > { %3497 = vmax.xlane.f32.xlu1 %v8429_v34  ;;  %3495 = vmax.xlane.f32.xlu0 %v8436_v4 }
 0x3d0   : > { %v8440_v24 = vpop.f32.mrf.mxu1 }
 0x3d2   : > { %v8442_v3 = vpop.f32.mrf.mxu1 }
 0x3d3   : > { %3501 = vmax.xlane.f32.xlu1 %v8442_v3  ;;  %3499 = vmax.xlane.f32.xlu0 %v8434_v48 }
 0x3d4   : > { %v8446_v28 = vpop.f32.mrf.mxu1  ;;  %v3462_v49 = vpop.xlane.xlu0 %3461 }
 0x3d5   : > { %v3525_v38 = vsub.f32 %v3301_v1, %v3462_v49 }
 0x3d6   : > { %v8448_v35 = vpop.f32.mrf.mxu1 }
 0x3d7   : > { %v3557_v50 = vmul.f32 1.442695, %v3525_v38  ;;  %3505 = vmax.xlane.f32.xlu1 %v8440_v24  ;;  %3503 = vmax.xlane.f32.xlu0 %v8448_v35 }
 0x3d8   : > { %v3466_v20 = vpop.xlane.xlu0 %3465  ;;  %v3464_v31 = vpop.xlane.xlu1 %3463 }
 0x3d9   : > { %6480 = vpow2.f32 %v3557_v50  ;;  %v3527_v32 = vsub.f32 %v5786_v12, %v3466_v20  ;;  %v3526_v2 = vsub.f32 %v3304_v10, %v3464_v31  ;;  %v8455_v59 = vpop.f32.mrf.mxu1 }
 0x3db   : > { %v3561_v23 = vmul.f32 1.442695, %v3527_v32  ;;  %3507 = vmax.xlane.f32.xlu0 %v8446_v28  ;;  %v3559_v9 = vmul.f32 1.442695, %v3526_v2  ;;  %v8462_v58 = vpop.f32.mrf.mxu1 }
 0x3dc   : > { %v3468_v33 = vpop.xlane.xlu0 %3467 }
 0x3dd   : > { %6482 = vpow2.f32 %v3561_v23  ;;  %v3528_v16 = vsub.f32 %v5787_v11, %v3468_v33  ;;  %v8468_v25 = vpop.f32.mrf.mxu1 }
 0x3de   : > { %6484 = vpow2.f32 %v3559_v9 }
 0x3df   : > { %v3563_v21 = vmul.f32 1.442695, %v3528_v16  ;;  %v8472_v36 = vpop.f32.mrf.mxu1 }
 0x3e1   : > { %6486 = vpow2.f32 %v3563_v21  ;;  %v8484_v62 = vpop.f32.mrf.mxu1 }
 0x3e3   : > { %v8493_v10 = vpop.f32.mrf.mxu1 }
 0x3e6   : > { %v8453_v6 = vpop.eup %6480 }
 0x3e7   : > { %3621 = vadd.xlane.f32.xlu1 %v8453_v6 }
 0x3ea   : > { %v8458_v26 = vpop.eup %6482 }
 0x3eb   : > { %v8460_v0 = vpop.eup %6484  ;;  %3625 = vadd.xlane.f32.xlu1 %v8458_v26 }
 0x3ec   : > { %3623 = vadd.xlane.f32.xlu0 %v8460_v0 }
 0x3ee   : > { %v8466_v18 = vpop.eup %6486 }
 0x3ef   : > { %3509 = vmax.xlane.f32.xlu1 %v8462_v58 }
 0x3f0   : > { %3627 = vadd.xlane.f32.xlu0 %v8466_v18 }
 0x3f3   : > { %3513 = vmax.xlane.f32.xlu1 %v8455_v59 }
 0x3f4   : > { %3511 = vmax.xlane.f32.xlu0 %v8472_v36 }
 0x3f8   : > { %3515 = vmax.xlane.f32.xlu0 %v8468_v25 }
 0x422   : > { %v3470_v41 = vpop.xlane.xlu1 %3469 }
 0x423   : > { %v3529_v46 = vsub.f32 %v8395_v63, %v3470_v41 }
 0x425   : > { %v3565_v42 = vmul.f32 1.442695, %v3529_v46 }
 0x426   : > { %v3474_v14 = vpop.xlane.xlu1 %3473  ;;  %v3472_v45 = vpop.xlane.xlu0 %3471 }
 0x427   : > { %6488 = vpow2.f32 %v3565_v42  ;;  %v3531_v57 = vsub.f32 %v8393_v5, %v3474_v14  ;;  %v3530_v61 = vsub.f32 %v8400_v44, %v3472_v45 }
 0x429   : > { %v3569_v53 = vmul.f32 1.442695, %v3531_v57  ;;  %v3567_v8 = vmul.f32 1.442695, %v3530_v61 }
 0x42a   : > { %v3476_v15 = vpop.xlane.xlu0 %3475 }
 0x42b   : > { %6490 = vpow2.f32 %v3569_v53  ;;  %v3532_v30 = vsub.f32 %v8398_v7, %v3476_v15 }
 0x42c   : > { %6492 = vpow2.f32 %v3567_v8 }
 0x42d   : > { %v3571_v37 = vmul.f32 1.442695, %v3532_v30 }
 0x42f   : > { %6494 = vpow2.f32 %v3571_v37 }
 0x432   : > { %v3478_v55 = vpop.xlane.xlu1 %3477 }
 0x433   : > { %v3533_v43 = vsub.f32 %v8407_v47, %v3478_v55 }
 0x434   : > { %v8482_v13 = vpop.eup %6488 }
 0x435   : > { %v3573_v56 = vmul.f32 1.442695, %v3533_v43  ;;  %3629 = vadd.xlane.f32.xlu1 %v8482_v13 }
 0x436   : > { %v3482_v60 = vpop.xlane.xlu1 %3481  ;;  %v3480_v29 = vpop.xlane.xlu0 %3479 }
 0x437   : > { %6496 = vpow2.f32 %v3573_v56  ;;  %v3535_v52 = vsub.f32 %v8405_v22, %v3482_v60  ;;  %v3534_v12 = vsub.f32 %v8412_v54, %v3480_v29  ;;  %v8500_v22 = vpop.f32.mrf.mxu1 }
 0x438   : > { %v8489_v1 = vpop.eup %6490 }
 0x439   : > { %v8491_v11 = vpop.eup %6492  ;;  %v3577_v5 = vmul.f32 1.442695, %v3535_v52  ;;  %v3575_v63 = vmul.f32 1.442695, %v3534_v12  ;;  %3633 = vadd.xlane.f32.xlu1 %v8489_v1  ;;  %v8504_v49 = vpop.f32.mrf.mxu1 }
 0x43a   : > { %3631 = vadd.xlane.f32.xlu0 %v8491_v11  ;;  %v3484_v7 = vpop.xlane.xlu0 %3483 }
 0x43b   : > { %6498 = vpow2.f32 %v3577_v5  ;;  %v3536_v44 = vsub.f32 %v8410_v17, %v3484_v7 }
 0x43c   : > { %v8498_v47 = vpop.eup %6494  ;;  %6500 = vpow2.f32 %v3575_v63 }
 0x43d   : > { %v3579_v54 = vmul.f32 1.442695, %v3536_v44  ;;  %3517 = vmax.xlane.f32.xlu1 %v8493_v10 }
 0x43e   : > { %3635 = vadd.xlane.f32.xlu0 %v8498_v47 }
 0x43f   : > { %6502 = vpow2.f32 %v3579_v54 }
 0x441   : > { %3521 = vmax.xlane.f32.xlu1 %v8484_v62 }
 0x442   : > { %3519 = vmax.xlane.f32.xlu0 %v8504_v49  ;;  %v3486_v38 = vpop.xlane.xlu1 %3485 }
 0x443   : > { %v3537_v17 = vsub.f32 %v8419_v27, %v3486_v38 }
 0x444   : > { %v8509_v50 = vpop.eup %6496 }
 0x445   : > { %v3581_v20 = vmul.f32 1.442695, %v3537_v17  ;;  %3637 = vadd.xlane.f32.xlu1 %v8509_v50 }
 0x446   : > { %3523 = vmax.xlane.f32.xlu0 %v8500_v22  ;;  %v3490_v32 = vpop.xlane.xlu1 %3489  ;;  %v3488_v31 = vpop.xlane.xlu0 %3487 }
 0x447   : > { %6504 = vpow2.f32 %v3581_v20  ;;  %v3539_v2 = vsub.f32 %v8417_v19, %v3490_v32  ;;  %v3538_v23 = vsub.f32 %v8424_v40, %v3488_v31 }
 0x448   : > { %v8515_v9 = vpop.eup %6498 }
 0x449   : > { %v8517_v33 = vpop.eup %6500  ;;  %v3585_v16 = vmul.f32 1.442695, %v3539_v2  ;;  %v3583_v27 = vmul.f32 1.442695, %v3538_v23  ;;  %3641 = vadd.xlane.f32.xlu1 %v8515_v9 }
 0x44a   : > { %3639 = vadd.xlane.f32.xlu0 %v8517_v33  ;;  %v3492_v21 = vpop.xlane.xlu0 %3491 }
 0x44b   : > { %6506 = vpow2.f32 %v3585_v16  ;;  %v3540_v41 = vsub.f32 %v8422_v39, %v3492_v21 }
 0x44c   : > { %v8522_v46 = vpop.eup %6502  ;;  %6508 = vpow2.f32 %v3583_v27 }
 0x44d   : > { %v3587_v19 = vmul.f32 1.442695, %v3540_v41 }
 0x44e   : > { %3643 = vadd.xlane.f32.xlu0 %v8522_v46 }
 0x44f   : > { %6510 = vpow2.f32 %v3587_v19 }
 0x454   : > { %v8525_v40 = vpop.eup %6504  ;;  %v3494_v42 = vpop.xlane.xlu1 %3493 }
 0x455   : > { %v3541_v14 = vsub.f32 %v8431_v51, %v3494_v42  ;;  %3645 = vadd.xlane.f32.xlu1 %v8525_v40 }
 0x457   : > { %v3589_v45 = vmul.f32 1.442695, %v3541_v14 }
 0x458   : > { %v8529_v57 = vpop.eup %6506  ;;  %v3498_v61 = vpop.xlane.xlu1 %3497 }
 0x459   : > { %v3496_v53 = vpop.xlane.xlu0 %3495  ;;  %v8531_v39 = vpop.eup %6508  ;;  %6512 = vpow2.f32 %v3589_v45  ;;  %v3543_v8 = vsub.f32 %v8429_v34, %v3498_v61  ;;  %3649 = vadd.xlane.f32.xlu1 %v8529_v57 }
 0x45a   : > { %v3542_v15 = vsub.f32 %v8436_v4, %v3496_v53  ;;  %3647 = vadd.xlane.f32.xlu0 %v8531_v39 }
 0x45b   : > { %v3593_v30 = vmul.f32 1.442695, %v3543_v8 }
 0x45c   : > { %v3591_v51 = vmul.f32 1.442695, %v3542_v15  ;;  %v8537_v37 = vpop.eup %6510  ;;  %v3502_v55 = vpop.xlane.xlu1 %3501 }
 0x45d   : > { %v3500_v43 = vpop.xlane.xlu0 %3499  ;;  %6514 = vpow2.f32 %v3593_v30  ;;  %v3545_v56 = vsub.f32 %v8442_v3, %v3502_v55 }
 0x45e   : > { %v3544_v60 = vsub.f32 %v8434_v48, %v3500_v43  ;;  %6516 = vpow2.f32 %v3591_v51  ;;  %3651 = vadd.xlane.f32.xlu0 %v8537_v37 }
 0x45f   : > { %v3597_v34 = vmul.f32 1.442695, %v3545_v56 }
 0x460   : > { %v3595_v4 = vmul.f32 1.442695, %v3544_v60  ;;  %v3506_v29 = vpop.xlane.xlu1 %3505 }
 0x461   : > { %v3504_v52 = vpop.xlane.xlu0 %3503  ;;  %6518 = vpow2.f32 %v3597_v34  ;;  %v3547_v12 = vsub.f32 %v8440_v24, %v3506_v29  ;;  %v6386_v29 = vld [vmem:[%s7126_s27 + $0xe4] ss:$16 sps:$4 sm:$0xff]  }
 0x462   : > { %v3546_v5 = vsub.f32 %v8448_v35, %v3504_v52  ;;  %6520 = vpow2.f32 %v3595_v4  ;;  %v6389_v52 = vld [vmem:[%s7126_s27 + $0xc4] ss:$16 sps:$4 sm:$0xff]   ;;  %4199 = vmatprep.subr.bf16.mxu0 %v6386_v29 }
 0x463   : > { %v3601_v63 = vmul.f32 1.442695, %v3547_v12  ;;  %v6387_v12 = vld [vmem:[%s7126_s27 + $0xc0] ss:$16 sps:$4 sm:$0xff]  }
 0x464   : > { %v3599_v7 = vmul.f32 1.442695, %v3546_v5  ;;  %v6392_v5 = vld [vmem:[%s7126_s27 + $0xa4] ss:$16 sps:$4 sm:$0xff]  }
 0x465   : > { %v3508_v44 = vpop.xlane.xlu0 %3507  ;;  %6522 = vpow2.f32 %v3601_v63  ;;  %v6390_v63 = vld [vmem:[%s7126_s27 + $0xa0] ss:$16 sps:$4 sm:$0xff]  }
 0x466   : > { %v3548_v3 = vsub.f32 %v8446_v28, %v3508_v44  ;;  %v8545_v48 = vpop.eup %6512  ;;  %6524 = vpow2.f32 %v3599_v7  ;;  %v6395_v7 = vld [vmem:[%s7126_s27 + $0x84] ss:$16 sps:$4 sm:$0xff]   ;;  %v6393_v44 = vld [vmem:[%s7126_s27 + $0x80] ss:$16 sps:$4 sm:$0xff]  }
 0x467   : > { %3653 = vadd.xlane.f32.xlu1 %v8545_v48 }
 0x468   : > { %v3603_v54 = vmul.f32 1.442695, %v3548_v3  ;;  %v6398_v3 = vld [vmem:[%s7126_s27 + $0x64] ss:$16 sps:$4 sm:$0xff]  }
 0x46a   : > { %6526 = vpow2.f32 %v3603_v54  ;;  %v8548_v38 = vpop.eup %6514 }
 0x46b   : > { %v8550_v17 = vpop.eup %6516  ;;  %3657 = vadd.xlane.f32.xlu1 %v8548_v38 }
 0x46c   : > { %3655 = vadd.xlane.f32.xlu0 %v8550_v17 }
 0x46e   : > { %v8554_v24 = vpop.eup %6518 }
 0x46f   : > { %v8556_v35 = vpop.eup %6520  ;;  %3661 = vadd.xlane.f32.xlu1 %v8554_v24 }
 0x470   : > { %3659 = vadd.xlane.f32.xlu0 %v8556_v35  ;;  %v3622_v28 = vpop.xlane.xlu1 %3621 }
 0x471   : > { %6528 = vrcp.f32 %v3622_v28  ;;  %v6396_v28 = vld [vmem:[%s7126_s27 + $0x60] ss:$16 sps:$4 sm:$0xff]  }
 0x472   : > { %v8560_v20 = vpop.eup %6522 }
 0x473   : > { %v8562_v32 = vpop.eup %6524  ;;  %3665 = vadd.xlane.f32.xlu1 %v8560_v20 }
 0x474   : > { %3663 = vadd.xlane.f32.xlu0 %v8562_v32  ;;  %v3626_v31 = vpop.xlane.xlu1 %3625 }
 0x475   : > { %v3624_v2 = vpop.xlane.xlu0 %3623 }
 0x476   : > { %6530 = vrcp.f32 %v3624_v2 }
 0x477   : > { %v8566_v23 = vpop.eup %6526  ;;  %6532 = vrcp.f32 %v3626_v31  ;;  %v6401_v31 = vld [vmem:[%s7126_s27 + $0x44] ss:$16 sps:$4 sm:$0xff]  }
 0x478   : > { %3667 = vadd.xlane.f32.xlu0 %v8566_v23  ;;  %v3510_v16 = vpop.xlane.xlu1 %3509 }
 0x479   : > { %v3549_v27 = vsub.f32 %v8462_v58, %v3510_v16  ;;  %v3628_v21 = vpop.xlane.xlu0 %3627 }
 0x47a   : > { %6534 = vrcp.f32 %v3628_v21 }
 0x47b   : > { %v3605_v41 = vmul.f32 1.442695, %v3549_v27  ;;  %v6399_v27 = vld [vmem:[%s7126_s27 + $0x40] ss:$16 sps:$4 sm:$0xff]  }
 0x47c   : > { %v3514_v19 = vpop.xlane.xlu1 %3513 }
 0x47d   : > { %6536 = vpow2.f32 %v3605_v41  ;;  %v3551_v42 = vsub.f32 %v8455_v59, %v3514_v19  ;;  %v3512_v14 = vpop.xlane.xlu0 %3511 }
 0x47e   : > { %v3550_v45 = vsub.f32 %v8472_v36, %v3512_v14  ;;  %v6529_v8 = vpop.eup %6528 }
 0x47f   : > { %v3609_v61 = vmul.f32 1.442695, %v3551_v42  ;;  %v3717_v55 = vmul.f32 %v6529_v8, %v8453_v6  ;;  %v6402_v8 = vld [vmem:[%s7126_s27 + $0x20] ss:$16 sps:$4 sm:$0xff]  }
 0x480   : > { %v3607_v53 = vmul.f32 1.442695, %v3550_v45 }
 0x481   : > { %6538 = vpow2.f32 %v3609_v61  ;;  %v3516_v15 = vpop.xlane.xlu0 %3515 }
 0x482   : > { %6540 = vpow2.f32 %v3607_v53  ;;  %v3552_v30 = vsub.f32 %v8468_v25, %v3516_v15  ;;  %v6404_v15 = vld [vmem:[%s7126_s27 + $0x24] ss:$16 sps:$4 sm:$0xff]  }
 0x483   : > { %v6531_v51 = vpop.eup %6530 }
 0x484   : > { %v3611_v58 = vmul.f32 1.442695, %v3552_v30  ;;  %v3718_v43 = vmul.f32 %v6531_v51, %v8460_v0  ;;  %v6533_v56 = vpop.eup %6532 }
 0x485   : > { %v3719_v60 = vmul.f32 %v6533_v56, %v8458_v26  ;;  %v6407_v56 = vld [vmem:[%s7126_s27 + $0x4] ss:$16 sps:$4 sm:$0xff]  }
 0x486   : > { %6542 = vpow2.f32 %v3611_v58  ;;  %v3749_v59 = vpack.c.bf16 %v3718_v43, %v3717_v55 }
 0x487   : > { %v6535_v36 = vpop.eup %6534 }
 0x488   : > { %v3720_v34 = vmul.f32 %v6535_v36, %v8466_v18  ;;  %5848 = vmatprep.mubr.bf16.mxu0 %v3749_v59  ;;  %v6384_v18 = vld [vmem:[%s7126_s27 + $0xe0] ss:$16 sps:$4 sm:$0xff]  }
 0x48a   : > { %v8577_v25 = vpop.eup %6536  ;;  %v3750_v4 = vpack.c.bf16 %v3720_v34, %v3719_v60 }
 0x48b   : > { %3669 = vadd.xlane.f32.xlu1 %v8577_v25 }
 0x48c   : > { %5849 = vmatmul.mubr.bf16.vlgmr.msra.gmra.mxu0 %v3750_v4 }
 0x48d   : > { %4200 = vmatpush1.bf16.msra.mxu0 %v6384_v18 }
 0x48e   : > { %v8580_v6 = vpop.eup %6538  ;;  %4201 = vmatprep.subr.bf16.mxu0 %v6389_v52 }
 0x48f   : > { %v8582_v0 = vpop.eup %6540  ;;  %3673 = vadd.xlane.f32.xlu1 %v8580_v6 }
 0x490   : > { %3671 = vadd.xlane.f32.xlu0 %v8582_v0 }
 0x491   : > { %4202 = vmatpush1.bf16.msra.mxu0 %v6387_v12 }
 0x492   : > { %4203 = vmatprep.subr.bf16.mxu0 %v6392_v5 }
 0x493   : > { %v8586_v26 = vpop.eup %6542 }
 0x494   : > { %3675 = vadd.xlane.f32.xlu0 %v8586_v26 }
 0x495   : > { %4204 = vmatpush1.bf16.msra.mxu0 %v6390_v63 }
 0x496   : > { %4205 = vmatprep.subr.bf16.mxu0 %v6395_v7 }
 0x499   : > { %4206 = vmatpush1.bf16.msra.mxu0 %v6393_v44 }
 0x49a   : > { %4207 = vmatprep.subr.bf16.mxu0 %v6398_v3 }
 0x49d   : > { %4208 = vmatpush1.bf16.msra.mxu0 %v6396_v28 }
 0x49e   : > { %4209 = vmatprep.subr.bf16.mxu0 %v6401_v31 }
 0x4a1   : > { %4210 = vmatpush1.bf16.msra.mxu0 %v6399_v27  ;;  %v6410_v27 = vld [vmem:[%s7126_s27 + $0xec] ss:$16 sps:$4 sm:$0xff]  }
 0x4a2   : > { %4211 = vmatprep.subr.bf16.mxu0 %v6404_v15  ;;  %4312 = vmatprep.subr.bf16.mxu1 %v6410_v27  ;;  %v6422_v27 = vld [vmem:[%s7126_s27 + $0x6c] ss:$16 sps:$4 sm:$0xff]  }
 0x4a5   : > { %4212 = vmatpush1.bf16.msra.mxu0 %v6402_v8 }
 0x4a6   : > { %4213 = vmatprep.subr.bf16.mxu0 %v6407_v56 }
 0x4be   : > { %v3630_v54 = vpop.xlane.xlu1 %3629 }
 0x4bf   : > { %6544 = vrcp.f32 %v3630_v54 }
 0x4c2   : > { %v3634_v2 = vpop.xlane.xlu1 %3633 }
 0x4c3   : > { %v3632_v16 = vpop.xlane.xlu0 %3631 }
 0x4c4   : > { %6546 = vrcp.f32 %v3632_v16 }
 0x4c5   : > { %6548 = vrcp.f32 %v3634_v2 }
 0x4c6   : > { %v3518_v21 = vpop.xlane.xlu1 %3517 }
 0x4c7   : > { %v3553_v41 = vsub.f32 %v8493_v10, %v3518_v21  ;;  %v3636_v19 = vpop.xlane.xlu0 %3635 }
 0x4c8   : > { %6550 = vrcp.f32 %v3636_v19 }
 0x4c9   : > { %v3613_v42 = vmul.f32 1.442695, %v3553_v41 }
 0x4ca   : > { %v3522_v14 = vpop.xlane.xlu1 %3521 }
 0x4cb   : > { %6552 = vpow2.f32 %v3613_v42  ;;  %v3555_v45 = vsub.f32 %v8484_v62, %v3522_v14  ;;  %v3520_v61 = vpop.xlane.xlu0 %3519  ;;  %v6405_v62 = vld [vmem:[%s7126_s27] ss:$16 sps:$4 sm:$0xff]  }
 0x4cc   : > { %v3554_v53 = vsub.f32 %v8504_v49, %v3520_v61  ;;  %v6545_v10 = vpop.eup %6544  ;;  %4214 = vmatpush1.bf16.msra.mxu0 %v6405_v62 }
 0x4cd   : > { %v3617_v30 = vmul.f32 1.442695, %v3555_v45  ;;  %v3721_v60 = vmul.f32 %v6545_v10, %v8482_v13 }
 0x4ce   : > { %v3615_v51 = vmul.f32 1.442695, %v3554_v53  ;;  %v3638_v58 = vpop.xlane.xlu1 %3637 }
 0x4cf   : > { %6554 = vpow2.f32 %v3617_v30  ;;  %v3524_v55 = vpop.xlane.xlu0 %3523 }
 0x4d0   : > { %6556 = vpow2.f32 %v3615_v51  ;;  %v3556_v43 = vsub.f32 %v8500_v22, %v3524_v55 }
 0x4d1   : > { %v6547_v59 = vpop.eup %6546  ;;  %6558 = vrcp.f32 %v3638_v58 }
 0x4d2   : > { %v3619_v36 = vmul.f32 1.442695, %v3556_v43  ;;  %v3722_v49 = vmul.f32 %v6547_v59, %v8491_v11  ;;  %v6549_v34 = vpop.eup %6548  ;;  %v3642_v4 = vpop.xlane.xlu1 %3641 }
 0x4d3   : > { %v3640_v18 = vpop.xlane.xlu0 %3639  ;;  %v3723_v22 = vmul.f32 %v6549_v34, %v8489_v1 }
 0x4d4   : > { %6560 = vpow2.f32 %v3619_v36  ;;  %v3751_v29 = vpack.c.bf16 %v3722_v49, %v3721_v60 }
 0x4d5   : > { %v6551_v52 = vpop.eup %6550  ;;  %6562 = vrcp.f32 %v3640_v18 }
 0x4d6   : > { %6564 = vrcp.f32 %v3642_v4  ;;  %5852 = vmatprep.mubr.bf16.mxu0 %v3751_v29  ;;  %v3724_v12 = vmul.f32 %v6551_v52, %v8498_v47 }
 0x4d7   : > { %v3644_v5 = vpop.xlane.xlu0 %3643 }
 0x4d8   : > { %v8613_v13 = vpop.eup %6552  ;;  %6566 = vrcp.f32 %v3644_v5  ;;  %v3752_v11 = vpack.c.bf16 %v3724_v12, %v3723_v22  ;;  %v6408_v22 = vld [vmem:[%s7126_s27 + $0xe8] ss:$16 sps:$4 sm:$0xff]   ;;  %v6413_v5 = vld [vmem:[%s7126_s27 + $0xcc] ss:$16 sps:$4 sm:$0xff]  }
 0x4d9   : > { %3677 = vadd.xlane.f32.xlu1 %v8613_v13 }
 0x4da   : > { %5853 = vmatmul.mubr.bf16.gmra.mxu0 %v3752_v11 }
 0x4dc   : > { %v8616_v63 = vpop.eup %6554 }
 0x4dd   : > { %v8618_v7 = vpop.eup %6556  ;;  %3681 = vadd.xlane.f32.xlu1 %v8616_v63 }
 0x4de   : > { %3679 = vadd.xlane.f32.xlu0 %v8618_v7  ;;  %v3646_v1 = vpop.xlane.xlu1 %3645  ;;  %v6559_v44 = vpop.eup %6558 }
 0x4df   : > { %6568 = vrcp.f32 %v3646_v1  ;;  %v3725_v2 = vmul.f32 %v6559_v44, %v8509_v50  ;;  %v6411_v44 = vld [vmem:[%s7126_s27 + $0xc8] ss:$16 sps:$4 sm:$0xff]  }
 0x4e1   : > { %v8622_v47 = vpop.eup %6560 }
 0x4e2   : > { %v6563_v3 = vpop.eup %6562  ;;  %3683 = vadd.xlane.f32.xlu0 %v8622_v47  ;;  %v3650_v28 = vpop.xlane.xlu1 %3649 }
 0x4e3   : > { %v6565_v54 = vpop.eup %6564  ;;  %v3648_v31 = vpop.xlane.xlu0 %3647  ;;  %v3726_v16 = vmul.f32 %v6563_v3, %v8517_v33 }
 0x4e4   : > { %6570 = vrcp.f32 %v3648_v31  ;;  %v3727_v19 = vmul.f32 %v6565_v54, %v8515_v9 }
 0x4e5   : > { %v6567_v21 = vpop.eup %6566  ;;  %v3753_v41 = vpack.c.bf16 %v3726_v16, %v3725_v2  ;;  %6572 = vrcp.f32 %v3650_v28  ;;  %v6417_v16 = vld [vmem:[%s7126_s27 + $0x88] ss:$16 sps:$4 sm:$0xff]  }
 0x4e6   : > { %v3728_v42 = vmul.f32 %v6567_v21, %v8522_v46 }
 0x4e7   : > { %5856 = vmatprep.mubr.bf16.mxu0 %v3753_v41  ;;  %v3652_v14 = vpop.xlane.xlu0 %3651  ;;  %v6425_v41 = vld [vmem:[%s7126_s27 + $0x4c] ss:$16 sps:$4 sm:$0xff]  }
 0x4e8   : > { %6574 = vrcp.f32 %v3652_v14  ;;  %v3754_v45 = vpack.c.bf16 %v3728_v42, %v3727_v19  ;;  %v6423_v42 = vld [vmem:[%s7126_s27 + $0x48] ss:$16 sps:$4 sm:$0xff]   ;;  %v6428_v14 = vld [vmem:[%s7126_s27 + $0x2c] ss:$16 sps:$4 sm:$0xff]  }
 0x4ea   : > { %5857 = vmatmul.mubr.bf16.gmra.mxu0 %v3754_v45  ;;  %v6426_v45 = vld [vmem:[%s7126_s27 + $0x28] ss:$16 sps:$4 sm:$0xff]  }
 0x4ec   : > { %v6569_v61 = vpop.eup %6568 }
 0x4ed   : > { %v3729_v33 = vmul.f32 %v6569_v61, %v8525_v40  ;;  %v6872_v40 = vmov 0   ;;  %v6431_v61 = vld [vmem:[%s7126_s27 + $0xc] ss:$16 sps:$4 sm:$0xff]  }
 0x4f0   : > { %v3654_v53 = vpop.xlane.xlu1 %3653 }
 0x4f1   : > { %v6571_v50 = vpop.eup %6570  ;;  %6576 = vrcp.f32 %v3654_v53 }
 0x4f2   : > { %v3730_v8 = vmul.f32 %v6571_v50, %v8531_v39  ;;  %v6573_v15 = vpop.eup %6572  ;;  %v6429_v50 = vld [vmem:[%s7126_s27 + $0x8] ss:$16 sps:$4 sm:$0xff]  }
 0x4f3   : > { %v3731_v46 = vmul.f32 %v6573_v15, %v8529_v57 }
 0x4f4   : > { %v3658_v30 = vpop.xlane.xlu1 %3657  ;;  %v3755_v51 = vpack.c.bf16 %v3730_v8, %v3729_v33 }
 0x4f5   : > { %v6575_v58 = vpop.eup %6574  ;;  %v3656_v9 = vpop.xlane.xlu0 %3655 }
 0x4f6   : > { %6578 = vrcp.f32 %v3656_v9  ;;  %5860 = vmatprep.mubr.bf16.mxu0 %v3755_v51  ;;  %v3732_v10 = vmul.f32 %v6575_v58, %v8537_v37 }
 0x4f7   : > { %6580 = vrcp.f32 %v3658_v30 }
 0x4f8   : > { %v3662_v55 = vpop.xlane.xlu1 %3661  ;;  %v3756_v43 = vpack.c.bf16 %v3732_v10, %v3731_v46 }
 0x4f9   : > { %v3660_v56 = vpop.xlane.xlu0 %3659 }
 0x4fa   : > { %6582 = vrcp.f32 %v3660_v56  ;;  %5861 = vmatmul.mubr.bf16.gmra.mxu0 %v3756_v43  ;;  %v6437_v43 = vld [vmem:[%s7126_s27 + $0x1ec] ss:$16 sps:$4 sm:$0xff]  }
 0x4fb   : > { %4231 = vmatprep.mubr.bf16.mxu0 %v6872_v40  ;;  %6584 = vrcp.f32 %v3662_v55  ;;  %v6434_v55 = vld [vmem:[%s7126_s27 + $0x1e4] ss:$16 sps:$4 sm:$0xff]  }
 0x4fc   : > { %v3666_v39 = vpop.xlane.xlu1 %3665  ;;  %4585 = vmatprep.subr.bf16.mxu0 %v6434_v55 }
 0x4fd   : > { %v3664_v59 = vpop.xlane.xlu0 %3663 }
 0x4fe   : > { %6586 = vrcp.f32 %v3664_v59  ;;  %v6577_v62 = vpop.eup %6576  ;;  %v6432_v59 = vld [vmem:[%s7126_s27 + $0x1e0] ss:$16 sps:$4 sm:$0xff]  }
 0x4ff   : > { %6588 = vrcp.f32 %v3666_v39  ;;  %v3733_v36 = vmul.f32 %v6577_v62, %v8545_v48 }
 0x501   : > { %v3668_v57 = vpop.xlane.xlu0 %3667 }
 0x502   : > { %6590 = vrcp.f32 %v3668_v57  ;;  %v6446_v57 = vld [vmem:[%s7126_s27 + $0x1a4] ss:$16 sps:$4 sm:$0xff]  }
 0x503   : > { %v6579_v37 = vpop.eup %6578 }
 0x504   : > { %v3734_v60 = vmul.f32 %v6579_v37, %v8550_v17  ;;  %v6581_v49 = vpop.eup %6580  ;;  %v6444_v37 = vld [vmem:[%s7126_s27 + $0x1a0] ss:$16 sps:$4 sm:$0xff]  }
 0x505   : > { %v3735_v18 = vmul.f32 %v6581_v49, %v8548_v38  ;;  %v6450_v49 = vld [vmem:[%s7126_s27 + $0x180] ss:$16 sps:$4 sm:$0xff]  }
 0x506   : > { %v3757_v34 = vpack.c.bf16 %v3734_v60, %v3733_v36  ;;  %v6452_v60 = vld [vmem:[%s7126_s27 + $0x184] ss:$16 sps:$4 sm:$0xff]  }
 0x507   : > { %v6583_v4 = vpop.eup %6582 }
 0x508   : > { %v3736_v29 = vmul.f32 %v6583_v4, %v8556_v35  ;;  %5880 = vmatprep.mubr.bf16.mxu1 %v3757_v34  ;;  %v6585_v52 = vpop.eup %6584  ;;  %v6416_v35 = vld [vmem:[%s7126_s27 + $0xac] ss:$16 sps:$4 sm:$0xff]   ;;  %v6458_v34 = vld [vmem:[%s7126_s27 + $0x164] ss:$16 sps:$4 sm:$0xff]  }
 0x509   : > { %v3737_v48 = vmul.f32 %v6585_v52, %v8554_v24  ;;  %v6414_v24 = vld [vmem:[%s7126_s27 + $0xa8] ss:$16 sps:$4 sm:$0xff]   ;;  %v6462_v52 = vld [vmem:[%s7126_s27 + $0x140] ss:$16 sps:$4 sm:$0xff]  }
 0x50a   : > { %v3758_v12 = vpack.c.bf16 %v3736_v29, %v3735_v18  ;;  %v6456_v18 = vld [vmem:[%s7126_s27 + $0x160] ss:$16 sps:$4 sm:$0xff]   ;;  %v6464_v29 = vld [vmem:[%s7126_s27 + $0x144] ss:$16 sps:$4 sm:$0xff]  }
 0x50b   : > { %v6587_v11 = vpop.eup %6586 }
 0x50c   : > { %5881 = vmatmul.mubr.bf16.vlgmr.msra.gmra.mxu1 %v3758_v12  ;;  %v3738_v17 = vmul.f32 %v6587_v11, %v8562_v32  ;;  %v6589_v1 = vpop.eup %6588  ;;  %v6419_v32 = vld [vmem:[%s7126_s27 + $0x8c] ss:$16 sps:$4 sm:$0xff]   ;;  %v6468_v11 = vld [vmem:[%s7126_s27 + $0x120] ss:$16 sps:$4 sm:$0xff]  }
 0x50d   : > { %4313 = vmatpush1.bf16.msra.mxu1 %v6408_v22  ;;  %v3739_v54 = vmul.f32 %v6589_v1, %v8560_v20  ;;  %v6474_v1 = vld [vmem:[%s7126_s27 + $0x100] ss:$16 sps:$4 sm:$0xff]  }
 0x50e   : > { %v3759_v38 = vpack.c.bf16 %v3738_v17, %v3737_v48  ;;  %4314 = vmatprep.subr.bf16.mxu1 %v6413_v5  ;;  %v6470_v5 = vld [vmem:[%s7126_s27 + $0x124] ss:$16 sps:$4 sm:$0xff]  }
 0x50f   : > { %v6591_v3 = vpop.eup %6590  ;;  %v6476_v17 = vld [vmem:[%s7126_s27 + $0x104] ss:$16 sps:$4 sm:$0xff]  }
 0x510   : > { %5884 = vmatprep.mubr.bf16.mxu1 %v3759_v38  ;;  %v3740_v28 = vmul.f32 %v6591_v3, %v8566_v23  ;;  %v6420_v23 = vld [vmem:[%s7126_s27 + $0x68] ss:$16 sps:$4 sm:$0xff]  }
 0x511   : > { %4315 = vmatpush1.bf16.msra.mxu1 %v6411_v44 }
 0x512   : > { %v3760_v31 = vpack.c.bf16 %v3740_v28, %v3739_v54  ;;  %4316 = vmatprep.subr.bf16.mxu1 %v6416_v35 }
 0x514   : > { %5885 = vmatmul.mubr.bf16.gmra.mxu1 %v3760_v31  ;;  %v3670_v2 = vpop.xlane.xlu1 %3669 }
 0x515   : > { %4317 = vmatpush1.bf16.msra.mxu1 %v6414_v24  ;;  %6592 = vrcp.f32 %v3670_v2 }
 0x516   : > { %4318 = vmatprep.subr.bf16.mxu1 %v6419_v32 }
 0x518   : > { %v3674_v20 = vpop.xlane.xlu1 %3673 }
 0x519   : > { %v3672_v21 = vpop.xlane.xlu0 %3671  ;;  %4319 = vmatpush1.bf16.msra.mxu1 %v6417_v16  ;;  %v6443_v16 = vld [vmem:[%s7126_s27 + $0x1cc] ss:$16 sps:$4 sm:$0xff]  }
 0x51a   : > { %6594 = vrcp.f32 %v3672_v21  ;;  %4320 = vmatprep.subr.bf16.mxu1 %v6422_v27  ;;  %v6455_v27 = vld [vmem:[%s7126_s27 + $0x18c] ss:$16 sps:$4 sm:$0xff]  }
 0x51b   : > { %6596 = vrcp.f32 %v3674_v20  ;;  %v6453_v20 = vld [vmem:[%s7126_s27 + $0x188] ss:$16 sps:$4 sm:$0xff]   ;;  %v6461_v21 = vld [vmem:[%s7126_s27 + $0x16c] ss:$16 sps:$4 sm:$0xff]  }
 0x51d   : > { %v3676_v19 = vpop.xlane.xlu0 %3675  ;;  %4321 = vmatpush1.bf16.msra.mxu1 %v6420_v23  ;;  %v6459_v23 = vld [vmem:[%s7126_s27 + $0x168] ss:$16 sps:$4 sm:$0xff]  }
 0x51e   : > { %6598 = vrcp.f32 %v3676_v19  ;;  %4322 = vmatprep.subr.bf16.mxu1 %v6425_v41  ;;  %v6467_v41 = vld [vmem:[%s7126_s27 + $0x14c] ss:$16 sps:$4 sm:$0xff]   ;;  %v6465_v19 = vld [vmem:[%s7126_s27 + $0x148] ss:$16 sps:$4 sm:$0xff]  }
 0x521   : > { %4323 = vmatpush1.bf16.msra.mxu1 %v6423_v42  ;;  %v6473_v42 = vld [vmem:[%s7126_s27 + $0x12c] ss:$16 sps:$4 sm:$0xff]  }
 0x522   : > { %4324 = vmatprep.subr.bf16.mxu1 %v6428_v14  ;;  %v6593_v53 = vpop.eup %6592 }
 0x523   : > { %v3741_v8 = vmul.f32 %v6593_v53, %v8577_v25  ;;  %v6479_v53 = vld [vmem:[%s7126_s27 + $0x10c] ss:$16 sps:$4 sm:$0xff]  }
 0x525   : > { %4325 = vmatpush1.bf16.msra.mxu1 %v6426_v45  ;;  %v6471_v45 = vld [vmem:[%s7126_s27 + $0x128] ss:$16 sps:$4 sm:$0xff]  }
 0x526   : > { %4326 = vmatprep.subr.bf16.mxu1 %v6431_v61 }
 0x527   : > { %v6595_v33 = vpop.eup %6594 }
 0x528   : > { %v3742_v15 = vmul.f32 %v6595_v33, %v8582_v0  ;;  %v6597_v30 = vpop.eup %6596 }
 0x529   : > { %4327 = vmatpush1.bf16.msra.mxu1 %v6429_v50  ;;  %v3743_v9 = vmul.f32 %v6597_v30, %v8580_v6  ;;  %v6440_v6 = vld [vmem:[%s7126_s27 + $0x1c4] ss:$16 sps:$4 sm:$0xff]  }
 0x52a   : > { %v3761_v51 = vpack.c.bf16 %v3742_v15, %v3741_v8  ;;  %4698 = vmatprep.subr.bf16.mxu1 %v6437_v43  ;;  %v6477_v15 = vld [vmem:[%s7126_s27 + $0x108] ss:$16 sps:$4 sm:$0xff]  }
 0x52b   : > { %v6599_v58 = vpop.eup %6598 }
 0x52c   : > { %5888 = vmatprep.mubr.bf16.mxu1 %v3761_v51  ;;  %v3744_v46 = vmul.f32 %v6599_v58, %v8586_v26  ;;  %v6438_v26 = vld [vmem:[%s7126_s27 + $0x1c0] ss:$16 sps:$4 sm:$0xff]  }
 0x52e   : > { %v3762_v10 = vpack.c.bf16 %v3744_v46, %v3743_v9 }
 0x530   : > { %5889 = vmatmul.mubr.bf16.gmra.mxu1 %v3762_v10 }
 0x54c   : > { %v5850_v25 = vpop.f32.mrf.mxu0 }
 0x54e   : > { %v3799_v0 = vpop.f32.mrf.mxu0 }
 0x550   : > { %v5851_v56 = vpop.f32.mrf.mxu0 }
 0x551   : > { %v3960_v36 = vpack.c.bf16 %v5851_v56, %v5850_v25 }
 0x552   : > { %v3802_v39 = vpop.f32.mrf.mxu0 }
 0x553   : > { %v3959_v62 = vpack.c.bf16 %v3802_v39, %v3799_v0 }
 0x555   : > { %4232 = vmatmul.mubr.bf16.vlgmr.msra.gmra.mxu0 %v3959_v62 }
 0x556   : > { %4241 = vmatprep.mubr.bf16.mxu0 %v6872_v40  ;;  %4586 = vmatpush1.bf16.msra.mxu0 %v6432_v59 }
 0x557   : > { %4587 = vmatprep.subr.bf16.mxu0 %v6440_v6 }
 0x55a   : > { %4588 = vmatpush1.bf16.msra.mxu0 %v6438_v26 }
 0x55b   : > { %4589 = vmatprep.subr.bf16.mxu0 %v6446_v57 }
 0x55d   : > { %4242 = vmatmul.mubr.bf16.gmra.mxu0 %v3960_v36 }
 0x55e   : > { %4251 = vmatprep.mubr.bf16.mxu0 %v6872_v40  ;;  %4590 = vmatpush1.bf16.msra.mxu0 %v6444_v37 }
 0x55f   : > { %4591 = vmatprep.subr.bf16.mxu0 %v6452_v60 }
 0x562   : > { %v3678_v4 = vpop.xlane.xlu1 %3677  ;;  %4592 = vmatpush1.bf16.msra.mxu0 %v6450_v49 }
 0x563   : > { %4593 = vmatprep.subr.bf16.mxu0 %v6458_v34  ;;  %6600 = vrcp.f32 %v3678_v4 }
 0x566   : > { %4594 = vmatpush1.bf16.msra.mxu0 %v6456_v18  ;;  %v3682_v22 = vpop.xlane.xlu1 %3681 }
 0x567   : > { %v3680_v12 = vpop.xlane.xlu0 %3679  ;;  %4595 = vmatprep.subr.bf16.mxu0 %v6464_v29 }
 0x568   : > { %6602 = vrcp.f32 %v3680_v12 }
 0x569   : > { %6604 = vrcp.f32 %v3682_v22 }
 0x56a   : > { %4596 = vmatpush1.bf16.msra.mxu0 %v6462_v52 }
 0x56b   : > { %v3684_v48 = vpop.xlane.xlu0 %3683  ;;  %4597 = vmatprep.subr.bf16.mxu0 %v6470_v5 }
 0x56c   : > { %6606 = vrcp.f32 %v3684_v48 }
 0x56e   : > { %4598 = vmatpush1.bf16.msra.mxu0 %v6468_v11 }
 0x56f   : > { %4599 = vmatprep.subr.bf16.mxu0 %v6476_v17 }
 0x570   : > { %v6601_v44 = vpop.eup %6600 }
 0x571   : > { %v3745_v35 = vmul.f32 %v6601_v44, %v8613_v13  ;;  %v6435_v13 = vld [vmem:[%s7126_s27 + $0x1e8] ss:$16 sps:$4 sm:$0xff]  }
 0x572   : > { %4600 = vmatpush1.bf16.msra.mxu0 %v6474_v1 }
 0x575   : > { %v6603_v38 = vpop.eup %6602 }
 0x576   : > { %v3746_v3 = vmul.f32 %v6603_v38, %v8618_v7  ;;  %v6605_v54 = vpop.eup %6604  ;;  %v6441_v7 = vld [vmem:[%s7126_s27 + $0x1c8] ss:$16 sps:$4 sm:$0xff]  }
 0x577   : > { %v3747_v31 = vmul.f32 %v6605_v54, %v8616_v63  ;;  %v6449_v63 = vld [vmem:[%s7126_s27 + $0x1ac] ss:$16 sps:$4 sm:$0xff]  }
 0x578   : > { %v3763_v28 = vpack.c.bf16 %v3746_v3, %v3745_v35 }
 0x579   : > { %v6607_v24 = vpop.eup %6606 }
 0x57a   : > { %5892 = vmatprep.mubr.bf16.mxu1 %v3763_v28  ;;  %v3748_v32 = vmul.f32 %v6607_v24, %v8622_v47  ;;  %v6447_v47 = vld [vmem:[%s7126_s27 + $0x1a8] ss:$16 sps:$4 sm:$0xff]   ;;  %s6735_s27 = sshll.u32 %s6873_s1, 4  ;;  %s6736_s27 = int_to_ptr.vmem [resolvable:$false] %s6735_s27 }
 0x57b   : > { %s6737_s13 = scalar_lea.vmem %s6736_s27, 32768  ;;  %p6738_p0 = scmp.lt.s32.totalorder %s8864_s18, %s6736_s27 }
 0x57c   : > { %v3764_v2 = vpack.c.bf16 %v3748_v32, %v3747_v31  ;;  %p6739_p1 = scmp.lt.s32.totalorder %s6737_s13, %s6731_s6 }
 0x57e   : > { %5893 = vmatmul.mubr.bf16.gmra.mxu1 %v3764_v2  ;;  %p6740_p6 = por %p6739_p1, %p6738_p0 }
 0x57f   : > { %4344 = vmatprep.mubr.bf16.mxu1 %v6872_v40 }
 0x580   : > { %p6741_p9 = pnand %p6740_p6, %p6734_p12 }
 0x586   : > { %4345 = vmatmul.mubr.bf16.vlgmr.msra.gmra.mxu1 %v3959_v62 }
 0x587   : > { %4354 = vmatprep.mubr.bf16.mxu1 %v6872_v40  ;;  %4699 = vmatpush1.bf16.msra.mxu1 %v6435_v13 }
 0x588   : > { %4700 = vmatprep.subr.bf16.mxu1 %v6443_v16 }
 0x58b   : > { %4701 = vmatpush1.bf16.msra.mxu1 %v6441_v7 }
 0x58c   : > { %4702 = vmatprep.subr.bf16.mxu1 %v6449_v63 }
 0x58e   : > { %4355 = vmatmul.mubr.bf16.gmra.mxu1 %v3960_v36 }
 0x58f   : > { %4364 = vmatprep.mubr.bf16.mxu1 %v6872_v40  ;;  %4703 = vmatpush1.bf16.msra.mxu1 %v6447_v47 }
 0x590   : > { %4704 = vmatprep.subr.bf16.mxu1 %v6455_v27 }
 0x593   : > { %4705 = vmatpush1.bf16.msra.mxu1 %v6453_v20 }
 0x594   : > { %4706 = vmatprep.subr.bf16.mxu1 %v6461_v21 }
 0x597   : > { %4707 = vmatpush1.bf16.msra.mxu1 %v6459_v23 }
 0x598   : > { %4708 = vmatprep.subr.bf16.mxu1 %v6467_v41 }
 0x59a   : > { %v5854_v14 = vpop.f32.mrf.mxu0 }
 0x59b   : > { %4709 = vmatpush1.bf16.msra.mxu1 %v6465_v19 }
 0x59c   : > { %v3815_v61 = vpop.f32.mrf.mxu0  ;;  %4710 = vmatprep.subr.bf16.mxu1 %v6473_v42 }
 0x59e   : > { %v5855_v50 = vpop.f32.mrf.mxu0 }
 0x59f   : > { %4711 = vmatpush1.bf16.msra.mxu1 %v6471_v45  ;;  %v3962_v30 = vpack.c.bf16 %v5855_v50, %v5854_v14 }
 0x5a0   : > { %v3818_v33 = vpop.f32.mrf.mxu0  ;;  %4712 = vmatprep.subr.bf16.mxu1 %v6479_v53 }
 0x5a1   : > { %v3961_v8 = vpack.c.bf16 %v3818_v33, %v3815_v61 }
 0x5a3   : > { %4252 = vmatmul.mubr.bf16.gmra.mxu0 %v3961_v8  ;;  %4365 = vmatmul.mubr.bf16.gmra.mxu1 %v3961_v8 }
 0x5a4   : > { %4261 = vmatprep.mubr.bf16.mxu0 %v6872_v40  ;;  %4374 = vmatprep.mubr.bf16.mxu1 %v6872_v40 }
 0x5a5   : > { %4713 = vmatpush1.bf16.msra.mxu1 %v6477_v15 }
 0x5aa   : > { %v5858_v51 = vpop.f32.mrf.mxu0 }
 0x5ab   : > { %4262 = vmatmul.mubr.bf16.gmra.mxu0 %v3962_v30  ;;  %4375 = vmatmul.mubr.bf16.gmra.mxu1 %v3962_v30 }
 0x5ac   : > { %v3831_v58 = vpop.f32.mrf.mxu0  ;;  %4271 = vmatprep.mubr.bf16.mxu0 %v6872_v40  ;;  %4384 = vmatprep.mubr.bf16.mxu1 %v6872_v40 }
 0x5ae   : > { %v5859_v9 = vpop.f32.mrf.mxu0 }
 0x5af   : > { %v3964_v55 = vpack.c.bf16 %v5859_v9, %v5858_v51 }
 0x5b0   : > { %v3834_v46 = vpop.f32.mrf.mxu0 }
 0x5b1   : > { %v3963_v10 = vpack.c.bf16 %v3834_v46, %v3831_v58 }
 0x5b3   : > { %4272 = vmatmul.mubr.bf16.gmra.mxu0 %v3963_v10  ;;  %4385 = vmatmul.mubr.bf16.gmra.mxu1 %v3963_v10 }
 0x5b4   : > { %4281 = vmatprep.mubr.bf16.mxu0 %v6872_v40  ;;  %4394 = vmatprep.mubr.bf16.mxu1 %v6872_v40 }
 0x5ba   : > { %v5862_v43 = vpop.f32.mrf.mxu0 }
 0x5bb   : > { %4282 = vmatmul.mubr.bf16.gmra.mxu0 %v3964_v55  ;;  %4395 = vmatmul.mubr.bf16.gmra.mxu1 %v3964_v55 }
 0x5bc   : > { %v3847_v25 = vpop.f32.mrf.mxu0  ;;  %4291 = vmatprep.mubr.bf16.mxu0 %v6872_v40  ;;  %4404 = vmatprep.mubr.bf16.mxu1 %v6872_v40 }
 0x5be   : > { %v5863_v0 = vpop.f32.mrf.mxu0 }
 0x5bf   : > { %v3966_v59 = vpack.c.bf16 %v5863_v0, %v5862_v43 }
 0x5c0   : > { %v3850_v56 = vpop.f32.mrf.mxu0 }
 0x5c1   : > { %v3965_v39 = vpack.c.bf16 %v3850_v56, %v3847_v25 }
 0x5c3   : > { %4292 = vmatmul.mubr.bf16.gmra.mxu0 %v3965_v39  ;;  %4405 = vmatmul.mubr.bf16.gmra.mxu1 %v3965_v39 }
 0x5c4   : > { %4301 = vmatprep.mubr.bf16.mxu0 %v6872_v40  ;;  %4414 = vmatprep.mubr.bf16.mxu1 %v6872_v40 }
 0x5cb   : > { %4302 = vmatmul.mubr.bf16.gmra.mxu0 %v3966_v59  ;;  %4415 = vmatmul.mubr.bf16.gmra.mxu1 %v3966_v59 }
 0x5cc   : > { %v5882_v62 = vpop.f32.mrf.mxu1  ;;  %4617 = vmatprep.mubr.bf16.mxu0 %v6872_v40  ;;  %4730 = vmatprep.mubr.bf16.mxu1 %v6872_v40 }
 0x5ce   : > { %v3896_v6 = vpop.f32.mrf.mxu1 }
 0x5d0   : > { %v5883_v26 = vpop.f32.mrf.mxu1 }
 0x5d1   : > { %v3968_v49 = vpack.c.bf16 %v5883_v26, %v5882_v62 }
 0x5d2   : > { %v3899_v57 = vpop.f32.mrf.mxu1 }
 0x5d3   : > { %v3967_v37 = vpack.c.bf16 %v3899_v57, %v3896_v6 }
 0x5d4   : > { %v5886_v36 = vpop.f32.mrf.mxu1 }
 0x5d5   : > { %4618 = vmatmul.mubr.bf16.vlgmr.msra.gmra.mxu0 %v3967_v37  ;;  %4731 = vmatmul.mubr.bf16.vlgmr.msra.gmra.mxu1 %v3967_v37 }
 0x5d6   : > { %4627 = vmatprep.mubr.bf16.mxu0 %v6872_v40  ;;  %4740 = vmatprep.mubr.bf16.mxu1 %v6872_v40  ;;  %v3912_v60 = vpop.f32.mrf.mxu1 }
 0x5d8   : > { %v5887_v34 = vpop.f32.mrf.mxu1 }
 0x5d9   : > { %v3970_v29 = vpack.c.bf16 %v5887_v34, %v5886_v36 }
 0x5da   : > { %v3915_v4 = vpop.f32.mrf.mxu1 }
 0x5db   : > { %v3969_v18 = vpack.c.bf16 %v3915_v4, %v3912_v60 }
 0x5dd   : > { %4628 = vmatmul.mubr.bf16.gmra.mxu0 %v3968_v49  ;;  %4741 = vmatmul.mubr.bf16.gmra.mxu1 %v3968_v49 }
 0x5de   : > { %4637 = vmatprep.mubr.bf16.mxu0 %v6872_v40  ;;  %4750 = vmatprep.mubr.bf16.mxu1 %v6872_v40 }
 0x5e5   : > { %4638 = vmatmul.mubr.bf16.gmra.mxu0 %v3969_v18  ;;  %4751 = vmatmul.mubr.bf16.gmra.mxu1 %v3969_v18 }
 0x5e6   : > { %4647 = vmatprep.mubr.bf16.mxu0 %v6872_v40  ;;  %4760 = vmatprep.mubr.bf16.mxu1 %v6872_v40 }
 0x5ed   : > { %4648 = vmatmul.mubr.bf16.gmra.mxu0 %v3970_v29  ;;  %4761 = vmatmul.mubr.bf16.gmra.mxu1 %v3970_v29 }
 0x5ee   : > { %4657 = vmatprep.mubr.bf16.mxu0 %v6872_v40  ;;  %4770 = vmatprep.mubr.bf16.mxu1 %v6872_v40 }
 0x5f0   : > { %v5890_v52 = vpop.f32.mrf.mxu1 }
 0x5f2   : > { %v3928_v22 = vpop.f32.mrf.mxu1 }
 0x5f4   : > { %v5891_v12 = vpop.f32.mrf.mxu1 }
 0x5f5   : > { %v3972_v48 = vpack.c.bf16 %v5891_v12, %v5890_v52 }
 0x5f6   : > { %v3931_v5 = vpop.f32.mrf.mxu1 }
 0x5f7   : > { %v3971_v11 = vpack.c.bf16 %v3931_v5, %v3928_v22 }
 0x5f9   : > { %4658 = vmatmul.mubr.bf16.gmra.mxu0 %v3971_v11  ;;  %4771 = vmatmul.mubr.bf16.gmra.mxu1 %v3971_v11 }
 0x5fa   : > { %4667 = vmatprep.mubr.bf16.mxu0 %v6872_v40  ;;  %4780 = vmatprep.mubr.bf16.mxu1 %v6872_v40 }
 0x601   : > { %4668 = vmatmul.mubr.bf16.gmra.mxu0 %v3972_v48  ;;  %4781 = vmatmul.mubr.bf16.gmra.mxu1 %v3972_v48 }
 0x602   : > { %4677 = vmatprep.mubr.bf16.mxu0 %v6872_v40  ;;  %4790 = vmatprep.mubr.bf16.mxu1 %v6872_v40 }
 0x615   : > { %v4233_v17 = vpop.f32.mrf.mxu0 }
 0x616   : > { %4811 = vst [vmem:[%s8728_s21] sm:$0xff] %v4233_v17 }
 0x617   : > { %v4235_v1 = vpop.f32.mrf.mxu0 }
 0x618   : > { %4812 = vst [vmem:[%s8728_s21 + $0x8] sm:$0xff] %v4235_v1 }
 0x619   : > { %v4237_v44 = vpop.f32.mrf.mxu0 }
 0x61a   : > { %4815 = vst [vmem:[%s8728_s21 + $0x20] sm:$0xff] %v4237_v44 }
 0x61b   : > { %v4239_v38 = vpop.f32.mrf.mxu0 }
 0x61c   : > { %4816 = vst [vmem:[%s8728_s21 + $0x28] sm:$0xff] %v4239_v38 }
 0x61d   : > { %v4243_v35 = vpop.f32.mrf.mxu0 }
 0x61e   : > { %4819 = vst [vmem:[%s8728_s21 + $0x40] sm:$0xff] %v4243_v35 }
 0x61f   : > { %v4245_v3 = vpop.f32.mrf.mxu0 }
 0x620   : > { %4820 = vst [vmem:[%s8728_s21 + $0x48] sm:$0xff] %v4245_v3 }
 0x621   : > { %v4247_v54 = vpop.f32.mrf.mxu0 }
 0x622   : > { %4823 = vst [vmem:[%s8728_s21 + $0x60] sm:$0xff] %v4247_v54 }
 0x623   : > { %v4249_v28 = vpop.f32.mrf.mxu0 }
 0x624   : > { %4824 = vst [vmem:[%s8728_s21 + $0x68] sm:$0xff] %v4249_v28 }
 0x63e   : > { %v5894_v24 = vpop.f32.mrf.mxu1 }
 0x640   : > { %v3944_v31 = vpop.f32.mrf.mxu1 }
 0x642   : > { %v5895_v32 = vpop.f32.mrf.mxu1 }
 0x643   : > { %v3974_v27 = vpack.c.bf16 %v5895_v32, %v5894_v24 }
 0x644   : > { %v3947_v2 = vpop.f32.mrf.mxu1 }
 0x645   : > { %v3973_v13 = vpack.c.bf16 %v3947_v2, %v3944_v31 }
 0x646   : > { %v4346_v16 = vpop.f32.mrf.mxu1 }
 0x647   : > { %4813 = vst [vmem:[%s8728_s21 + $0x10] sm:$0xff] %v4346_v16  ;;  %4678 = vmatmul.mubr.bf16.gmra.mxu0 %v3973_v13  ;;  %4791 = vmatmul.mubr.bf16.gmra.mxu1 %v3973_v13 }
 0x648   : > { %v4348_v7 = vpop.f32.mrf.mxu1  ;;  %4687 = vmatprep.mubr.bf16.mxu0 %v6872_v40  ;;  %4800 = vmatprep.mubr.bf16.mxu1 %v6872_v40 }
 0x649   : > { %4814 = vst [vmem:[%s8728_s21 + $0x18] sm:$0xff] %v4348_v7 }
 0x64a   : > { %v4350_v63 = vpop.f32.mrf.mxu1 }
 0x64b   : > { %4817 = vst [vmem:[%s8728_s21 + $0x30] sm:$0xff] %v4350_v63 }
 0x64c   : > { %v4352_v47 = vpop.f32.mrf.mxu1 }
 0x64d   : > { %4818 = vst [vmem:[%s8728_s21 + $0x38] sm:$0xff] %v4352_v47 }
 0x64e   : > { %v4356_v20 = vpop.f32.mrf.mxu1 }
 0x64f   : > { %4821 = vst [vmem:[%s8728_s21 + $0x50] sm:$0xff] %v4356_v20  ;;  %4688 = vmatmul.mubr.bf16.gmra.mxu0 %v3974_v27  ;;  %4801 = vmatmul.mubr.bf16.gmra.mxu1 %v3974_v27 }
 0x650   : > { %v4358_v21 = vpop.f32.mrf.mxu1 }
 0x651   : > { %4822 = vst [vmem:[%s8728_s21 + $0x58] sm:$0xff] %v4358_v21 }
 0x652   : > { %v4360_v40 = vpop.f32.mrf.mxu1 }
 0x653   : > { %4825 = vst [vmem:[%s8728_s21 + $0x70] sm:$0xff] %v4360_v40 }
 0x654   : > { %v4362_v23 = vpop.f32.mrf.mxu1 }
 0x655   : > { %4826 = vst [vmem:[%s8728_s21 + $0x78] sm:$0xff] %v4362_v23 }
 0x663   : > { %v4253_v41 = vpop.f32.mrf.mxu0  ;;  %v4366_v19 = vpop.f32.mrf.mxu1 }
 0x664   : > { %4827 = vst [vmem:[%s8728_s21 + $0x80] sm:$0xff] %v4253_v41  ;;  %4829 = vst [vmem:[%s8728_s21 + $0x90] sm:$0xff] %v4366_v19 }
 0x665   : > { %v4255_v42 = vpop.f32.mrf.mxu0  ;;  %v4368_v14 = vpop.f32.mrf.mxu1 }
 0x666   : > { %4828 = vst [vmem:[%s8728_s21 + $0x88] sm:$0xff] %v4255_v42  ;;  %4830 = vst [vmem:[%s8728_s21 + $0x98] sm:$0xff] %v4368_v14 }
 0x667   : > { %v4257_v45 = vpop.f32.mrf.mxu0  ;;  %v4370_v61 = vpop.f32.mrf.mxu1 }
 0x668   : > { %4831 = vst [vmem:[%s8728_s21 + $0xa0] sm:$0xff] %v4257_v45  ;;  %4833 = vst [vmem:[%s8728_s21 + $0xb0] sm:$0xff] %v4370_v61 }
 0x669   : > { %v4259_v53 = vpop.f32.mrf.mxu0  ;;  %v4372_v50 = vpop.f32.mrf.mxu1 }
 0x66a   : > { %4832 = vst [vmem:[%s8728_s21 + $0xa8] sm:$0xff] %v4259_v53  ;;  %4834 = vst [vmem:[%s8728_s21 + $0xb8] sm:$0xff] %v4372_v50 }
 0x66b   : > { %v4263_v33 = vpop.f32.mrf.mxu0  ;;  %v4376_v8 = vpop.f32.mrf.mxu1 }
 0x66c   : > { %4835 = vst [vmem:[%s8728_s21 + $0xc0] sm:$0xff] %v4263_v33  ;;  %4837 = vst [vmem:[%s8728_s21 + $0xd0] sm:$0xff] %v4376_v8 }
 0x66d   : > { %v4265_v15 = vpop.f32.mrf.mxu0  ;;  %v4378_v30 = vpop.f32.mrf.mxu1 }
 0x66e   : > { %4836 = vst [vmem:[%s8728_s21 + $0xc8] sm:$0xff] %v4265_v15  ;;  %4838 = vst [vmem:[%s8728_s21 + $0xd8] sm:$0xff] %v4378_v30 }
 0x66f   : > { %v4267_v51 = vpop.f32.mrf.mxu0  ;;  %v4380_v58 = vpop.f32.mrf.mxu1 }
 0x670   : > { %4839 = vst [vmem:[%s8728_s21 + $0xe0] sm:$0xff] %v4267_v51  ;;  %4841 = vst [vmem:[%s8728_s21 + $0xf0] sm:$0xff] %v4380_v58 }
 0x671   : > { %v4269_v9 = vpop.f32.mrf.mxu0  ;;  %v4382_v46 = vpop.f32.mrf.mxu1 }
 0x672   : > { %4840 = vst [vmem:[%s8728_s21 + $0xe8] sm:$0xff] %v4269_v9  ;;  %4842 = vst [vmem:[%s8728_s21 + $0xf8] sm:$0xff] %v4382_v46 }
 0x673   : > { %v4273_v10 = vpop.f32.mrf.mxu0  ;;  %v4386_v55 = vpop.f32.mrf.mxu1 }
 0x674   : > { %4843 = vst [vmem:[%s8728_s21 + $0x100] sm:$0xff] %v4273_v10  ;;  %4845 = vst [vmem:[%s8728_s21 + $0x110] sm:$0xff] %v4386_v55 }
 0x675   : > { %v4275_v43 = vpop.f32.mrf.mxu0  ;;  %v4388_v25 = vpop.f32.mrf.mxu1 }
 0x676   : > { %4844 = vst [vmem:[%s8728_s21 + $0x108] sm:$0xff] %v4275_v43  ;;  %4846 = vst [vmem:[%s8728_s21 + $0x118] sm:$0xff] %v4388_v25 }
 0x677   : > { %v4277_v0 = vpop.f32.mrf.mxu0  ;;  %v4390_v56 = vpop.f32.mrf.mxu1 }
 0x678   : > { %4847 = vst [vmem:[%s8728_s21 + $0x120] sm:$0xff] %v4277_v0  ;;  %4849 = vst [vmem:[%s8728_s21 + $0x130] sm:$0xff] %v4390_v56 }
 0x679   : > { %v4279_v39 = vpop.f32.mrf.mxu0  ;;  %v4392_v59 = vpop.f32.mrf.mxu1 }
 0x67a   : > { %4848 = vst [vmem:[%s8728_s21 + $0x128] sm:$0xff] %v4279_v39  ;;  %4850 = vst [vmem:[%s8728_s21 + $0x138] sm:$0xff] %v4392_v59 }
 0x67b   : > { %v4283_v62 = vpop.f32.mrf.mxu0  ;;  %v4396_v6 = vpop.f32.mrf.mxu1 }
 0x67c   : > { %4851 = vst [vmem:[%s8728_s21 + $0x140] sm:$0xff] %v4283_v62  ;;  %4853 = vst [vmem:[%s8728_s21 + $0x150] sm:$0xff] %v4396_v6 }
 0x67d   : > { %v4285_v26 = vpop.f32.mrf.mxu0  ;;  %v4398_v57 = vpop.f32.mrf.mxu1 }
 0x67e   : > { %4852 = vst [vmem:[%s8728_s21 + $0x148] sm:$0xff] %v4285_v26  ;;  %4854 = vst [vmem:[%s8728_s21 + $0x158] sm:$0xff] %v4398_v57 }
 0x67f   : > { %v4287_v37 = vpop.f32.mrf.mxu0  ;;  %v4400_v36 = vpop.f32.mrf.mxu1 }
 0x680   : > { %4855 = vst [vmem:[%s8728_s21 + $0x160] sm:$0xff] %v4287_v37  ;;  %4857 = vst [vmem:[%s8728_s21 + $0x170] sm:$0xff] %v4400_v36 }
 0x681   : > { %v4289_v60 = vpop.f32.mrf.mxu0  ;;  %v4402_v49 = vpop.f32.mrf.mxu1 }
 0x682   : > { %4856 = vst [vmem:[%s8728_s21 + $0x168] sm:$0xff] %v4289_v60  ;;  %4858 = vst [vmem:[%s8728_s21 + $0x178] sm:$0xff] %v4402_v49 }
 0x683   : > { %v4293_v34 = vpop.f32.mrf.mxu0  ;;  %v4406_v4 = vpop.f32.mrf.mxu1 }
 0x684   : > { %4859 = vst [vmem:[%s8728_s21 + $0x180] sm:$0xff] %v4293_v34  ;;  %4861 = vst [vmem:[%s8728_s21 + $0x190] sm:$0xff] %v4406_v4 }
 0x685   : > { %v4295_v18 = vpop.f32.mrf.mxu0  ;;  %v4408_v29 = vpop.f32.mrf.mxu1 }
 0x686   : > { %4860 = vst [vmem:[%s8728_s21 + $0x188] sm:$0xff] %v4295_v18  ;;  %4862 = vst [vmem:[%s8728_s21 + $0x198] sm:$0xff] %v4408_v29 }
 0x687   : > { %v4297_v52 = vpop.f32.mrf.mxu0  ;;  %v4410_v22 = vpop.f32.mrf.mxu1 }
 0x688   : > { %4863 = vst [vmem:[%s8728_s21 + $0x1a0] sm:$0xff] %v4297_v52  ;;  %4865 = vst [vmem:[%s8728_s21 + $0x1b0] sm:$0xff] %v4410_v22 }
 0x689   : > { %v4299_v12 = vpop.f32.mrf.mxu0  ;;  %v4412_v5 = vpop.f32.mrf.mxu1 }
 0x68a   : > { %4864 = vst [vmem:[%s8728_s21 + $0x1a8] sm:$0xff] %v4299_v12  ;;  %4866 = vst [vmem:[%s8728_s21 + $0x1b8] sm:$0xff] %v4412_v5 }
 0x68b   : > { %v4303_v11 = vpop.f32.mrf.mxu0  ;;  %v4416_v48 = vpop.f32.mrf.mxu1 }
 0x68c   : > { %4867 = vst [vmem:[%s8728_s21 + $0x1c0] sm:$0xff] %v4303_v11  ;;  %4869 = vst [vmem:[%s8728_s21 + $0x1d0] sm:$0xff] %v4416_v48 }
 0x68d   : > { %v4305_v17 = vpop.f32.mrf.mxu0  ;;  %v4418_v1 = vpop.f32.mrf.mxu1 }
 0x68e   : > { %4868 = vst [vmem:[%s8728_s21 + $0x1c8] sm:$0xff] %v4305_v17  ;;  %4870 = vst [vmem:[%s8728_s21 + $0x1d8] sm:$0xff] %v4418_v1 }
 0x68f   : > { %v4307_v44 = vpop.f32.mrf.mxu0  ;;  %v4420_v38 = vpop.f32.mrf.mxu1 }
 0x690   : > { %4871 = vst [vmem:[%s8728_s21 + $0x1e0] sm:$0xff] %v4307_v44  ;;  %4873 = vst [vmem:[%s8728_s21 + $0x1f0] sm:$0xff] %v4420_v38 }
 0x691   : > { %v4309_v35 = vpop.f32.mrf.mxu0  ;;  %v4422_v3 = vpop.f32.mrf.mxu1 }
 0x692   : > { %4872 = vst [vmem:[%s8728_s21 + $0x1e8] sm:$0xff] %v4309_v35  ;;  %4874 = vst [vmem:[%s8728_s21 + $0x1f8] sm:$0xff] %v4422_v3 }
 0x695   : > { %v4619_v54 = vpop.f32.mrf.mxu0  ;;  %v4732_v28 = vpop.f32.mrf.mxu1 }
 0x696   : > { %4875 = vst [vmem:[%s8728_s21 + $0x200] sm:$0xff] %v4619_v54  ;;  %4877 = vst [vmem:[%s8728_s21 + $0x210] sm:$0xff] %v4732_v28 }
 0x697   : > { %v4621_v24 = vpop.f32.mrf.mxu0  ;;  %v4734_v31 = vpop.f32.mrf.mxu1 }
 0x698   : > { %4876 = vst [vmem:[%s8728_s21 + $0x208] sm:$0xff] %v4621_v24  ;;  %4878 = vst [vmem:[%s8728_s21 + $0x218] sm:$0xff] %v4734_v31 }
 0x699   : > { %v4623_v32 = vpop.f32.mrf.mxu0  ;;  %v4736_v2 = vpop.f32.mrf.mxu1 }
 0x69a   : > { %4879 = vst [vmem:[%s8728_s21 + $0x220] sm:$0xff] %v4623_v32  ;;  %4881 = vst [vmem:[%s8728_s21 + $0x230] sm:$0xff] %v4736_v2 }
 0x69b   : > { %v4625_v13 = vpop.f32.mrf.mxu0  ;;  %v4738_v16 = vpop.f32.mrf.mxu1 }
 0x69c   : > { %4880 = vst [vmem:[%s8728_s21 + $0x228] sm:$0xff] %v4625_v13  ;;  %4882 = vst [vmem:[%s8728_s21 + $0x238] sm:$0xff] %v4738_v16 }
 0x69d   : > { %v4629_v7 = vpop.f32.mrf.mxu0  ;;  %v4742_v63 = vpop.f32.mrf.mxu1 }
 0x69e   : > { %4883 = vst [vmem:[%s8728_s21 + $0x240] sm:$0xff] %v4629_v7  ;;  %4885 = vst [vmem:[%s8728_s21 + $0x250] sm:$0xff] %v4742_v63 }
 0x69f   : > { %v4631_v47 = vpop.f32.mrf.mxu0  ;;  %v4744_v27 = vpop.f32.mrf.mxu1 }
 0x6a0   : > { %4884 = vst [vmem:[%s8728_s21 + $0x248] sm:$0xff] %v4631_v47  ;;  %4886 = vst [vmem:[%s8728_s21 + $0x258] sm:$0xff] %v4744_v27 }
 0x6a1   : > { %v4633_v20 = vpop.f32.mrf.mxu0  ;;  %v4746_v21 = vpop.f32.mrf.mxu1 }
 0x6a2   : > { %4887 = vst [vmem:[%s8728_s21 + $0x260] sm:$0xff] %v4633_v20  ;;  %4889 = vst [vmem:[%s8728_s21 + $0x270] sm:$0xff] %v4746_v21 }
 0x6a3   : > { %v4635_v40 = vpop.f32.mrf.mxu0  ;;  %v4748_v23 = vpop.f32.mrf.mxu1 }
 0x6a4   : > { %4888 = vst [vmem:[%s8728_s21 + $0x268] sm:$0xff] %v4635_v40  ;;  %4890 = vst [vmem:[%s8728_s21 + $0x278] sm:$0xff] %v4748_v23 }
 0x6a5   : > { %v4639_v41 = vpop.f32.mrf.mxu0  ;;  %v4752_v19 = vpop.f32.mrf.mxu1 }
 0x6a6   : > { %4891 = vst [vmem:[%s8728_s21 + $0x280] sm:$0xff] %v4639_v41  ;;  %4893 = vst [vmem:[%s8728_s21 + $0x290] sm:$0xff] %v4752_v19 }
 0x6a7   : > { %v4641_v42 = vpop.f32.mrf.mxu0  ;;  %v4754_v14 = vpop.f32.mrf.mxu1 }
 0x6a8   : > { %4892 = vst [vmem:[%s8728_s21 + $0x288] sm:$0xff] %v4641_v42  ;;  %4894 = vst [vmem:[%s8728_s21 + $0x298] sm:$0xff] %v4754_v14 }
 0x6a9   : > { %v4643_v45 = vpop.f32.mrf.mxu0  ;;  %v4756_v61 = vpop.f32.mrf.mxu1 }
 0x6aa   : > { %4895 = vst [vmem:[%s8728_s21 + $0x2a0] sm:$0xff] %v4643_v45  ;;  %4897 = vst [vmem:[%s8728_s21 + $0x2b0] sm:$0xff] %v4756_v61 }
 0x6ab   : > { %v4645_v53 = vpop.f32.mrf.mxu0  ;;  %v4758_v50 = vpop.f32.mrf.mxu1 }
 0x6ac   : > { %4896 = vst [vmem:[%s8728_s21 + $0x2a8] sm:$0xff] %v4645_v53  ;;  %4898 = vst [vmem:[%s8728_s21 + $0x2b8] sm:$0xff] %v4758_v50 }
 0x6ad   : > { %v4649_v33 = vpop.f32.mrf.mxu0  ;;  %v4762_v8 = vpop.f32.mrf.mxu1 }
 0x6ae   : > { %4899 = vst [vmem:[%s8728_s21 + $0x2c0] sm:$0xff] %v4649_v33  ;;  %4901 = vst [vmem:[%s8728_s21 + $0x2d0] sm:$0xff] %v4762_v8 }
 0x6af   : > { %v4651_v15 = vpop.f32.mrf.mxu0  ;;  %v4764_v30 = vpop.f32.mrf.mxu1 }
 0x6b0   : > { %4900 = vst [vmem:[%s8728_s21 + $0x2c8] sm:$0xff] %v4651_v15  ;;  %4902 = vst [vmem:[%s8728_s21 + $0x2d8] sm:$0xff] %v4764_v30 }
 0x6b1   : > { %v4653_v51 = vpop.f32.mrf.mxu0  ;;  %v4766_v58 = vpop.f32.mrf.mxu1 }
 0x6b2   : > { %4903 = vst [vmem:[%s8728_s21 + $0x2e0] sm:$0xff] %v4653_v51  ;;  %4905 = vst [vmem:[%s8728_s21 + $0x2f0] sm:$0xff] %v4766_v58 }
 0x6b3   : > { %v4655_v9 = vpop.f32.mrf.mxu0  ;;  %v4768_v46 = vpop.f32.mrf.mxu1 }
 0x6b4   : > { %4904 = vst [vmem:[%s8728_s21 + $0x2e8] sm:$0xff] %v4655_v9  ;;  %4906 = vst [vmem:[%s8728_s21 + $0x2f8] sm:$0xff] %v4768_v46 }
 0x6b9   : > { %v4659_v10 = vpop.f32.mrf.mxu0  ;;  %v4772_v55 = vpop.f32.mrf.mxu1 }
 0x6ba   : > { %4907 = vst [vmem:[%s8728_s21 + $0x300] sm:$0xff] %v4659_v10  ;;  %4909 = vst [vmem:[%s8728_s21 + $0x310] sm:$0xff] %v4772_v55 }
 0x6bb   : > { %v4661_v43 = vpop.f32.mrf.mxu0  ;;  %v4774_v25 = vpop.f32.mrf.mxu1 }
 0x6bc   : > { %4908 = vst [vmem:[%s8728_s21 + $0x308] sm:$0xff] %v4661_v43  ;;  %4910 = vst [vmem:[%s8728_s21 + $0x318] sm:$0xff] %v4774_v25 }
 0x6bd   : > { %v4663_v0 = vpop.f32.mrf.mxu0  ;;  %v4776_v56 = vpop.f32.mrf.mxu1 }
 0x6be   : > { %4911 = vst [vmem:[%s8728_s21 + $0x320] sm:$0xff] %v4663_v0  ;;  %4913 = vst [vmem:[%s8728_s21 + $0x330] sm:$0xff] %v4776_v56 }
 0x6bf   : > { %v4665_v39 = vpop.f32.mrf.mxu0  ;;  %v4778_v59 = vpop.f32.mrf.mxu1 }
 0x6c0   : > { %4912 = vst [vmem:[%s8728_s21 + $0x328] sm:$0xff] %v4665_v39  ;;  %4914 = vst [vmem:[%s8728_s21 + $0x338] sm:$0xff] %v4778_v59 }
 0x6c1   : > { %v4669_v62 = vpop.f32.mrf.mxu0  ;;  %v4782_v6 = vpop.f32.mrf.mxu1 }
 0x6c2   : > { %4915 = vst [vmem:[%s8728_s21 + $0x340] sm:$0xff] %v4669_v62  ;;  %4917 = vst [vmem:[%s8728_s21 + $0x350] sm:$0xff] %v4782_v6 }
 0x6c3   : > { %v4671_v26 = vpop.f32.mrf.mxu0  ;;  %v4784_v57 = vpop.f32.mrf.mxu1 }
 0x6c4   : > { %4916 = vst [vmem:[%s8728_s21 + $0x348] sm:$0xff] %v4671_v26  ;;  %4918 = vst [vmem:[%s8728_s21 + $0x358] sm:$0xff] %v4784_v57 }
 0x6c5   : > { %v4673_v37 = vpop.f32.mrf.mxu0  ;;  %v4786_v36 = vpop.f32.mrf.mxu1 }
 0x6c6   : > { %4919 = vst [vmem:[%s8728_s21 + $0x360] sm:$0xff] %v4673_v37  ;;  %4921 = vst [vmem:[%s8728_s21 + $0x370] sm:$0xff] %v4786_v36 }
 0x6c7   : > { %v4675_v60 = vpop.f32.mrf.mxu0  ;;  %v4788_v49 = vpop.f32.mrf.mxu1 }
 0x6c8   : > { %4920 = vst [vmem:[%s8728_s21 + $0x368] sm:$0xff] %v4675_v60  ;;  %4922 = vst [vmem:[%s8728_s21 + $0x378] sm:$0xff] %v4788_v49 }
 0x707   : > { %v4679_v34 = vpop.f32.mrf.mxu0  ;;  %v4792_v4 = vpop.f32.mrf.mxu1 }
 0x708   : > { %4923 = vst [vmem:[%s8728_s21 + $0x380] sm:$0xff] %v4679_v34  ;;  %4925 = vst [vmem:[%s8728_s21 + $0x390] sm:$0xff] %v4792_v4 }
 0x709   : > { %v4681_v18 = vpop.f32.mrf.mxu0  ;;  %v4794_v29 = vpop.f32.mrf.mxu1 }
 0x70a   : > { %4924 = vst [vmem:[%s8728_s21 + $0x388] sm:$0xff] %v4681_v18  ;;  %4926 = vst [vmem:[%s8728_s21 + $0x398] sm:$0xff] %v4794_v29 }
 0x70b   : > { %v4683_v52 = vpop.f32.mrf.mxu0  ;;  %v4796_v22 = vpop.f32.mrf.mxu1 }
 0x70c   : > { %4927 = vst [vmem:[%s8728_s21 + $0x3a0] sm:$0xff] %v4683_v52  ;;  %4929 = vst [vmem:[%s8728_s21 + $0x3b0] sm:$0xff] %v4796_v22 }
 0x70d   : > { %v4685_v12 = vpop.f32.mrf.mxu0  ;;  %v4798_v5 = vpop.f32.mrf.mxu1 }
 0x70e   : > { %4928 = vst [vmem:[%s8728_s21 + $0x3a8] sm:$0xff] %v4685_v12  ;;  %4930 = vst [vmem:[%s8728_s21 + $0x3b8] sm:$0xff] %v4798_v5 }
 0x70f   : > { %v4689_v11 = vpop.f32.mrf.mxu0  ;;  %v4802_v48 = vpop.f32.mrf.mxu1 }
 0x710   : > { %4931 = vst [vmem:[%s8728_s21 + $0x3c0] sm:$0xff] %v4689_v11  ;;  %4933 = vst [vmem:[%s8728_s21 + $0x3d0] sm:$0xff] %v4802_v48 }
 0x711   : > { %v4691_v17 = vpop.f32.mrf.mxu0  ;;  %v4804_v1 = vpop.f32.mrf.mxu1 }
 0x712   : > { %4932 = vst [vmem:[%s8728_s21 + $0x3c8] sm:$0xff] %v4691_v17  ;;  %4934 = vst [vmem:[%s8728_s21 + $0x3d8] sm:$0xff] %v4804_v1 }
 0x713   : > { %v4693_v44 = vpop.f32.mrf.mxu0  ;;  %v4806_v38 = vpop.f32.mrf.mxu1 }
 0x714   : > { %4935 = vst [vmem:[%s8728_s21 + $0x3e0] sm:$0xff] %v4693_v44  ;;  %4937 = vst [vmem:[%s8728_s21 + $0x3f0] sm:$0xff] %v4806_v38 }
 0x715   : > { %v4695_v35 = vpop.f32.mrf.mxu0  ;;  %v4808_v3 = vpop.f32.mrf.mxu1 }
 0x716   : > { %4936 = vst [vmem:[%s8728_s21 + $0x3e8] sm:$0xff] %v4695_v35  ;;  %4938 = vst [vmem:[%s8728_s21 + $0x3f8] sm:$0xff] %v4808_v3 }
 0x717   : > { %6744 = shalt.err (!%p6741_p9)
}
 0x718   : > { %s6745_s30 = scalar_lea.hbm %s8862_s4, 16384  ;;  %s6749_s8 = scalar_lea.hbm %s9247_s29, 65536 }
 0x719   : > { %p6746_p3 = scmp.ne.s32.totalorder %s8862_s4, %s6745_s30  ;;  %p6750_p4 = scmp.lt.s32.totalorder %s8862_s4, %s9247_s29 }
 0x71a   : > { %p6751_p5 = scmp.lt.s32.totalorder %s6749_s8, %s6745_s30 }
 0x71b   : > { %p6747_p2 = pnand %p6746_p3, %p7064_p13 }
 0x71c   : > { %p6752_p8 = por %p6751_p5, %p6750_p4 }
 0x71d   : > { %p6748_p7 = pneg %p6747_p2 }
 0x71f   : > { %p6753_p11 = pnand %p6752_p8, %p6748_p7 }
 0x721   : > { %6756 = shalt.err (!%p6753_p11)
}
 0x722   : > { %s6874_s10 = smov 512   ;;  %s6875_s14 = smov 32  }
 0x723   : > { %5909 = dma.vmem_to_hbm [thread:$0]  (%p7064_p13), %s8864_s18, 16384, %s8862_s4, %s4940_s9, %s6874_s10, %s6874_s10, %s6875_s14  }
 0x724 PF: > { %s9248_s12 = sld [smem:[#allocation16_spill]]  ;;  %p5932_p10 = scmp.ge.s32.totalorder %s6859_s25, 2 }
 0x725   : > { %s9249_s19 = sld [smem:[#allocation23_spill]] }
 0x72a   : > { %s4971_s15 = sand.u32 1, %s9248_s12  }
 0x72b   : > { %p9250_p12 = scmp.ne.s32.totalorder %s9249_s19, 0  ;;  %s4972_s6 = scalar_lea.sflag [#allocation4], %s4971_s15 }
 0x72d   : > { %p5926_p0 = pnand %p5932_p10, %p9250_p12 }
 0x72f   : > { %p5927_p1 = pneg %p5926_p0 }
 0x731   : > { %6814 = dma.done.wait (%p5927_p1), %s4972_s6, 16384  }
 0x732   : > { %6816 = vsyncadd (%p5927_p1), %s4972_s6, 4294950912  ;;  %s24_s25 = sadd.s32 1, %s6859_s25   ;;  %s9251_s15 = sld [smem:[#allocation15_spill]] }
 0x733   : > { %p21_p6 = scmp.ge.s32.totalorder %s24_s25, 6   ;;  %s9252_s18 = sld [smem:[#allocation17_spill]] }
 0x734   : > { %s9253_s26 = sld [smem:[#allocation24_spill]]  ;;  %s9254_s16 = smov %s6827_s17 }
 0x735   : > { %s9255_s17 = smov %s7073_s3  ;;  %s9256_s19 = smov %s6839_s20 }
 0x736   : > { %s9257_s20 = smov %s7076_s7  ;;  %s9258_s21 = smov %s6851_s23 }
 0x737   : > { %s9259_s22 = smov %s6855_s24  ;;  %s9261_s24 = smov %s9267_s28 }
 0x738   :  { %23 = sbr.rel (!%p21_p6) target bundleno = 16 (0x10), region = 110 }
 0x73a   : > { %s9260_s23 = smov %s9253_s26 }
 0x73d   :  { %4977 = vsyncpa [#allocation3], 1 }
 0x73e   :  { %4979 = vsyncpa [#allocation3 + $0x1], 1 }
 0x73f   :  { %4980 = vsyncpa [#allocation6], 1 }
 0x740   :  { %4982 = vsyncpa [#allocation6 + $0x1], 1 }
 0x741   :  { %4983 = vsyncpa [#allocation9], 1 }
 0x742   :  { %4984 = vsyncpa [#allocation4], 1 }
 0x743   :  { %4986 = vsyncpa [#allocation4 + $0x1], 1 }

</bundles_post_ra>
